<compile_context>
chip_gen: v7x
topology: tpu7x:2x2x1
jax: 0.10.0
libtpu: 0.0.40
codegen_flags: <defaults>
</compile_context>

<pallas_src>
import functools
import math

import jax
import jax.numpy as jnp
from jax import lax
from jax.experimental import pallas as pl
from jax.experimental.pallas import tpu as pltpu


def _sigmoid(x):
    # sigmoid(x) = 0.5*(tanh(x/2)+1): exact identity; tanh runs on the EUP slot.
    return 0.5 * (jnp.tanh(0.5 * x) + 1.0)


def _round_up(x, m):
    return ((x + m - 1) // m) * m


def char_rnn_kernel(x_ref, h0_ref, wih_ref, whh_ref, bi_ref, bhn_ref,
                    wdec_ref, bdec_ref,
                    probs_ref, hout_ref,
                    h_sc, gi_sc, seq_sc,
                    *, num_layers, hidden_pad, t_tile, b_tile,
                    compute_dtype, unroll):
    """One (batch_tile, time_tile) grid cell of the L-layer GRU + decoder.

    x_ref    : (Tt, Bb, Hp) f32        time-tile of embedded input
    h0_ref   : (L, Bb, Hp)  f32        initial hidden state for this batch tile
    wih_ref  : (L, Hp, 3Hp) cdtype     fused/pre-transposed input weights (r|z|n)
    whh_ref  : (L, Hp, 3Hp) cdtype     fused/pre-transposed recurrent weights
    bi_ref   : (L, 1, 3Hp)  f32        bih with bhh_r/bhh_z folded in
    bhn_ref  : (L, 1, Hp)   f32        n-gate recurrent bias (cannot be folded)
    wdec_ref : (Hp, Ap)     cdtype     decoder weight (padded lanes zero)
    bdec_ref : (1, Ap)      f32        padded lanes = -1e30 -> softmax prob 0
    probs_ref: (Tt, Bb, Ap) f32
    hout_ref : (L, Bb, Hp)  f32        written at the last time tile
    h_sc     : (L, Bb, Hp)  f32 scratch, carried across time tiles
    gi_sc    : (Tt*Bb, 3Hp) f32 scratch (fused input projections)
    seq_sc   : (Tt*Bb, Hp)  f32 scratch (layer outputs for this tile)
    """
    L, Hp, Tt, Bb = num_layers, hidden_pad, t_tile, b_tile
    TB = Tt * Bb
    cdt = compute_dtype

    # Initialize the carried hidden state at the first time tile of each batch tile.
    @pl.when(pl.program_id(1) == 0)
    def _init():
        h_sc[...] = h0_ref[...]

    for layer in range(L):                           # static -> unrolled
        if layer == 0:
            x_slab = x_ref[...].reshape(TB, Hp)      # layout-preserving (Bb % 8 == 0)
        else:
            x_slab = seq_sc[...]

        # Fused input projection for all timesteps of this tile (off the
        # recurrent critical path); r/z recurrent biases already folded into bi.
        gi_sc[...] = (jnp.dot(x_slab.astype(cdt), wih_ref[layer],
                              preferred_element_type=jnp.float32)
                      + bi_ref[layer])

        # Hoist the n-gate recurrent bias broadcast out of the time loop.
        bhn_b = jnp.broadcast_to(bhn_ref[layer], (Bb, Hp))

        def step(t, h_prev):
            row = pl.multiple_of(t * Bb, Bb)         # aligned sublane slice start
            # Single fused recurrent matmul on the serial path; RHS indexed from
            # the VMEM ref (not hoisted into vregs).
            gh = jnp.dot(h_prev.astype(cdt), whh_ref[layer],
                         preferred_element_type=jnp.float32)      # (Bb, 3Hp)
            gi = gi_sc[pl.ds(row, Bb), :]                          # (Bb, 3Hp)
            r = _sigmoid(gi[:, 0:Hp] + gh[:, 0:Hp])
            z = _sigmoid(gi[:, Hp:2 * Hp] + gh[:, Hp:2 * Hp])
            n = jnp.tanh(gi[:, 2 * Hp:3 * Hp]
                         + r * (gh[:, 2 * Hp:3 * Hp] + bhn_b))
            h_new = n + z * (h_prev - n)             # == (1-z)*n + z*h_prev
            seq_sc[pl.ds(row, Bb), :] = h_new        # lane-dense (Bb, 128k) store
            return h_new

        h_final = lax.fori_loop(0, Tt, step, h_sc[layer], unroll=unroll)
        h_sc[layer] = h_final

    # Decoder + softmax for this tile: one big matmul + lane-dense stores.
    logits = (jnp.dot(seq_sc[...].astype(cdt), wdec_ref[...],
                      preferred_element_type=jnp.float32) + bdec_ref[...])
    logits = logits - jnp.max(logits, axis=-1, keepdims=True)
    e = jnp.exp(logits)
    probs = e * pl.reciprocal(jnp.sum(e, axis=-1, keepdims=True), approx=False)
    probs_ref[...] = probs.reshape(Tt, Bb, probs_ref.shape[2])

    @pl.when(pl.program_id(1) == pl.num_programs(1) - 1)
    def _finalize():
        hout_ref[...] = h_sc[...]


def char_rnn_forward(tokens, memory, params, *, num_layers, hidden_size,
                     t_tile=8, b_tile=8, compute_dtype=jnp.float32):
    """tokens: (B, T) int32; memory: (L, B, H) f32 or None.
    Returns (probs (B, T, A), new_memory (L, B, H)) -- matches CharRnnCore.forward."""
    emb, wih, whh, bih, bhh, wdec, bdec = (
        params["emb"], params["wih"], params["whh"], params["bih"],
        params["bhh"], params["wdec"], params["bdec"])

    B, T = tokens.shape
    L, H = num_layers, hidden_size
    A = wdec.shape[0]
    Hp = _round_up(H, 128)            # lane-aligned hidden (dense stores, fused gates)
    Ap = _round_up(A, 128)            # lane-aligned alphabet
    b_tile = max(8, _round_up(b_tile, 8))
    Bp = _round_up(max(B, 1), b_tile)
    nb = Bp // b_tile
    tt = max(1, min(t_tile, T))
    while T % tt:                     # pick a time tile that divides T exactly
        tt -= 1
    nt = T // tt
    unroll = max(1, min(tt, 8))       # capped unroll (avoid vreg blowup at large T)

    if memory is None:
        memory = jnp.zeros((L, B, H), dtype=jnp.float32)

    # --- plain-JAX glue: embedding lookup, layout plumbing, weight prep ---
    emb_p = jnp.pad(emb.astype(jnp.float32), ((0, 0), (0, Hp - H)))
    x = jnp.take(emb_p, tokens, axis=0)                       # (B, T, Hp)
    x = jnp.transpose(x, (1, 0, 2))                           # (T, B, Hp) time-major
    x = jnp.pad(x, ((0, 0), (0, Bp - B), (0, 0)))             # (T, Bp, Hp) f32

    h0 = jnp.pad(memory.astype(jnp.float32),
                 ((0, 0), (0, Bp - B), (0, Hp - H)))          # (L, Bp, Hp)

    def fuse_gates(w):   # (3H, H) PyTorch [r;z;n] rows -> (Hp, 3Hp) [r|z|n] cols
        wg = jnp.transpose(w.reshape(3, H, H), (0, 2, 1))     # (3, in, out)
        wg = jnp.pad(wg, ((0, 0), (0, Hp - H), (0, Hp - H)))
        return jnp.concatenate([wg[0], wg[1], wg[2]], axis=1)

    wih_f = jnp.stack([fuse_gates(wih[l]) for l in range(L)]).astype(compute_dtype)
    whh_f = jnp.stack([fuse_gates(whh[l]) for l in range(L)]).astype(compute_dtype)

    bih_g = bih.reshape(L, 3, H).astype(jnp.float32)
    bhh_g = bhh.reshape(L, 3, H).astype(jnp.float32)
    padH = lambda v: jnp.pad(v, ((0, 0), (0, Hp - H)))        # (L,H) -> (L,Hp)
    # Fold bhh_r / bhh_z into the precomputed input-projection bias (exact);
    # bhh_n must stay inside r*( . ) per the PyTorch GRU formulation.
    bi_f = jnp.concatenate([padH(bih_g[:, 0] + bhh_g[:, 0]),
                            padH(bih_g[:, 1] + bhh_g[:, 1]),
                            padH(bih_g[:, 2])], axis=1).reshape(L, 1, 3 * Hp)
    bhn_f = padH(bhh_g[:, 2]).reshape(L, 1, Hp)

    wdec_t = jnp.pad(wdec.T.astype(jnp.float32),
                     ((0, Hp - H), (0, Ap - A))).astype(compute_dtype)   # (Hp, Ap)
    bdec_p = jnp.pad(bdec.astype(jnp.float32), ((0, 0), (0, Ap - A)),
                     constant_values=-1e30)                              # (1, Ap)

    kernel = functools.partial(
        char_rnn_kernel, num_layers=L, hidden_pad=Hp, t_tile=tt, b_tile=b_tile,
        compute_dtype=compute_dtype, unroll=unroll)

    in_specs = [
        pl.BlockSpec((tt, b_tile, Hp), lambda b, t: (t, b, 0)),      # x
        pl.BlockSpec((L, b_tile, Hp), lambda b, t: (0, b, 0)),       # h0
        pl.BlockSpec((L, Hp, 3 * Hp), lambda b, t: (0, 0, 0)),       # wih (fused)
        pl.BlockSpec((L, Hp, 3 * Hp), lambda b, t: (0, 0, 0)),       # whh (fused)
        pl.BlockSpec((L, 1, 3 * Hp), lambda b, t: (0, 0, 0)),        # bi (folded)
        pl.BlockSpec((L, 1, Hp), lambda b, t: (0, 0, 0)),            # bhn
        pl.BlockSpec((Hp, Ap), lambda b, t: (0, 0)),                 # wdec
        pl.BlockSpec((1, Ap), lambda b, t: (0, 0)),                  # bdec
    ]
    out_specs = (
        pl.BlockSpec((tt, b_tile, Ap), lambda b, t: (t, b, 0)),      # probs
        pl.BlockSpec((L, b_tile, Hp), lambda b, t: (0, b, 0)),       # hout
    )
    scratch_shapes = [
        pltpu.VMEM((L, b_tile, Hp), jnp.float32),          # carried hidden state
        pltpu.VMEM((tt * b_tile, 3 * Hp), jnp.float32),    # fused input projections
        pltpu.VMEM((tt * b_tile, Hp), jnp.float32),        # layer outputs (tile)
    ]

    # Explicit scoped-VMEM limit sized from the actual footprint (+ headroom),
    # capped at 64 MiB so it is valid on every chip (v7x has 64 MiB / TC).
    def _nbytes(shape, dt):
        return int(math.prod(shape)) * jnp.dtype(dt).itemsize
    weight_bytes = (2 * _nbytes((L, Hp, 3 * Hp), compute_dtype)
                    + _nbytes((L, 1, 3 * Hp), jnp.float32)
                    + _nbytes((L, 1, Hp), jnp.float32)
                    + _nbytes((Hp, Ap), compute_dtype)
                    + _nbytes((1, Ap), jnp.float32))
    block_bytes = (_nbytes((tt, b_tile, Hp), jnp.float32)
                   + 2 * _nbytes((L, b_tile, Hp), jnp.float32)
                   + _nbytes((tt, b_tile, Ap), jnp.float32))
    scratch_bytes = (_nbytes((L, b_tile, Hp), jnp.float32)
                     + _nbytes((tt * b_tile, 3 * Hp), jnp.float32)
                     + _nbytes((tt * b_tile, Hp), jnp.float32))
    vmem_limit = 2 * weight_bytes + 3 * block_bytes + 2 * scratch_bytes + (4 << 20)
    vmem_limit = int(min(64 << 20, max(16 << 20, vmem_limit)))

    probs_full, h_out = pl.pallas_call(
        kernel,
        out_shape=(jax.ShapeDtypeStruct((T, Bp, Ap), jnp.float32),
                   jax.ShapeDtypeStruct((L, Bp, Hp), jnp.float32)),
        grid_spec=pltpu.PrefetchScalarGridSpec(
            num_scalar_prefetch=0,
            grid=(nb, nt),
            in_specs=in_specs,
            out_specs=out_specs,
            scratch_shapes=scratch_shapes),
        compiler_params=pltpu.CompilerParams(
            dimension_semantics=("parallel", "arbitrary"),
            vmem_limit_bytes=vmem_limit),
    )(x, h0, wih_f, whh_f, bi_f, bhn_f, wdec_t, bdec_p)

    probs = jnp.transpose(probs_full[:, :B, :A], (1, 0, 2))   # (B, T, A)
    return probs, h_out[:, :B, :H]


def init_params(key, alphabet_size, hidden_size, num_layers):
    """Deterministic synthetic parameters with PyTorch-style shapes."""
    H, A, L = hidden_size, alphabet_size, num_layers
    ks = jax.random.split(key, 7)
    s = 1.0 / jnp.sqrt(jnp.float32(H))
    u = lambda k, shape: jax.random.uniform(k, shape, jnp.float32, -s, s)
    return {
        "emb":  jax.random.normal(ks[0], (A, H), jnp.float32),
        "wih":  u(ks[1], (L, 3 * H, H)),
        "whh":  u(ks[2], (L, 3 * H, H)),
        "bih":  u(ks[3], (L, 1, 3 * H)),
        "bhh":  u(ks[4], (L, 1, 3 * H)),
        "wdec": u(ks[5], (A, H)),
        "bdec": u(ks[6], (1, A)),
    }


def reference_forward(tokens, memory, params, *, num_layers, hidden_size):
    """Pure-JAX reference (same math as torch.nn.GRU + Linear + Softmax)."""
    emb, wih, whh, bih, bhh, wdec, bdec = (
        params["emb"], params["wih"], params["whh"], params["bih"],
        params["bhh"], params["wdec"], params["bdec"])
    B, T = tokens.shape
    L, H = num_layers, hidden_size
    if memory is None:
        memory = jnp.zeros((L, B, H), jnp.float32)
    x = jnp.take(emb, tokens, axis=0)  # (B, T, H)

    def step(h_all, x_t):
        inp = x_t
        new_h = []
        for l in range(L):
            gi = inp @ wih[l].T + bih[l]
            gh = h_all[l] @ whh[l].T + bhh[l]
            r = jax.nn.sigmoid(gi[:, :H] + gh[:, :H])
            z = jax.nn.sigmoid(gi[:, H:2 * H] + gh[:, H:2 * H])
            n = jnp.tanh(gi[:, 2 * H:] + r * gh[:, 2 * H:])
            h_new = (1 - z) * n + z * h_all[l]
            new_h.append(h_new)
            inp = h_new
        probs = jax.nn.softmax(inp @ wdec.T + bdec, axis=-1)
        return jnp.stack(new_h), probs

    h_final, probs_tm = lax.scan(step, memory, jnp.transpose(x, (1, 0, 2)))
    return jnp.transpose(probs_tm, (1, 0, 2)), h_final


if __name__ == "__main__":
    ALPHABET = "abcdefghijklmnop"          # alphabet_size = 16
    ALPHABET_SIZE = len(ALPHABET)
    HIDDEN = 32
    NUM_LAYERS = 2
    BATCH = 2
    SEQ = 8

    key = jax.random.PRNGKey(0)
    k_params, k_tokens = jax.random.split(key)
    params = init_params(k_params, ALPHABET_SIZE, HIDDEN, NUM_LAYERS)
    tokens = jax.random.randint(k_tokens, (BATCH, SEQ), 0, ALPHABET_SIZE, jnp.int32)

    ref_probs, ref_mem = reference_forward(
        tokens, None, params, num_layers=NUM_LAYERS, hidden_size=HIDDEN)

    # f32 path; t_tile=4 -> 2 time tiles, exercising the carried-state grid.
    probs, new_memory = char_rnn_forward(
        tokens, None, params, num_layers=NUM_LAYERS, hidden_size=HIDDEN,
        t_tile=4, compute_dtype=jnp.float32)
    jax.block_until_ready((probs, new_memory))

    assert probs.shape == (BATCH, SEQ, ALPHABET_SIZE)
    assert new_memory.shape == (NUM_LAYERS, BATCH, HIDDEN)
    assert jnp.allclose(probs, ref_probs, atol=1e-5, rtol=1e-5)
    assert jnp.allclose(new_memory, ref_mem, atol=1e-5, rtol=1e-5)

    # bf16 path (v6e/v7x MXU-friendly): same math, loose tolerance vs f32 ref.
    probs_bf, mem_bf = char_rnn_forward(
        tokens, None, params, num_layers=NUM_LAYERS, hidden_size=HIDDEN,
        t_tile=4, compute_dtype=jnp.bfloat16)
    jax.block_until_ready((probs_bf, mem_bf))
    assert probs_bf.shape == (BATCH, SEQ, ALPHABET_SIZE)
    assert bool(jnp.all(jnp.isfinite(probs_bf)))
    assert float(jnp.max(jnp.abs(probs_bf - ref_probs))) < 0.1
    assert float(jnp.max(jnp.abs(mem_bf - ref_mem))) < 0.15

    print("KERNEL_OK")
</pallas_src>

<mosaic_0001>
module attributes {stable_mosaic.version = 11 : i64} {
  func.func @char_rnn_kernel(%arg0: i32, %arg1: i32, %arg2: memref<4x8x128xf32, #tpu.memory_space<vmem>>, %arg3: memref<2x8x128xf32, #tpu.memory_space<vmem>>, %arg4: memref<2x128x384xf32, #tpu.memory_space<vmem>>, %arg5: memref<2x128x384xf32, #tpu.memory_space<vmem>>, %arg6: memref<2x1x384xf32, #tpu.memory_space<vmem>>, %arg7: memref<2x1x128xf32, #tpu.memory_space<vmem>>, %arg8: memref<128x128xf32, #tpu.memory_space<vmem>>, %arg9: memref<1x128xf32, #tpu.memory_space<vmem>>, %arg10: memref<4x8x128xf32, #tpu.memory_space<vmem>>, %arg11: memref<2x8x128xf32, #tpu.memory_space<vmem>>, %arg12: memref<2x8x128xf32, #tpu.memory_space<vmem>>, %arg13: memref<32x384xf32, #tpu.memory_space<vmem>>, %arg14: memref<32x128xf32, #tpu.memory_space<vmem>>) attributes {dimension_semantics = [#tpu.dimension_semantics<parallel>, #tpu.dimension_semantics<arbitrary>], iteration_bounds = array<i64: 1, 2>, scalar_prefetch = 0 : i64, scratch_operands = 3 : i64, tpu.core_type = #tpu.core_type<tc>, window_params = [{transform_indices = @transform_0, window_bounds = array<i64: 4, 8, 128>}, {transform_indices = @transform_1, window_bounds = array<i64: 2, 8, 128>}, {pipeline_mode = #tpu.pipeline_mode<synchronous>, transform_indices = @transform_2, window_bounds = array<i64: 2, 128, 384>}, {pipeline_mode = #tpu.pipeline_mode<synchronous>, transform_indices = @transform_3, window_bounds = array<i64: 2, 128, 384>}, {pipeline_mode = #tpu.pipeline_mode<synchronous>, transform_indices = @transform_4, window_bounds = array<i64: 2, 1, 384>}, {pipeline_mode = #tpu.pipeline_mode<synchronous>, transform_indices = @transform_5, window_bounds = array<i64: 2, 1, 128>}, {pipeline_mode = #tpu.pipeline_mode<synchronous>, transform_indices = @transform_6, window_bounds = array<i64: 128, 128>}, {pipeline_mode = #tpu.pipeline_mode<synchronous>, transform_indices = @transform_7, window_bounds = array<i64: 1, 128>}, {transform_indices = @transform_8, window_bounds = array<i64: 4, 8, 128>}, {transform_indices = @transform_9, window_bounds = array<i64: 2, 8, 128>}]} {
    %c0_i32 = arith.constant 0 : i32
    %0 = arith.cmpi eq, %arg1, %c0_i32 : i32
    %1 = arith.extui %0 : i1 to i32
    %c0_i32_0 = arith.constant 0 : i32
    %2 = arith.cmpi ne, %1, %c0_i32_0 : i32
    scf.if %2 {
      %c0_162 = arith.constant 0 : index
      %c0_163 = arith.constant 0 : index
      %c0_164 = arith.constant 0 : index
      %365 = vector.load %arg3[%c0_162, %c0_163, %c0_164] : memref<2x8x128xf32, #tpu.memory_space<vmem>>, vector<2x8x128xf32>
      %c0_165 = arith.constant 0 : index
      %c0_166 = arith.constant 0 : index
      %c0_167 = arith.constant 0 : index
      %366 = vector.load %arg12[%c0_165, %c0_166, %c0_167] : memref<2x8x128xf32, #tpu.memory_space<vmem>>, vector<2x8x128xf32>
      tpu.vector_store %arg12[%c0_165, %c0_166, %c0_167], %365 {strides = array<i32>} : memref<2x8x128xf32, #tpu.memory_space<vmem>>, vector<2x8x128xf32>,
    } else {
    }
    %c0 = arith.constant 0 : index
    %c0_1 = arith.constant 0 : index
    %c0_2 = arith.constant 0 : index
    %3 = vector.load %arg2[%c0, %c0_1, %c0_2] : memref<4x8x128xf32, #tpu.memory_space<vmem>>, vector<4x8x128xf32>
    %4 = vector.shape_cast %3 : vector<4x8x128xf32> to vector<32x128xf32>
    %c0_3 = arith.constant 0 : index
    %c0_4 = arith.constant 0 : index
    %c0_5 = arith.constant 0 : index
    %5 = vector.load %arg4[%c0_3, %c0_4, %c0_5] : memref<2x128x384xf32, #tpu.memory_space<vmem>>, vector<1x128x384xf32>
    %6 = vector.shape_cast %5 : vector<1x128x384xf32> to vector<128x384xf32>
    %cst = arith.constant dense<0.000000e+00> : vector<32x384xf32>
    %7 = tpu.matmul %4, %6, %cst {dimension_numbers = #tpu.dot_dimension_numbers<[1], [0], [0], [1], [0, 0, 1, 1], [], []>} : vector<32x128xf32>, vector<128x384xf32>, vector<32x384xf32> -> vector<32x384xf32>
    %c0_6 = arith.constant 0 : index
    %c0_7 = arith.constant 0 : index
    %c0_8 = arith.constant 0 : index
    %8 = vector.load %arg6[%c0_6, %c0_7, %c0_8] : memref<2x1x384xf32, #tpu.memory_space<vmem>>, vector<1x1x384xf32>
    %9 = vector.shape_cast %8 : vector<1x1x384xf32> to vector<1x384xf32>
    %10 = vector.broadcast %9 : vector<1x384xf32> to vector<32x384xf32>
    %11 = arith.addf %7, %10 : vector<32x384xf32>
    %c0_9 = arith.constant 0 : index
    %c0_10 = arith.constant 0 : index
    %12 = vector.load %arg13[%c0_9, %c0_10] : memref<32x384xf32, #tpu.memory_space<vmem>>, vector<32x384xf32>
    tpu.vector_store %arg13[%c0_9, %c0_10], %11 {strides = array<i32>} : memref<32x384xf32, #tpu.memory_space<vmem>>, vector<32x384xf32>,
    %c0_11 = arith.constant 0 : index
    %c0_12 = arith.constant 0 : index
    %c0_13 = arith.constant 0 : index
    %13 = vector.load %arg7[%c0_11, %c0_12, %c0_13] : memref<2x1x128xf32, #tpu.memory_space<vmem>>, vector<1x1x128xf32>
    %14 = vector.shape_cast %13 : vector<1x1x128xf32> to vector<1x128xf32>
    %15 = vector.shape_cast %14 : vector<1x128xf32> to vector<1x128xf32>
    %16 = vector.broadcast %15 : vector<1x128xf32> to vector<8x128xf32>
    %c0_14 = arith.constant 0 : index
    %c0_15 = arith.constant 0 : index
    %c0_16 = arith.constant 0 : index
    %17 = vector.load %arg12[%c0_14, %c0_15, %c0_16] : memref<2x8x128xf32, #tpu.memory_space<vmem>>, vector<1x8x128xf32>
    %18 = vector.shape_cast %17 : vector<1x8x128xf32> to vector<8x128xf32>
    %c0_i32_17 = arith.constant 0 : i32
    %c8_i32 = arith.constant 8 : i32
    %19 = arith.muli %c0_i32_17, %c8_i32 : i32
    %20 = tpu.assume_multiple %19, 8 : i32
    %c0_18 = arith.constant 0 : index
    %c0_19 = arith.constant 0 : index
    %c0_20 = arith.constant 0 : index
    %21 = vector.load %arg5[%c0_18, %c0_19, %c0_20] : memref<2x128x384xf32, #tpu.memory_space<vmem>>, vector<1x128x384xf32>
    %22 = vector.shape_cast %21 : vector<1x128x384xf32> to vector<128x384xf32>
    %cst_21 = arith.constant dense<0.000000e+00> : vector<8x384xf32>
    %23 = tpu.matmul %18, %22, %cst_21 {dimension_numbers = #tpu.dot_dimension_numbers<[1], [0], [0], [1], [0, 0, 1, 1], [], []>} : vector<8x128xf32>, vector<128x384xf32>, vector<8x384xf32> -> vector<8x384xf32>
    %24 = arith.index_cast %20 : i32 to index
    %c0_22 = arith.constant 0 : index
    %25 = vector.load %arg13[%24, %c0_22] : memref<32x384xf32, #tpu.memory_space<vmem>>, vector<8x384xf32>
    %26 = vector.extract_strided_slice %25 {offsets = [0, 0], sizes = [8, 128], strides = [1, 1]} : vector<8x384xf32> to vector<8x128xf32>
    %27 = vector.extract_strided_slice %23 {offsets = [0, 0], sizes = [8, 128], strides = [1, 1]} : vector<8x384xf32> to vector<8x128xf32>
    %28 = arith.addf %26, %27 : vector<8x128xf32>
    %cst_23 = arith.constant 5.000000e-01 : f32
    %29 = vector.broadcast %cst_23 : f32 to vector<8x128xf32>
    %30 = arith.mulf %29, %28 : vector<8x128xf32>
    %31 = math.tanh %30 : vector<8x128xf32>
    %cst_24 = arith.constant 1.000000e+00 : f32
    %32 = vector.broadcast %cst_24 : f32 to vector<8x128xf32>
    %33 = arith.addf %31, %32 : vector<8x128xf32>
    %cst_25 = arith.constant 5.000000e-01 : f32
    %34 = vector.broadcast %cst_25 : f32 to vector<8x128xf32>
    %35 = arith.mulf %34, %33 : vector<8x128xf32>
    %36 = vector.extract_strided_slice %25 {offsets = [0, 128], sizes = [8, 128], strides = [1, 1]} : vector<8x384xf32> to vector<8x128xf32>
    %37 = vector.extract_strided_slice %23 {offsets = [0, 128], sizes = [8, 128], strides = [1, 1]} : vector<8x384xf32> to vector<8x128xf32>
    %38 = arith.addf %36, %37 : vector<8x128xf32>
    %cst_26 = arith.constant 5.000000e-01 : f32
    %39 = vector.broadcast %cst_26 : f32 to vector<8x128xf32>
    %40 = arith.mulf %39, %38 : vector<8x128xf32>
    %41 = math.tanh %40 : vector<8x128xf32>
    %cst_27 = arith.constant 1.000000e+00 : f32
    %42 = vector.broadcast %cst_27 : f32 to vector<8x128xf32>
    %43 = arith.addf %41, %42 : vector<8x128xf32>
    %cst_28 = arith.constant 5.000000e-01 : f32
    %44 = vector.broadcast %cst_28 : f32 to vector<8x128xf32>
    %45 = arith.mulf %44, %43 : vector<8x128xf32>
    %46 = vector.extract_strided_slice %25 {offsets = [0, 256], sizes = [8, 128], strides = [1, 1]} : vector<8x384xf32> to vector<8x128xf32>
    %47 = vector.extract_strided_slice %23 {offsets = [0, 256], sizes = [8, 128], strides = [1, 1]} : vector<8x384xf32> to vector<8x128xf32>
    %48 = arith.addf %47, %16 : vector<8x128xf32>
    %49 = arith.mulf %35, %48 : vector<8x128xf32>
    %50 = arith.addf %46, %49 : vector<8x128xf32>
    %51 = math.tanh %50 : vector<8x128xf32>
    %52 = arith.subf %18, %51 : vector<8x128xf32>
    %53 = arith.mulf %45, %52 : vector<8x128xf32>
    %54 = arith.addf %51, %53 : vector<8x128xf32>
    %55 = arith.index_cast %20 : i32 to index
    %c0_29 = arith.constant 0 : index
    %56 = vector.load %arg14[%55, %c0_29] : memref<32x128xf32, #tpu.memory_space<vmem>>, vector<8x128xf32>
    tpu.vector_store %arg14[%55, %c0_29], %54 {strides = array<i32>} : memref<32x128xf32, #tpu.memory_space<vmem>>, vector<8x128xf32>,
    %c1_i32 = arith.constant 1 : i32
    %c8_i32_30 = arith.constant 8 : i32
    %57 = arith.muli %c1_i32, %c8_i32_30 : i32
    %58 = tpu.assume_multiple %57, 8 : i32
    %c0_31 = arith.constant 0 : index
    %c0_32 = arith.constant 0 : index
    %c0_33 = arith.constant 0 : index
    %59 = vector.load %arg5[%c0_31, %c0_32, %c0_33] : memref<2x128x384xf32, #tpu.memory_space<vmem>>, vector<1x128x384xf32>
    %60 = vector.shape_cast %59 : vector<1x128x384xf32> to vector<128x384xf32>
    %cst_34 = arith.constant dense<0.000000e+00> : vector<8x384xf32>
    %61 = tpu.matmul %54, %60, %cst_34 {dimension_numbers = #tpu.dot_dimension_numbers<[1], [0], [0], [1], [0, 0, 1, 1], [], []>} : vector<8x128xf32>, vector<128x384xf32>, vector<8x384xf32> -> vector<8x384xf32>
    %62 = arith.index_cast %58 : i32 to index
    %c0_35 = arith.constant 0 : index
    %63 = vector.load %arg13[%62, %c0_35] : memref<32x384xf32, #tpu.memory_space<vmem>>, vector<8x384xf32>
    %64 = vector.extract_strided_slice %63 {offsets = [0, 0], sizes = [8, 128], strides = [1, 1]} : vector<8x384xf32> to vector<8x128xf32>
    %65 = vector.extract_strided_slice %61 {offsets = [0, 0], sizes = [8, 128], strides = [1, 1]} : vector<8x384xf32> to vector<8x128xf32>
    %66 = arith.addf %64, %65 : vector<8x128xf32>
    %cst_36 = arith.constant 5.000000e-01 : f32
    %67 = vector.broadcast %cst_36 : f32 to vector<8x128xf32>
    %68 = arith.mulf %67, %66 : vector<8x128xf32>
    %69 = math.tanh %68 : vector<8x128xf32>
    %cst_37 = arith.constant 1.000000e+00 : f32
    %70 = vector.broadcast %cst_37 : f32 to vector<8x128xf32>
    %71 = arith.addf %69, %70 : vector<8x128xf32>
    %cst_38 = arith.constant 5.000000e-01 : f32
    %72 = vector.broadcast %cst_38 : f32 to vector<8x128xf32>
    %73 = arith.mulf %72, %71 : vector<8x128xf32>
    %74 = vector.extract_strided_slice %63 {offsets = [0, 128], sizes = [8, 128], strides = [1, 1]} : vector<8x384xf32> to vector<8x128xf32>
    %75 = vector.extract_strided_slice %61 {offsets = [0, 128], sizes = [8, 128], strides = [1, 1]} : vector<8x384xf32> to vector<8x128xf32>
    %76 = arith.addf %74, %75 : vector<8x128xf32>
    %cst_39 = arith.constant 5.000000e-01 : f32
    %77 = vector.broadcast %cst_39 : f32 to vector<8x128xf32>
    %78 = arith.mulf %77, %76 : vector<8x128xf32>
    %79 = math.tanh %78 : vector<8x128xf32>
    %cst_40 = arith.constant 1.000000e+00 : f32
    %80 = vector.broadcast %cst_40 : f32 to vector<8x128xf32>
    %81 = arith.addf %79, %80 : vector<8x128xf32>
    %cst_41 = arith.constant 5.000000e-01 : f32
    %82 = vector.broadcast %cst_41 : f32 to vector<8x128xf32>
    %83 = arith.mulf %82, %81 : vector<8x128xf32>
    %84 = vector.extract_strided_slice %63 {offsets = [0, 256], sizes = [8, 128], strides = [1, 1]} : vector<8x384xf32> to vector<8x128xf32>
    %85 = vector.extract_strided_slice %61 {offsets = [0, 256], sizes = [8, 128], strides = [1, 1]} : vector<8x384xf32> to vector<8x128xf32>
    %86 = arith.addf %85, %16 : vector<8x128xf32>
    %87 = arith.mulf %73, %86 : vector<8x128xf32>
    %88 = arith.addf %84, %87 : vector<8x128xf32>
    %89 = math.tanh %88 : vector<8x128xf32>
    %90 = arith.subf %54, %89 : vector<8x128xf32>
    %91 = arith.mulf %83, %90 : vector<8x128xf32>
    %92 = arith.addf %89, %91 : vector<8x128xf32>
    %93 = arith.index_cast %58 : i32 to index
    %c0_42 = arith.constant 0 : index
    %94 = vector.load %arg14[%93, %c0_42] : memref<32x128xf32, #tpu.memory_space<vmem>>, vector<8x128xf32>
    tpu.vector_store %arg14[%93, %c0_42], %92 {strides = array<i32>} : memref<32x128xf32, #tpu.memory_space<vmem>>, vector<8x128xf32>,
    %c2_i32 = arith.constant 2 : i32
    %c8_i32_43 = arith.constant 8 : i32
    %95 = arith.muli %c2_i32, %c8_i32_43 : i32
    %96 = tpu.assume_multiple %95, 8 : i32
    %c0_44 = arith.constant 0 : index
    %c0_45 = arith.constant 0 : index
    %c0_46 = arith.constant 0 : index
    %97 = vector.load %arg5[%c0_44, %c0_45, %c0_46] : memref<2x128x384xf32, #tpu.memory_space<vmem>>, vector<1x128x384xf32>
    %98 = vector.shape_cast %97 : vector<1x128x384xf32> to vector<128x384xf32>
    %cst_47 = arith.constant dense<0.000000e+00> : vector<8x384xf32>
    %99 = tpu.matmul %92, %98, %cst_47 {dimension_numbers = #tpu.dot_dimension_numbers<[1], [0], [0], [1], [0, 0, 1, 1], [], []>} : vector<8x128xf32>, vector<128x384xf32>, vector<8x384xf32> -> vector<8x384xf32>
    %100 = arith.index_cast %96 : i32 to index
    %c0_48 = arith.constant 0 : index
    %101 = vector.load %arg13[%100, %c0_48] : memref<32x384xf32, #tpu.memory_space<vmem>>, vector<8x384xf32>
    %102 = vector.extract_strided_slice %101 {offsets = [0, 0], sizes = [8, 128], strides = [1, 1]} : vector<8x384xf32> to vector<8x128xf32>
    %103 = vector.extract_strided_slice %99 {offsets = [0, 0], sizes = [8, 128], strides = [1, 1]} : vector<8x384xf32> to vector<8x128xf32>
    %104 = arith.addf %102, %103 : vector<8x128xf32>
    %cst_49 = arith.constant 5.000000e-01 : f32
    %105 = vector.broadcast %cst_49 : f32 to vector<8x128xf32>
    %106 = arith.mulf %105, %104 : vector<8x128xf32>
    %107 = math.tanh %106 : vector<8x128xf32>
    %cst_50 = arith.constant 1.000000e+00 : f32
    %108 = vector.broadcast %cst_50 : f32 to vector<8x128xf32>
    %109 = arith.addf %107, %108 : vector<8x128xf32>
    %cst_51 = arith.constant 5.000000e-01 : f32
    %110 = vector.broadcast %cst_51 : f32 to vector<8x128xf32>
    %111 = arith.mulf %110, %109 : vector<8x128xf32>
    %112 = vector.extract_strided_slice %101 {offsets = [0, 128], sizes = [8, 128], strides = [1, 1]} : vector<8x384xf32> to vector<8x128xf32>
    %113 = vector.extract_strided_slice %99 {offsets = [0, 128], sizes = [8, 128], strides = [1, 1]} : vector<8x384xf32> to vector<8x128xf32>
    %114 = arith.addf %112, %113 : vector<8x128xf32>
    %cst_52 = arith.constant 5.000000e-01 : f32
    %115 = vector.broadcast %cst_52 : f32 to vector<8x128xf32>
    %116 = arith.mulf %115, %114 : vector<8x128xf32>
    %117 = math.tanh %116 : vector<8x128xf32>
    %cst_53 = arith.constant 1.000000e+00 : f32
    %118 = vector.broadcast %cst_53 : f32 to vector<8x128xf32>
    %119 = arith.addf %117, %118 : vector<8x128xf32>
    %cst_54 = arith.constant 5.000000e-01 : f32
    %120 = vector.broadcast %cst_54 : f32 to vector<8x128xf32>
    %121 = arith.mulf %120, %119 : vector<8x128xf32>
    %122 = vector.extract_strided_slice %101 {offsets = [0, 256], sizes = [8, 128], strides = [1, 1]} : vector<8x384xf32> to vector<8x128xf32>
    %123 = vector.extract_strided_slice %99 {offsets = [0, 256], sizes = [8, 128], strides = [1, 1]} : vector<8x384xf32> to vector<8x128xf32>
    %124 = arith.addf %123, %16 : vector<8x128xf32>
    %125 = arith.mulf %111, %124 : vector<8x128xf32>
    %126 = arith.addf %122, %125 : vector<8x128xf32>
    %127 = math.tanh %126 : vector<8x128xf32>
    %128 = arith.subf %92, %127 : vector<8x128xf32>
    %129 = arith.mulf %121, %128 : vector<8x128xf32>
    %130 = arith.addf %127, %129 : vector<8x128xf32>
    %131 = arith.index_cast %96 : i32 to index
    %c0_55 = arith.constant 0 : index
    %132 = vector.load %arg14[%131, %c0_55] : memref<32x128xf32, #tpu.memory_space<vmem>>, vector<8x128xf32>
    tpu.vector_store %arg14[%131, %c0_55], %130 {strides = array<i32>} : memref<32x128xf32, #tpu.memory_space<vmem>>, vector<8x128xf32>,
    %c3_i32 = arith.constant 3 : i32
    %c8_i32_56 = arith.constant 8 : i32
    %133 = arith.muli %c3_i32, %c8_i32_56 : i32
    %134 = tpu.assume_multiple %133, 8 : i32
    %c0_57 = arith.constant 0 : index
    %c0_58 = arith.constant 0 : index
    %c0_59 = arith.constant 0 : index
    %135 = vector.load %arg5[%c0_57, %c0_58, %c0_59] : memref<2x128x384xf32, #tpu.memory_space<vmem>>, vector<1x128x384xf32>
    %136 = vector.shape_cast %135 : vector<1x128x384xf32> to vector<128x384xf32>
    %cst_60 = arith.constant dense<0.000000e+00> : vector<8x384xf32>
    %137 = tpu.matmul %130, %136, %cst_60 {dimension_numbers = #tpu.dot_dimension_numbers<[1], [0], [0], [1], [0, 0, 1, 1], [], []>} : vector<8x128xf32>, vector<128x384xf32>, vector<8x384xf32> -> vector<8x384xf32>
    %138 = arith.index_cast %134 : i32 to index
    %c0_61 = arith.constant 0 : index
    %139 = vector.load %arg13[%138, %c0_61] : memref<32x384xf32, #tpu.memory_space<vmem>>, vector<8x384xf32>
    %140 = vector.extract_strided_slice %139 {offsets = [0, 0], sizes = [8, 128], strides = [1, 1]} : vector<8x384xf32> to vector<8x128xf32>
    %141 = vector.extract_strided_slice %137 {offsets = [0, 0], sizes = [8, 128], strides = [1, 1]} : vector<8x384xf32> to vector<8x128xf32>
    %142 = arith.addf %140, %141 : vector<8x128xf32>
    %cst_62 = arith.constant 5.000000e-01 : f32
    %143 = vector.broadcast %cst_62 : f32 to vector<8x128xf32>
    %144 = arith.mulf %143, %142 : vector<8x128xf32>
    %145 = math.tanh %144 : vector<8x128xf32>
    %cst_63 = arith.constant 1.000000e+00 : f32
    %146 = vector.broadcast %cst_63 : f32 to vector<8x128xf32>
    %147 = arith.addf %145, %146 : vector<8x128xf32>
    %cst_64 = arith.constant 5.000000e-01 : f32
    %148 = vector.broadcast %cst_64 : f32 to vector<8x128xf32>
    %149 = arith.mulf %148, %147 : vector<8x128xf32>
    %150 = vector.extract_strided_slice %139 {offsets = [0, 128], sizes = [8, 128], strides = [1, 1]} : vector<8x384xf32> to vector<8x128xf32>
    %151 = vector.extract_strided_slice %137 {offsets = [0, 128], sizes = [8, 128], strides = [1, 1]} : vector<8x384xf32> to vector<8x128xf32>
    %152 = arith.addf %150, %151 : vector<8x128xf32>
    %cst_65 = arith.constant 5.000000e-01 : f32
    %153 = vector.broadcast %cst_65 : f32 to vector<8x128xf32>
    %154 = arith.mulf %153, %152 : vector<8x128xf32>
    %155 = math.tanh %154 : vector<8x128xf32>
    %cst_66 = arith.constant 1.000000e+00 : f32
    %156 = vector.broadcast %cst_66 : f32 to vector<8x128xf32>
    %157 = arith.addf %155, %156 : vector<8x128xf32>
    %cst_67 = arith.constant 5.000000e-01 : f32
    %158 = vector.broadcast %cst_67 : f32 to vector<8x128xf32>
    %159 = arith.mulf %158, %157 : vector<8x128xf32>
    %160 = vector.extract_strided_slice %139 {offsets = [0, 256], sizes = [8, 128], strides = [1, 1]} : vector<8x384xf32> to vector<8x128xf32>
    %161 = vector.extract_strided_slice %137 {offsets = [0, 256], sizes = [8, 128], strides = [1, 1]} : vector<8x384xf32> to vector<8x128xf32>
    %162 = arith.addf %161, %16 : vector<8x128xf32>
    %163 = arith.mulf %149, %162 : vector<8x128xf32>
    %164 = arith.addf %160, %163 : vector<8x128xf32>
    %165 = math.tanh %164 : vector<8x128xf32>
    %166 = arith.subf %130, %165 : vector<8x128xf32>
    %167 = arith.mulf %159, %166 : vector<8x128xf32>
    %168 = arith.addf %165, %167 : vector<8x128xf32>
    %169 = arith.index_cast %134 : i32 to index
    %c0_68 = arith.constant 0 : index
    %170 = vector.load %arg14[%169, %c0_68] : memref<32x128xf32, #tpu.memory_space<vmem>>, vector<8x128xf32>
    tpu.vector_store %arg14[%169, %c0_68], %168 {strides = array<i32>} : memref<32x128xf32, #tpu.memory_space<vmem>>, vector<8x128xf32>,
    %c4_i32 = arith.constant 4 : i32
    %c0_69 = arith.constant 0 : index
    %c0_70 = arith.constant 0 : index
    %c0_71 = arith.constant 0 : index
    %171 = vector.load %arg12[%c0_69, %c0_70, %c0_71] : memref<2x8x128xf32, #tpu.memory_space<vmem>>, vector<1x8x128xf32>
    %172 = vector.shape_cast %171 : vector<1x8x128xf32> to vector<8x128xf32>
    %173 = vector.shape_cast %168 : vector<8x128xf32> to vector<1x8x128xf32>
    tpu.vector_store %arg12[%c0_69, %c0_70, %c0_71], %173 {strides = array<i32>} : memref<2x8x128xf32, #tpu.memory_space<vmem>>, vector<1x8x128xf32>,
    %c0_72 = arith.constant 0 : index
    %c0_73 = arith.constant 0 : index
    %174 = vector.load %arg14[%c0_72, %c0_73] : memref<32x128xf32, #tpu.memory_space<vmem>>, vector<32x128xf32>
    %c1 = arith.constant 1 : index
    %c0_74 = arith.constant 0 : index
    %c0_75 = arith.constant 0 : index
    %175 = vector.load %arg4[%c1, %c0_74, %c0_75] : memref<2x128x384xf32, #tpu.memory_space<vmem>>, vector<1x128x384xf32>
    %176 = vector.shape_cast %175 : vector<1x128x384xf32> to vector<128x384xf32>
    %cst_76 = arith.constant dense<0.000000e+00> : vector<32x384xf32>
    %177 = tpu.matmul %174, %176, %cst_76 {dimension_numbers = #tpu.dot_dimension_numbers<[1], [0], [0], [1], [0, 0, 1, 1], [], []>} : vector<32x128xf32>, vector<128x384xf32>, vector<32x384xf32> -> vector<32x384xf32>
    %c1_77 = arith.constant 1 : index
    %c0_78 = arith.constant 0 : index
    %c0_79 = arith.constant 0 : index
    %178 = vector.load %arg6[%c1_77, %c0_78, %c0_79] : memref<2x1x384xf32, #tpu.memory_space<vmem>>, vector<1x1x384xf32>
    %179 = vector.shape_cast %178 : vector<1x1x384xf32> to vector<1x384xf32>
    %180 = vector.broadcast %179 : vector<1x384xf32> to vector<32x384xf32>
    %181 = arith.addf %177, %180 : vector<32x384xf32>
    %c0_80 = arith.constant 0 : index
    %c0_81 = arith.constant 0 : index
    %182 = vector.load %arg13[%c0_80, %c0_81] : memref<32x384xf32, #tpu.memory_space<vmem>>, vector<32x384xf32>
    tpu.vector_store %arg13[%c0_80, %c0_81], %181 {strides = array<i32>} : memref<32x384xf32, #tpu.memory_space<vmem>>, vector<32x384xf32>,
    %c1_82 = arith.constant 1 : index
    %c0_83 = arith.constant 0 : index
    %c0_84 = arith.constant 0 : index
    %183 = vector.load %arg7[%c1_82, %c0_83, %c0_84] : memref<2x1x128xf32, #tpu.memory_space<vmem>>, vector<1x1x128xf32>
    %184 = vector.shape_cast %183 : vector<1x1x128xf32> to vector<1x128xf32>
    %185 = vector.shape_cast %184 : vector<1x128xf32> to vector<1x128xf32>
    %186 = vector.broadcast %185 : vector<1x128xf32> to vector<8x128xf32>
    %c1_85 = arith.constant 1 : index
    %c0_86 = arith.constant 0 : index
    %c0_87 = arith.constant 0 : index
    %187 = vector.load %arg12[%c1_85, %c0_86, %c0_87] : memref<2x8x128xf32, #tpu.memory_space<vmem>>, vector<1x8x128xf32>
    %188 = vector.shape_cast %187 : vector<1x8x128xf32> to vector<8x128xf32>
    %c0_i32_88 = arith.constant 0 : i32
    %c8_i32_89 = arith.constant 8 : i32
    %189 = arith.muli %c0_i32_88, %c8_i32_89 : i32
    %190 = tpu.assume_multiple %189, 8 : i32
    %c1_90 = arith.constant 1 : index
    %c0_91 = arith.constant 0 : index
    %c0_92 = arith.constant 0 : index
    %191 = vector.load %arg5[%c1_90, %c0_91, %c0_92] : memref<2x128x384xf32, #tpu.memory_space<vmem>>, vector<1x128x384xf32>
    %192 = vector.shape_cast %191 : vector<1x128x384xf32> to vector<128x384xf32>
    %cst_93 = arith.constant dense<0.000000e+00> : vector<8x384xf32>
    %193 = tpu.matmul %188, %192, %cst_93 {dimension_numbers = #tpu.dot_dimension_numbers<[1], [0], [0], [1], [0, 0, 1, 1], [], []>} : vector<8x128xf32>, vector<128x384xf32>, vector<8x384xf32> -> vector<8x384xf32>
    %194 = arith.index_cast %190 : i32 to index
    %c0_94 = arith.constant 0 : index
    %195 = vector.load %arg13[%194, %c0_94] : memref<32x384xf32, #tpu.memory_space<vmem>>, vector<8x384xf32>
    %196 = vector.extract_strided_slice %195 {offsets = [0, 0], sizes = [8, 128], strides = [1, 1]} : vector<8x384xf32> to vector<8x128xf32>
    %197 = vector.extract_strided_slice %193 {offsets = [0, 0], sizes = [8, 128], strides = [1, 1]} : vector<8x384xf32> to vector<8x128xf32>
    %198 = arith.addf %196, %197 : vector<8x128xf32>
    %cst_95 = arith.constant 5.000000e-01 : f32
    %199 = vector.broadcast %cst_95 : f32 to vector<8x128xf32>
    %200 = arith.mulf %199, %198 : vector<8x128xf32>
    %201 = math.tanh %200 : vector<8x128xf32>
    %cst_96 = arith.constant 1.000000e+00 : f32
    %202 = vector.broadcast %cst_96 : f32 to vector<8x128xf32>
    %203 = arith.addf %201, %202 : vector<8x128xf32>
    %cst_97 = arith.constant 5.000000e-01 : f32
    %204 = vector.broadcast %cst_97 : f32 to vector<8x128xf32>
    %205 = arith.mulf %204, %203 : vector<8x128xf32>
    %206 = vector.extract_strided_slice %195 {offsets = [0, 128], sizes = [8, 128], strides = [1, 1]} : vector<8x384xf32> to vector<8x128xf32>
    %207 = vector.extract_strided_slice %193 {offsets = [0, 128], sizes = [8, 128], strides = [1, 1]} : vector<8x384xf32> to vector<8x128xf32>
    %208 = arith.addf %206, %207 : vector<8x128xf32>
    %cst_98 = arith.constant 5.000000e-01 : f32
    %209 = vector.broadcast %cst_98 : f32 to vector<8x128xf32>
    %210 = arith.mulf %209, %208 : vector<8x128xf32>
    %211 = math.tanh %210 : vector<8x128xf32>
    %cst_99 = arith.constant 1.000000e+00 : f32
    %212 = vector.broadcast %cst_99 : f32 to vector<8x128xf32>
    %213 = arith.addf %211, %212 : vector<8x128xf32>
    %cst_100 = arith.constant 5.000000e-01 : f32
    %214 = vector.broadcast %cst_100 : f32 to vector<8x128xf32>
    %215 = arith.mulf %214, %213 : vector<8x128xf32>
    %216 = vector.extract_strided_slice %195 {offsets = [0, 256], sizes = [8, 128], strides = [1, 1]} : vector<8x384xf32> to vector<8x128xf32>
    %217 = vector.extract_strided_slice %193 {offsets = [0, 256], sizes = [8, 128], strides = [1, 1]} : vector<8x384xf32> to vector<8x128xf32>
    %218 = arith.addf %217, %186 : vector<8x128xf32>
    %219 = arith.mulf %205, %218 : vector<8x128xf32>
    %220 = arith.addf %216, %219 : vector<8x128xf32>
    %221 = math.tanh %220 : vector<8x128xf32>
    %222 = arith.subf %188, %221 : vector<8x128xf32>
    %223 = arith.mulf %215, %222 : vector<8x128xf32>
    %224 = arith.addf %221, %223 : vector<8x128xf32>
    %225 = arith.index_cast %190 : i32 to index
    %c0_101 = arith.constant 0 : index
    %226 = vector.load %arg14[%225, %c0_101] : memref<32x128xf32, #tpu.memory_space<vmem>>, vector<8x128xf32>
    tpu.vector_store %arg14[%225, %c0_101], %224 {strides = array<i32>} : memref<32x128xf32, #tpu.memory_space<vmem>>, vector<8x128xf32>,
    %c1_i32_102 = arith.constant 1 : i32
    %c8_i32_103 = arith.constant 8 : i32
    %227 = arith.muli %c1_i32_102, %c8_i32_103 : i32
    %228 = tpu.assume_multiple %227, 8 : i32
    %c1_104 = arith.constant 1 : index
    %c0_105 = arith.constant 0 : index
    %c0_106 = arith.constant 0 : index
    %229 = vector.load %arg5[%c1_104, %c0_105, %c0_106] : memref<2x128x384xf32, #tpu.memory_space<vmem>>, vector<1x128x384xf32>
    %230 = vector.shape_cast %229 : vector<1x128x384xf32> to vector<128x384xf32>
    %cst_107 = arith.constant dense<0.000000e+00> : vector<8x384xf32>
    %231 = tpu.matmul %224, %230, %cst_107 {dimension_numbers = #tpu.dot_dimension_numbers<[1], [0], [0], [1], [0, 0, 1, 1], [], []>} : vector<8x128xf32>, vector<128x384xf32>, vector<8x384xf32> -> vector<8x384xf32>
    %232 = arith.index_cast %228 : i32 to index
    %c0_108 = arith.constant 0 : index
    %233 = vector.load %arg13[%232, %c0_108] : memref<32x384xf32, #tpu.memory_space<vmem>>, vector<8x384xf32>
    %234 = vector.extract_strided_slice %233 {offsets = [0, 0], sizes = [8, 128], strides = [1, 1]} : vector<8x384xf32> to vector<8x128xf32>
    %235 = vector.extract_strided_slice %231 {offsets = [0, 0], sizes = [8, 128], strides = [1, 1]} : vector<8x384xf32> to vector<8x128xf32>
    %236 = arith.addf %234, %235 : vector<8x128xf32>
    %cst_109 = arith.constant 5.000000e-01 : f32
    %237 = vector.broadcast %cst_109 : f32 to vector<8x128xf32>
    %238 = arith.mulf %237, %236 : vector<8x128xf32>
    %239 = math.tanh %238 : vector<8x128xf32>
    %cst_110 = arith.constant 1.000000e+00 : f32
    %240 = vector.broadcast %cst_110 : f32 to vector<8x128xf32>
    %241 = arith.addf %239, %240 : vector<8x128xf32>
    %cst_111 = arith.constant 5.000000e-01 : f32
    %242 = vector.broadcast %cst_111 : f32 to vector<8x128xf32>
    %243 = arith.mulf %242, %241 : vector<8x128xf32>
    %244 = vector.extract_strided_slice %233 {offsets = [0, 128], sizes = [8, 128], strides = [1, 1]} : vector<8x384xf32> to vector<8x128xf32>
    %245 = vector.extract_strided_slice %231 {offsets = [0, 128], sizes = [8, 128], strides = [1, 1]} : vector<8x384xf32> to vector<8x128xf32>
    %246 = arith.addf %244, %245 : vector<8x128xf32>
    %cst_112 = arith.constant 5.000000e-01 : f32
    %247 = vector.broadcast %cst_112 : f32 to vector<8x128xf32>
    %248 = arith.mulf %247, %246 : vector<8x128xf32>
    %249 = math.tanh %248 : vector<8x128xf32>
    %cst_113 = arith.constant 1.000000e+00 : f32
    %250 = vector.broadcast %cst_113 : f32 to vector<8x128xf32>
    %251 = arith.addf %249, %250 : vector<8x128xf32>
    %cst_114 = arith.constant 5.000000e-01 : f32
    %252 = vector.broadcast %cst_114 : f32 to vector<8x128xf32>
    %253 = arith.mulf %252, %251 : vector<8x128xf32>
    %254 = vector.extract_strided_slice %233 {offsets = [0, 256], sizes = [8, 128], strides = [1, 1]} : vector<8x384xf32> to vector<8x128xf32>
    %255 = vector.extract_strided_slice %231 {offsets = [0, 256], sizes = [8, 128], strides = [1, 1]} : vector<8x384xf32> to vector<8x128xf32>
    %256 = arith.addf %255, %186 : vector<8x128xf32>
    %257 = arith.mulf %243, %256 : vector<8x128xf32>
    %258 = arith.addf %254, %257 : vector<8x128xf32>
    %259 = math.tanh %258 : vector<8x128xf32>
    %260 = arith.subf %224, %259 : vector<8x128xf32>
    %261 = arith.mulf %253, %260 : vector<8x128xf32>
    %262 = arith.addf %259, %261 : vector<8x128xf32>
    %263 = arith.index_cast %228 : i32 to index
    %c0_115 = arith.constant 0 : index
    %264 = vector.load %arg14[%263, %c0_115] : memref<32x128xf32, #tpu.memory_space<vmem>>, vector<8x128xf32>
    tpu.vector_store %arg14[%263, %c0_115], %262 {strides = array<i32>} : memref<32x128xf32, #tpu.memory_space<vmem>>, vector<8x128xf32>,
    %c2_i32_116 = arith.constant 2 : i32
    %c8_i32_117 = arith.constant 8 : i32
    %265 = arith.muli %c2_i32_116, %c8_i32_117 : i32
    %266 = tpu.assume_multiple %265, 8 : i32
    %c1_118 = arith.constant 1 : index
    %c0_119 = arith.constant 0 : index
    %c0_120 = arith.constant 0 : index
    %267 = vector.load %arg5[%c1_118, %c0_119, %c0_120] : memref<2x128x384xf32, #tpu.memory_space<vmem>>, vector<1x128x384xf32>
    %268 = vector.shape_cast %267 : vector<1x128x384xf32> to vector<128x384xf32>
    %cst_121 = arith.constant dense<0.000000e+00> : vector<8x384xf32>
    %269 = tpu.matmul %262, %268, %cst_121 {dimension_numbers = #tpu.dot_dimension_numbers<[1], [0], [0], [1], [0, 0, 1, 1], [], []>} : vector<8x128xf32>, vector<128x384xf32>, vector<8x384xf32> -> vector<8x384xf32>
    %270 = arith.index_cast %266 : i32 to index
    %c0_122 = arith.constant 0 : index
    %271 = vector.load %arg13[%270, %c0_122] : memref<32x384xf32, #tpu.memory_space<vmem>>, vector<8x384xf32>
    %272 = vector.extract_strided_slice %271 {offsets = [0, 0], sizes = [8, 128], strides = [1, 1]} : vector<8x384xf32> to vector<8x128xf32>
    %273 = vector.extract_strided_slice %269 {offsets = [0, 0], sizes = [8, 128], strides = [1, 1]} : vector<8x384xf32> to vector<8x128xf32>
    %274 = arith.addf %272, %273 : vector<8x128xf32>
    %cst_123 = arith.constant 5.000000e-01 : f32
    %275 = vector.broadcast %cst_123 : f32 to vector<8x128xf32>
    %276 = arith.mulf %275, %274 : vector<8x128xf32>
    %277 = math.tanh %276 : vector<8x128xf32>
    %cst_124 = arith.constant 1.000000e+00 : f32
    %278 = vector.broadcast %cst_124 : f32 to vector<8x128xf32>
    %279 = arith.addf %277, %278 : vector<8x128xf32>
    %cst_125 = arith.constant 5.000000e-01 : f32
    %280 = vector.broadcast %cst_125 : f32 to vector<8x128xf32>
    %281 = arith.mulf %280, %279 : vector<8x128xf32>
    %282 = vector.extract_strided_slice %271 {offsets = [0, 128], sizes = [8, 128], strides = [1, 1]} : vector<8x384xf32> to vector<8x128xf32>
    %283 = vector.extract_strided_slice %269 {offsets = [0, 128], sizes = [8, 128], strides = [1, 1]} : vector<8x384xf32> to vector<8x128xf32>
    %284 = arith.addf %282, %283 : vector<8x128xf32>
    %cst_126 = arith.constant 5.000000e-01 : f32
    %285 = vector.broadcast %cst_126 : f32 to vector<8x128xf32>
    %286 = arith.mulf %285, %284 : vector<8x128xf32>
    %287 = math.tanh %286 : vector<8x128xf32>
    %cst_127 = arith.constant 1.000000e+00 : f32
    %288 = vector.broadcast %cst_127 : f32 to vector<8x128xf32>
    %289 = arith.addf %287, %288 : vector<8x128xf32>
    %cst_128 = arith.constant 5.000000e-01 : f32
    %290 = vector.broadcast %cst_128 : f32 to vector<8x128xf32>
    %291 = arith.mulf %290, %289 : vector<8x128xf32>
    %292 = vector.extract_strided_slice %271 {offsets = [0, 256], sizes = [8, 128], strides = [1, 1]} : vector<8x384xf32> to vector<8x128xf32>
    %293 = vector.extract_strided_slice %269 {offsets = [0, 256], sizes = [8, 128], strides = [1, 1]} : vector<8x384xf32> to vector<8x128xf32>
    %294 = arith.addf %293, %186 : vector<8x128xf32>
    %295 = arith.mulf %281, %294 : vector<8x128xf32>
    %296 = arith.addf %292, %295 : vector<8x128xf32>
    %297 = math.tanh %296 : vector<8x128xf32>
    %298 = arith.subf %262, %297 : vector<8x128xf32>
    %299 = arith.mulf %291, %298 : vector<8x128xf32>
    %300 = arith.addf %297, %299 : vector<8x128xf32>
    %301 = arith.index_cast %266 : i32 to index
    %c0_129 = arith.constant 0 : index
    %302 = vector.load %arg14[%301, %c0_129] : memref<32x128xf32, #tpu.memory_space<vmem>>, vector<8x128xf32>
    tpu.vector_store %arg14[%301, %c0_129], %300 {strides = array<i32>} : memref<32x128xf32, #tpu.memory_space<vmem>>, vector<8x128xf32>,
    %c3_i32_130 = arith.constant 3 : i32
    %c8_i32_131 = arith.constant 8 : i32
    %303 = arith.muli %c3_i32_130, %c8_i32_131 : i32
    %304 = tpu.assume_multiple %303, 8 : i32
    %c1_132 = arith.constant 1 : index
    %c0_133 = arith.constant 0 : index
    %c0_134 = arith.constant 0 : index
    %305 = vector.load %arg5[%c1_132, %c0_133, %c0_134] : memref<2x128x384xf32, #tpu.memory_space<vmem>>, vector<1x128x384xf32>
    %306 = vector.shape_cast %305 : vector<1x128x384xf32> to vector<128x384xf32>
    %cst_135 = arith.constant dense<0.000000e+00> : vector<8x384xf32>
    %307 = tpu.matmul %300, %306, %cst_135 {dimension_numbers = #tpu.dot_dimension_numbers<[1], [0], [0], [1], [0, 0, 1, 1], [], []>} : vector<8x128xf32>, vector<128x384xf32>, vector<8x384xf32> -> vector<8x384xf32>
    %308 = arith.index_cast %304 : i32 to index
    %c0_136 = arith.constant 0 : index
    %309 = vector.load %arg13[%308, %c0_136] : memref<32x384xf32, #tpu.memory_space<vmem>>, vector<8x384xf32>
    %310 = vector.extract_strided_slice %309 {offsets = [0, 0], sizes = [8, 128], strides = [1, 1]} : vector<8x384xf32> to vector<8x128xf32>
    %311 = vector.extract_strided_slice %307 {offsets = [0, 0], sizes = [8, 128], strides = [1, 1]} : vector<8x384xf32> to vector<8x128xf32>
    %312 = arith.addf %310, %311 : vector<8x128xf32>
    %cst_137 = arith.constant 5.000000e-01 : f32
    %313 = vector.broadcast %cst_137 : f32 to vector<8x128xf32>
    %314 = arith.mulf %313, %312 : vector<8x128xf32>
    %315 = math.tanh %314 : vector<8x128xf32>
    %cst_138 = arith.constant 1.000000e+00 : f32
    %316 = vector.broadcast %cst_138 : f32 to vector<8x128xf32>
    %317 = arith.addf %315, %316 : vector<8x128xf32>
    %cst_139 = arith.constant 5.000000e-01 : f32
    %318 = vector.broadcast %cst_139 : f32 to vector<8x128xf32>
    %319 = arith.mulf %318, %317 : vector<8x128xf32>
    %320 = vector.extract_strided_slice %309 {offsets = [0, 128], sizes = [8, 128], strides = [1, 1]} : vector<8x384xf32> to vector<8x128xf32>
    %321 = vector.extract_strided_slice %307 {offsets = [0, 128], sizes = [8, 128], strides = [1, 1]} : vector<8x384xf32> to vector<8x128xf32>
    %322 = arith.addf %320, %321 : vector<8x128xf32>
    %cst_140 = arith.constant 5.000000e-01 : f32
    %323 = vector.broadcast %cst_140 : f32 to vector<8x128xf32>
    %324 = arith.mulf %323, %322 : vector<8x128xf32>
    %325 = math.tanh %324 : vector<8x128xf32>
    %cst_141 = arith.constant 1.000000e+00 : f32
    %326 = vector.broadcast %cst_141 : f32 to vector<8x128xf32>
    %327 = arith.addf %325, %326 : vector<8x128xf32>
    %cst_142 = arith.constant 5.000000e-01 : f32
    %328 = vector.broadcast %cst_142 : f32 to vector<8x128xf32>
    %329 = arith.mulf %328, %327 : vector<8x128xf32>
    %330 = vector.extract_strided_slice %309 {offsets = [0, 256], sizes = [8, 128], strides = [1, 1]} : vector<8x384xf32> to vector<8x128xf32>
    %331 = vector.extract_strided_slice %307 {offsets = [0, 256], sizes = [8, 128], strides = [1, 1]} : vector<8x384xf32> to vector<8x128xf32>
    %332 = arith.addf %331, %186 : vector<8x128xf32>
    %333 = arith.mulf %319, %332 : vector<8x128xf32>
    %334 = arith.addf %330, %333 : vector<8x128xf32>
    %335 = math.tanh %334 : vector<8x128xf32>
    %336 = arith.subf %300, %335 : vector<8x128xf32>
    %337 = arith.mulf %329, %336 : vector<8x128xf32>
    %338 = arith.addf %335, %337 : vector<8x128xf32>
    %339 = arith.index_cast %304 : i32 to index
    %c0_143 = arith.constant 0 : index
    %340 = vector.load %arg14[%339, %c0_143] : memref<32x128xf32, #tpu.memory_space<vmem>>, vector<8x128xf32>
    tpu.vector_store %arg14[%339, %c0_143], %338 {strides = array<i32>} : memref<32x128xf32, #tpu.memory_space<vmem>>, vector<8x128xf32>,
    %c4_i32_144 = arith.constant 4 : i32
    %c1_145 = arith.constant 1 : index
    %c0_146 = arith.constant 0 : index
    %c0_147 = arith.constant 0 : index
    %341 = vector.load %arg12[%c1_145, %c0_146, %c0_147] : memref<2x8x128xf32, #tpu.memory_space<vmem>>, vector<1x8x128xf32>
    %342 = vector.shape_cast %341 : vector<1x8x128xf32> to vector<8x128xf32>
    %343 = vector.shape_cast %338 : vector<8x128xf32> to vector<1x8x128xf32>
    tpu.vector_store %arg12[%c1_145, %c0_146, %c0_147], %343 {strides = array<i32>} : memref<2x8x128xf32, #tpu.memory_space<vmem>>, vector<1x8x128xf32>,
    %c0_148 = arith.constant 0 : index
    %c0_149 = arith.constant 0 : index
    %344 = vector.load %arg14[%c0_148, %c0_149] : memref<32x128xf32, #tpu.memory_space<vmem>>, vector<32x128xf32>
    %c0_150 = arith.constant 0 : index
    %c0_151 = arith.constant 0 : index
    %345 = vector.load %arg8[%c0_150, %c0_151] : memref<128x128xf32, #tpu.memory_space<vmem>>, vector<128x128xf32>
    %cst_152 = arith.constant dense<0.000000e+00> : vector<32x128xf32>
    %346 = tpu.matmul %344, %345, %cst_152 {dimension_numbers = #tpu.dot_dimension_numbers<[1], [0], [0], [1], [0, 0, 1, 1], [], []>} : vector<32x128xf32>, vector<128x128xf32>, vector<32x128xf32> -> vector<32x128xf32>
    %c0_153 = arith.constant 0 : index
    %c0_154 = arith.constant 0 : index
    %347 = vector.load %arg9[%c0_153, %c0_154] : memref<1x128xf32, #tpu.memory_space<vmem>>, vector<1x128xf32>
    %348 = vector.broadcast %347 : vector<1x128xf32> to vector<32x128xf32>
    %349 = arith.addf %346, %348 : vector<32x128xf32>
    %cst_155 = arith.constant dense<0xFF800000> : vector<32xf32>
    %350 = vector.multi_reduction <maximumf>, %349, %cst_155 [1] : vector<32x128xf32> to vector<32xf32>
    %351 = vector.shape_cast %350 : vector<32xf32> to vector<32x1xf32>
    %352 = vector.broadcast %351 : vector<32x1xf32> to vector<32x128xf32>
    %353 = arith.subf %349, %352 : vector<32x128xf32>
    %354 = math.exp %353 : vector<32x128xf32>
    %cst_156 = arith.constant dense<0.000000e+00> : vector<32xf32>
    %355 = vector.multi_reduction <add>, %354, %cst_156 [1] : vector<32x128xf32> to vector<32xf32>
    %356 = vector.shape_cast %355 : vector<32xf32> to vector<32x1xf32>
    %357 = tpu.reciprocal %356 : vector<32x1xf32> -> vector<32x1xf32>
    %358 = vector.broadcast %357 : vector<32x1xf32> to vector<32x128xf32>
    %359 = arith.mulf %354, %358 : vector<32x128xf32>
    %360 = vector.shape_cast %359 : vector<32x128xf32> to vector<4x8x128xf32>
    %c0_157 = arith.constant 0 : index
    %c0_158 = arith.constant 0 : index
    %c0_159 = arith.constant 0 : index
    %361 = vector.load %arg10[%c0_157, %c0_158, %c0_159] : memref<4x8x128xf32, #tpu.memory_space<vmem>>, vector<4x8x128xf32>
    tpu.vector_store %arg10[%c0_157, %c0_158, %c0_159], %360 {strides = array<i32>} : memref<4x8x128xf32, #tpu.memory_space<vmem>>, vector<4x8x128xf32>,
    %c1_i32_160 = arith.constant 1 : i32
    %362 = arith.cmpi eq, %arg1, %c1_i32_160 : i32
    %363 = arith.extui %362 : i1 to i32
    %c0_i32_161 = arith.constant 0 : i32
    %364 = arith.cmpi ne, %363, %c0_i32_161 : i32
    scf.if %364 {
      %c0_162 = arith.constant 0 : index
      %c0_163 = arith.constant 0 : index
      %c0_164 = arith.constant 0 : index
      %365 = vector.load %arg12[%c0_162, %c0_163, %c0_164] : memref<2x8x128xf32, #tpu.memory_space<vmem>>, vector<2x8x128xf32>
      %c0_165 = arith.constant 0 : index
      %c0_166 = arith.constant 0 : index
      %c0_167 = arith.constant 0 : index
      %366 = vector.load %arg11[%c0_165, %c0_166, %c0_167] : memref<2x8x128xf32, #tpu.memory_space<vmem>>, vector<2x8x128xf32>
      tpu.vector_store %arg11[%c0_165, %c0_166, %c0_167], %365 {strides = array<i32>} : memref<2x8x128xf32, #tpu.memory_space<vmem>>, vector<2x8x128xf32>,
    } else {
    }
    return
  }
  func.func @transform_0(%arg0: i32, %arg1: i32) -> (i32, i32, i32) {
    %c0_i32 = arith.constant 0 : i32
    %c0_i32_0 = arith.constant 0 : i32
    return %arg1, %arg0, %c0_i32 : i32, i32, i32
  }
  func.func @transform_1(%arg0: i32, %arg1: i32) -> (i32, i32, i32) {
    %c0_i32 = arith.constant 0 : i32
    %c0_i32_0 = arith.constant 0 : i32
    %c0_i32_1 = arith.constant 0 : i32
    return %c0_i32, %arg0, %c0_i32_0 : i32, i32, i32
  }
  func.func @transform_2(%arg0: i32, %arg1: i32) -> (i32, i32, i32) {
    %c0_i32 = arith.constant 0 : i32
    %c0_i32_0 = arith.constant 0 : i32
    %c0_i32_1 = arith.constant 0 : i32
    %c0_i32_2 = arith.constant 0 : i32
    return %c0_i32, %c0_i32_0, %c0_i32_1 : i32, i32, i32
  }
  func.func @transform_3(%arg0: i32, %arg1: i32) -> (i32, i32, i32) {
    %c0_i32 = arith.constant 0 : i32
    %c0_i32_0 = arith.constant 0 : i32
    %c0_i32_1 = arith.constant 0 : i32
    %c0_i32_2 = arith.constant 0 : i32
    return %c0_i32, %c0_i32_0, %c0_i32_1 : i32, i32, i32
  }
  func.func @transform_4(%arg0: i32, %arg1: i32) -> (i32, i32, i32) {
    %c0_i32 = arith.constant 0 : i32
    %c0_i32_0 = arith.constant 0 : i32
    %c0_i32_1 = arith.constant 0 : i32
    %c0_i32_2 = arith.constant 0 : i32
    return %c0_i32, %c0_i32_0, %c0_i32_1 : i32, i32, i32
  }
  func.func @transform_5(%arg0: i32, %arg1: i32) -> (i32, i32, i32) {
    %c0_i32 = arith.constant 0 : i32
    %c0_i32_0 = arith.constant 0 : i32
    %c0_i32_1 = arith.constant 0 : i32
    %c0_i32_2 = arith.constant 0 : i32
    return %c0_i32, %c0_i32_0, %c0_i32_1 : i32, i32, i32
  }
  func.func @transform_6(%arg0: i32, %arg1: i32) -> (i32, i32) {
    %c0_i32 = arith.constant 0 : i32
    %c0_i32_0 = arith.constant 0 : i32
    %c0_i32_1 = arith.constant 0 : i32
    return %c0_i32, %c0_i32_0 : i32, i32
  }
  func.func @transform_7(%arg0: i32, %arg1: i32) -> (i32, i32) {
    %c0_i32 = arith.constant 0 : i32
    %c0_i32_0 = arith.constant 0 : i32
    %c0_i32_1 = arith.constant 0 : i32
    return %c0_i32, %c0_i32_0 : i32, i32
  }
  func.func @transform_8(%arg0: i32, %arg1: i32) -> (i32, i32, i32) {
    %c0_i32 = arith.constant 0 : i32
    %c0_i32_0 = arith.constant 0 : i32
    return %arg1, %arg0, %c0_i32 : i32, i32, i32
  }
  func.func @transform_9(%arg0: i32, %arg1: i32) -> (i32, i32, i32) {
    %c0_i32 = arith.constant 0 : i32
    %c0_i32_0 = arith.constant 0 : i32
    %c0_i32_1 = arith.constant 0 : i32
    return %c0_i32, %arg0, %c0_i32_0 : i32, i32, i32
  }
}

</mosaic_0001>

<bundles_post_ra>
// kernel: tpu_custom_call.1
= control target key start
LH: loop header
LB: loop body
LE: loop exit
PB: predicated region body
PF: predicated region fallthrough
CT: control target
= control target key end

     0   :  { %s5628_s0 = inlined_call_operand.hbm [shape: f32[8,8,128], index: 0, kind: input, shape index: {}]   ;;  %s5629_s1 = inlined_call_operand.hbm [shape: f32[2,8,128], index: 1, kind: input, shape index: {}]   ;;  %s5630_s2 = inlined_call_operand.hbm [shape: f32[2,128,384], index: 2, kind: input, shape index: {}]   ;;  %s5631_s3 = inlined_call_operand.hbm [shape: f32[2,128,384], index: 3, kind: input, shape index: {}]   ;;  %s5632_s4 = inlined_call_operand.vmem [shape: f32[2,1,384], index: 4, kind: input, shape index: {}]   ;;  %s5633_s5 = inlined_call_operand.vmem [shape: f32[2,1,128], index: 5, kind: input, shape index: {}]   ;;  %s5634_s6 = inlined_call_operand.hbm [shape: f32[128,128], index: 6, kind: input, shape index: {}]   ;;  %s5635_s7 = inlined_call_operand.vmem [shape: f32[1,128], index: 7, kind: input, shape index: {}]   ;;  %s5636_s8 = inlined_call_operand.hbm [shape: f32[8,8,128], index: 8, kind: output, shape index: {0}]   ;;  %s5637_s9 = inlined_call_operand.hbm [shape: f32[2,8,128], index: 9, kind: output, shape index: {1}]  }
   0x1   :  { %5651 = sst [smem:[#allocation24_spill]] %s5632_s4 }
   0x2   :  { %5652 = sst [smem:[#allocation25_spill]] %s5633_s5 }
   0x3   :  { %5653 = sst [smem:[#allocation26_spill]] %s5635_s7 }
   0x4   :  { %5654 = sst [smem:[#allocation27_spill]] %s5636_s8 }
   0x5   :  { %5655 = sst [smem:[#allocation28_spill]] %s5637_s9 }
   0x6   :  { %15 = vsyncpa [#allocation6], 0 }
   0x7   :  { %17 = vsyncpa [#allocation6 + $0x1], 0 }
   0x8   :  { %18 = vsyncpa [#allocation9], 0 }
   0x9   :  { %19 = vsyncpa [#allocation12], 0 }
   0xa   :  { %20 = vsyncpa [#allocation7], 0 }
   0xb   :  { %22 = vsyncpa [#allocation7 + $0x1], 0 }
   0xc   :  { %23 = vsyncpa [#allocation16], 0  ;;  %s4783_s30 = smov 0   ;;  %s4785_s10 = smov 0  }
   0xd   :  { %s4787_s11 = smov 0   ;;  %s4789_s12 = smov 0  }
   0xe   :  { %s4791_s13 = smov 0   ;;  %s4793_s14 = smov 0  }
   0xf LB: > { %5656 = sst [smem:[#allocation22_spill]] %s4695_s30  ;;  %s3006_s15 = sadd.s32 4294967295, %s4715_s14   ;;  %s4715_s14 = sphi %s4793_s14, %s29_s14   ;;  %s4711_s13 = sphi %s4791_s13, %s5687_s13   ;;  %s4707_s12 = sphi %s4789_s12, %s5686_s12   ;;  %s4703_s11 = sphi %s4787_s11, %s5685_s11   ;;  %s4699_s10 = sphi %s4785_s10, %s5684_s10   ;;  %s4695_s30 = sphi %s4783_s30, %s5683_s30  }
  0x10   : > { %s3007_s16 = sadd.s32 4294967294, %s4715_s14   ;;  %p63_p0 = scmp.ne.s32.totalorder %s4699_s10, %s4695_s30 }
  0x11   : > { %p4817_p1 = scmp.eq.s32.totalorder %s3006_s15, 0  ;;  %p4821_p2 = scmp.eq.s32.totalorder %s3006_s15, 1 }
  0x12   : > { %p247_p3 = scmp.eq.s32.totalorder %s3007_s16, 1  ;;  %p3008_p5 = scmp.ge.s32.totalorder %s4715_s14, 1 }
  0x13   : > { %s5657_s17 = scalar_select %p4817_p1, 1, 0 }
  0x14   : > { %s5658_s18 = scalar_select %p4821_p2, 1, 0 }
  0x15   : > { %p4827_p4 = por %p4817_p1, %p63_p0  ;;  %p4832_p6 = por %p247_p3, %p63_p0 }
  0x16   : > { %p280_p7 = scmp.lt.s32.totalorder %s4715_s14, 3  ;;  %s4717_s22 = smov [#allocation8]  }
  0x17   : > { %s5659_s19 = scalar_select %p4827_p4, 1, 0 }
  0x18   : > { %s5660_s20 = scalar_select %p4832_p6, 1, 0 }
  0x19   : > { %p4837_p8 = pnand %p3008_p5, %p280_p7  ;;  %s294_s23 = sshll.u32 %s4717_s22, 4  ;;  %s295_s23 = int_to_ptr.vmem [resolvable:$true] %s294_s23 }
  0x1a   : > { %5661 = sst [smem:[#allocation23_spill]] %s5660_s20  ;;  %s4718_s25 = smov [#allocation11]  }
  0x1b   : > { %s5662_s21 = scalar_select %p4837_p8, 1, 0 }
  0x1c   : > { %p4294_p9 = pneg %p4837_p8  ;;  %s320_s26 = sshll.u32 %s4718_s25, 4  ;;  %s321_s26 = int_to_ptr.vmem [resolvable:$true] %s320_s26 }
  0x1d   : > { %s4453_s29 = scalar_lea.hbm %s5629_s1, 256 }
  0x1e   : > { %p4846_p11 = pnand %p4294_p9, %p4817_p1  ;;  %p4454_p12 = scmp.ne.s32.totalorder %s5629_s1, %s4453_s29 }
  0x1f   : > { %p4460_p5 = scmp.lt.u32.totalorder %s4453_s29, %s5629_s1 }
  0x20   : > { %p4858_p13 = pneg %p4846_p11 }
  0x22   : > { %p4456_p0 = pnand %p4858_p13, %p4454_p12 }
  0x24   : > { %p4457_p3 = pneg %p4456_p0 }
  0x26   : > { %p4462_p7 = pnand %p4460_p5, %p4457_p3 }
  0x28   : > { %4465 = shalt.err (!%p4462_p7)
}
  0x29   : > { %s4466_s25 = scalar_lea.vmem %s295_s23, 256  ;;  %p4474_p1 = scmp.lt.s32.totalorder %s295_s23, %s295_s23 }
  0x2a   : > { %p4467_p9 = scmp.ne.s32.totalorder %s295_s23, %s4466_s25  ;;  %p4475_p4 = scmp.lt.s32.totalorder %s4466_s25, %s4466_s25 }
  0x2c   : > { %p4469_p10 = pnand %p4467_p9, %p4858_p13  ;;  %p4476_p8 = por %p4475_p4, %p4474_p1 }
  0x2e   : > { %p4470_p6 = pneg %p4469_p10 }
  0x30   : > { %p4477_p2 = pnand %p4476_p8, %p4470_p6 }
  0x32   : > { %4480 = shalt.err (!%p4477_p2)
}
  0x33   : > { %s5649_s27 = smov 128   ;;  %s4720_s28 = smov 8  }
  0x34   : > { %4297 = dma.hbm_to_vmem [thread:$0]  (!%p4846_p11), %s5629_s1, 256, %s295_s23, [#allocation9], %s5649_s27, %s5649_s27, %s4720_s28  }
  0x35   : > { %s4721_s29 = smov [#allocation10]   ;;  %s4481_s9 = scalar_lea.hbm %s5631_s3, 12288 }
  0x36   : > { %s307_s15 = sshll.u32 %s4721_s29, 4  ;;  %p4482_p1 = scmp.ne.s32.totalorder %s5631_s3, %s4481_s9  ;;  %s308_s15 = int_to_ptr.vmem [resolvable:$true] %s307_s15 }
  0x37   : > { %p4488_p6 = scmp.lt.u32.totalorder %s4481_s9, %s5631_s3 }
  0x38   : > { %p4484_p2 = pnand %p4482_p1, %p4858_p13 }
  0x3a   : > { %p4485_p4 = pneg %p4484_p2 }
  0x3c   : > { %p4490_p8 = pnand %p4488_p6, %p4485_p4 }
  0x3e   : > { %4493 = shalt.err (!%p4490_p8)
}
  0x3f   : > { %s4494_s23 = scalar_lea.vmem %s321_s26, 12288  ;;  %p4502_p3 = scmp.lt.s32.totalorder %s321_s26, %s321_s26 }
  0x40   : > { %p4495_p10 = scmp.ne.s32.totalorder %s321_s26, %s4494_s23  ;;  %p4503_p5 = scmp.lt.s32.totalorder %s4494_s23, %s4494_s23 }
  0x42   : > { %p4497_p12 = pnand %p4495_p10, %p4858_p13  ;;  %p4504_p7 = por %p4503_p5, %p4502_p3 }
  0x44   : > { %p4498_p0 = pneg %p4497_p12 }
  0x46   : > { %p4505_p9 = pnand %p4504_p7, %p4498_p0 }
  0x48   : > { %4508 = shalt.err (!%p4505_p9)
}
  0x49   : > { %s4722_s7 = smov 384   ;;  %s4723_s8 = smov 24  }
  0x4a   : > { %4303 = dma.hbm_to_vmem [thread:$0]  (!%p4846_p11), %s5631_s3, 12288, %s321_s26, [#allocation12], %s4722_s7, %s4722_s7, %s4723_s8  }
  0x4b   : > { %s4509_s20 = scalar_lea.hbm %s5630_s2, 12288 }
  0x4c   : > { %p4510_p1 = scmp.ne.s32.totalorder %s5630_s2, %s4509_s20  ;;  %p4516_p6 = scmp.lt.u32.totalorder %s4509_s20, %s5630_s2 }
  0x4e   : > { %p4512_p2 = pnand %p4510_p1, %p4858_p13 }
  0x50   : > { %p4513_p4 = pneg %p4512_p2 }
  0x52   : > { %p4518_p8 = pnand %p4516_p6, %p4513_p4 }
  0x54   : > { %4521 = shalt.err (!%p4518_p8)
}
  0x55   : > { %s4522_s4 = scalar_lea.vmem %s308_s15, 12288  ;;  %p4530_p3 = scmp.lt.s32.totalorder %s308_s15, %s308_s15 }
  0x56   : > { %p4523_p10 = scmp.ne.s32.totalorder %s308_s15, %s4522_s4  ;;  %p4531_p5 = scmp.lt.s32.totalorder %s4522_s4, %s4522_s4 }
  0x58   : > { %p4525_p12 = pnand %p4523_p10, %p4858_p13  ;;  %p4532_p7 = por %p4531_p5, %p4530_p3 }
  0x5a   : > { %p4526_p0 = pneg %p4525_p12 }
  0x5c   : > { %p4533_p9 = pnand %p4532_p7, %p4526_p0 }
  0x5e   : > { %4536 = shalt.err (!%p4533_p9)
}
  0x5f   : > { %4300 = dma.hbm_to_vmem [thread:$0]  (!%p4846_p11), %s5630_s2, 12288, %s308_s15, [#allocation9], %s4722_s7, %s4722_s7, %s4723_s8  }
  0x60   : > { %s4724_s9 = smov [#allocation13]   ;;  %s4537_s16 = scalar_lea.hbm %s5634_s6, 2048 }
  0x61   : > { %s339_s30 = sshll.u32 %s4724_s9, 4  ;;  %p4538_p1 = scmp.ne.s32.totalorder %s5634_s6, %s4537_s16  ;;  %s340_s30 = int_to_ptr.vmem [resolvable:$true] %s339_s30 }
  0x62   : > { %p4544_p6 = scmp.lt.u32.totalorder %s4537_s16, %s5634_s6 }
  0x63   : > { %p4540_p2 = pnand %p4538_p1, %p4858_p13 }
  0x65   : > { %p4541_p4 = pneg %p4540_p2 }
  0x67   : > { %p4546_p8 = pnand %p4544_p6, %p4541_p4 }
  0x69   : > { %4549 = shalt.err (!%p4546_p8)
}
  0x6a   : > { %s4550_s15 = scalar_lea.vmem %s340_s30, 2048  ;;  %p4558_p3 = scmp.lt.s32.totalorder %s340_s30, %s340_s30 }
  0x6b   : > { %p4551_p10 = scmp.ne.s32.totalorder %s340_s30, %s4550_s15  ;;  %p4559_p5 = scmp.lt.s32.totalorder %s4550_s15, %s4550_s15 }
  0x6d   : > { %p4553_p12 = pnand %p4551_p10, %p4858_p13  ;;  %p4560_p7 = por %p4559_p5, %p4558_p3 }
  0x6f   : > { %p4554_p0 = pneg %p4553_p12 }
  0x71   : > { %p4561_p9 = pnand %p4560_p7, %p4554_p0 }
  0x73   : > { %4564 = shalt.err (!%p4561_p9)
}
  0x74   : > { %s5665_s7 = smov 128   ;;  %s38_s22 = sadd.s32 1, %s4711_s13 }
  0x75   : > { %4306 = dma.hbm_to_vmem [thread:$0]  (!%p4846_p11), %s5634_s6, 2048, %s340_s30, [#allocation12], %s5665_s7, %s5665_s7, %s4720_s28  }
  0x76   : > { %s50_s24 = sadd.s32 1, %s4703_s11  ;;  %p39_p13 = scmp.ge.s32.totalorder %s38_s22, 2 }
  0x77   : > { %p57_p1 = scmp.ne.s32.totalorder %s4703_s11, %s4699_s10  ;;  %p58_p2 = scmp.eq.s32.totalorder %s4715_s14, 0 }
  0x78   : > { %p4319_p4 = scmp.lt.s32.totalorder %s4715_s14, 2  ;;  %s5689_s22 = smov (%p39_p13, %s38_s22), 0 }
  0x79   : > { %p59_p6 = por %p58_p2, %p57_p1  ;;  %p5666_p8 = scmp.ne.s32.totalorder %s5658_s18, 0 }
  0x7a   : > { %s45_s5 = ssub.s32 %s4711_s13, %s5689_s22  ;;  %s356_s9 = sand.u32 1, %s4703_s11  }
  0x7b   : > { %p4944_p10 = por %p5666_p8, %p57_p1  ;;  %p48_p12 = scmp.eq.s32.totalorder %s45_s5, 0 }
  0x7c   : > { %s3014_s30 = sshll.u32 %s356_s9, 5  ;;  %s3038_s20 = sshll.u32 %s4711_s13, 9 }
  0x7d   : > { %s4953_s29 = scalar_select %p48_p12, %s4703_s11, %s50_s24  }
  0x7e   : > { %s4958_s23 = scalar_lea.hbm %s5628_s0, %s3038_s20  ;;  %s360_s4 = scalar_lea.vmem [#allocation5], %s3014_s30 }
  0x7f   : > { %s368_s15 = sshll.u32 %s360_s4, 4  ;;  %p4962_p11 = pnand %p4319_p4, %p59_p6  ;;  %s4966_s15 = int_to_ptr.vmem [resolvable:$true] %s368_s15 }
  0x80   : > { %s4968_s8 = scalar_lea.sflag [#allocation6], %s356_s9  ;;  %s4565_s24 = scalar_lea.hbm %s4958_s23, 512 }
  0x81   : > { %p4566_p0 = scmp.ne.s32.totalorder %s4958_s23, %s4565_s24  ;;  %p4567_p3 = pneg %p4962_p11 }
  0x82   : > { %s4570_s20 = scalar_lea.hbm %s5628_s0, 1024  ;;  %p4571_p9 = scmp.lt.u32.totalorder %s4958_s23, %s5628_s0 }
  0x83   : > { %p4568_p5 = pnand %p4567_p3, %p4566_p0  ;;  %p4572_p13 = scmp.lt.u32.totalorder %s4570_s20, %s4565_s24 }
  0x84   : > { %p4574_p2 = scmp.lt.u32.totalorder %s4565_s24, %s4958_s23 }
  0x85   : > { %p4569_p7 = pneg %p4568_p5  ;;  %p4573_p1 = por %p4572_p13, %p4571_p9 }
  0x87   : > { %p4575_p4 = por %p4574_p2, %p4573_p1 }
  0x89   : > { %p4576_p6 = pnand %p4575_p4, %p4569_p7 }
  0x8b   : > { %4579 = shalt.err (!%p4576_p6)
}
  0x8c   : > { %s4580_s9 = scalar_lea.vmem %s4966_s15, 512  ;;  %s4725_s4 = smov [#allocation5]  }
  0x8d   : > { %p4581_p8 = scmp.ne.s32.totalorder %s4966_s15, %s4580_s9  ;;  %s4585_s5 = sshll.u32 %s4725_s4, 4  ;;  %s4586_s5 = int_to_ptr.vmem [resolvable:$false] %s4585_s5 }
  0x8e   : > { %s4587_s30 = scalar_lea.vmem %s4586_s5, 1024  ;;  %p4588_p5 = scmp.lt.s32.totalorder %s4966_s15, %s4586_s5 }
  0x8f   : > { %p4583_p12 = pnand %p4581_p8, %p4567_p3  ;;  %p4589_p9 = scmp.lt.s32.totalorder %s4587_s30, %s4580_s9 }
  0x91   : > { %p4584_p0 = pneg %p4583_p12  ;;  %p4590_p13 = por %p4589_p9, %p4588_p5 }
  0x93   : > { %p4591_p1 = pnand %p4590_p13, %p4584_p0 }
  0x95   : > { %4594 = shalt.err (!%p4591_p1)
}
  0x96   : > { %4310 = dma.hbm_to_vmem [thread:$0]  (!%p4962_p11), %s4958_s23, 512, %s4966_s15, %s4968_s8, %s5665_s7, %s5665_s7, %s4720_s28  }
  0x97   : > { %p5669_p3 = scmp.ne.s32.totalorder %s5662_s21, 0 }
  0x98   : > { %s5002_s24 = sand.u32 (!%p5669_p3), 1, %s4699_s10   ;;  %p5670_p7 = scmp.ne.s32.totalorder (!%p5669_p3), %s5659_s19, 0 }
  0x99   : > { %380 = sbr.rel (%p5669_p3) target bundleno = 2865 (0xb31), region = 52  ;;  %s3018_s20 = sshll.u32 (!%p5669_p3), %s5002_s24, 5 }
  0x9a   : > { %s383_s16 = scalar_lea.sflag (!%p5669_p3), [#allocation6], %s5002_s24  ;;  %s5006_s25 = scalar_lea.vmem (!%p5669_p3), [#allocation5], %s3018_s20 }
  0xa0   : > { %4674 = dma.done.wait (%p5670_p7), %s383_s16, 512  }
  0xa1   : > { %4676 = vsyncadd (%p5670_p7), %s383_s16, 4294966784  ;;  %p5671_p11 = scmp.ne.s32.totalorder %s5657_s17, 0 }
  0xa3   : > { %4678 = dma.done.wait (%p5671_p11), [#allocation9], 12544  }
  0xa4   : > { %4680 = vsyncadd (%p5671_p11), [#allocation9], 4294954752 }
  0xa5   : > { %4682 = dma.done.wait (%p5671_p11), [#allocation12], 14336  }
  0xa6   : > { %4684 = vsyncadd (%p5671_p11), [#allocation12], 4294952960  ;;  %s5020_s21 = scalar_lea.vmem [#allocation14], %s3018_s20  ;;  %p3024_p2 = scmp.ne.s32.totalorder %s4707_s12, 0 }
  0xa7   : > { %v443_v0 = vld [vmem:[#allocation8] sm:$0xff] (!%p3024_p2)  ;;  %v444_v1 = vld [vmem:[#allocation8 + $0x8] sm:$0xff] (!%p3024_p2) }
  0xa8   : > { %442 = sbr.rel (%p3024_p2) target bundleno = 175 (0xaf), region = 76  ;;  %445 = vst [vmem:[#allocation2] sm:$0xff] (!%p3024_p2), %v443_v0  ;;  %446 = vst [vmem:[#allocation2 + $0x8] sm:$0xff] (!%p3024_p2), %v444_v1 }
  0xaf PF: > { %v452_v2 = vld [vmem:[#allocation10 + $0x8] sm:$0xff]  ;;  %v455_v3 = vld [vmem:[#allocation10 + $0x20] sm:$0xff]  ;;  %v454_v6 = vld [vmem:[#allocation10 + $0x18] sm:$0xff]  ;;  %v4726_v9 = vmov 0.0   ;;  %vm4728_vm0 = vmmov 0   ;;  %s5672_s28 = sld [smem:[#allocation24_spill]] }
  0xb0   : > { %v451_v4 = vld [vmem:[#allocation10] sm:$0xff]  ;;  %v3630_v5 = vpack.c.bf16 %v455_v3, %v452_v2  ;;  %v711_v7 = vld [vmem:[#allocation11 + $0x8] sm:$0xff]  ;;  %580 = vmatprep.mubr.f32.mxu1 %v4726_v9  ;;  %822 = vmatprep.mubr.f32.mxu0 %v4726_v9  ;;  %v713_v13 = vld [vmem:[#allocation11 + $0x18] sm:$0xff]  ;;  %s5673_s15 = sld [smem:[#allocation25_spill]]  ;;  %s5674_s20 = sld [smem:[#allocation26_spill]] }
  0xb1   : > { %v714_v8 = vld [vmem:[#allocation11 + $0x20] sm:$0xff]  ;;  %v3632_v10 = vpack.c.bf16 %v454_v6, %v451_v4  ;;  %v458_v14 = vld [vmem:[#allocation10 + $0x38] sm:$0xff]  ;;  %v461_v16 = vld [vmem:[#allocation10 + $0x50] sm:$0xff]  ;;  %p3030_p4 = scmp.ne.s32.totalorder %s4707_s12, 1 }
  0xb2   : > { %v5025_v11 = vpack.c.bf16 %v714_v8, %v711_v7  ;;  %v710_v12 = vld [vmem:[#allocation11] sm:$0xff]  ;;  %3631 = vmatprep.subr.bf16.mxu1 %v3630_v5  ;;  %v457_v17 = vld [vmem:[#allocation10 + $0x30] sm:$0xff]  ;;  %v460_v18 = vld [vmem:[#allocation10 + $0x48] sm:$0xff]  ;;  %v3634_v19 = vpack.c.bf16 %v461_v16, %v458_v14 }
  0xb3   : > { %v5027_v15 = vpack.c.bf16 %v713_v13, %v710_v12  ;;  %3633 = vmatpush1.bf16.msra.mxu1 %v3632_v10  ;;  %v3636_v20 = vpack.c.bf16 %v460_v18, %v457_v17  ;;  %v717_v21 = vld [vmem:[#allocation11 + $0x38] sm:$0xff]  ;;  %v720_v22 = vld [vmem:[#allocation11 + $0x50] sm:$0xff]  ;;  %v719_v25 = vld [vmem:[#allocation11 + $0x48] sm:$0xff] }
  0xb4   : > { %3695 = vmatprep.subr.bf16.mxu0 %v5025_v11  ;;  %v716_v23 = vld [vmem:[#allocation11 + $0x30] sm:$0xff]  ;;  %v5031_v24 = vpack.c.bf16 %v720_v22, %v717_v21  ;;  %v464_v26 = vld [vmem:[#allocation10 + $0x68] sm:$0xff]  ;;  %v467_v27 = vld [vmem:[#allocation10 + $0x80] sm:$0xff]  ;;  %3635 = vmatprep.subr.bf16.mxu1 %v3634_v19 }
  0xb5   : > { %3697 = vmatpush1.bf16.msra.mxu0 %v5027_v15  ;;  %v5033_v28 = vpack.c.bf16 %v719_v25, %v716_v23  ;;  %v3638_v29 = vpack.c.bf16 %v467_v27, %v464_v26  ;;  %v463_v30 = vld [vmem:[#allocation10 + $0x60] sm:$0xff]  ;;  %v466_v31 = vld [vmem:[#allocation10 + $0x78] sm:$0xff]  ;;  %v723_v32 = vld [vmem:[#allocation11 + $0x68] sm:$0xff] }
  0xb6   : > { %3699 = vmatprep.subr.bf16.mxu0 %v5031_v24  ;;  %v726_v33 = vld [vmem:[#allocation11 + $0x80] sm:$0xff]  ;;  %v725_v35 = vld [vmem:[#allocation11 + $0x78] sm:$0xff]  ;;  %v3640_v36 = vpack.c.bf16 %v466_v31, %v463_v30  ;;  %v473_v39 = vld [vmem:[#allocation10 + $0xb0] sm:$0xff] }
  0xb7   : > { %v722_v34 = vld [vmem:[#allocation11 + $0x60] sm:$0xff]  ;;  %3637 = vmatpush1.bf16.msra.mxu1 %v3636_v20  ;;  %v5036_v37 = vpack.c.bf16 %v726_v33, %v723_v32  ;;  %v470_v38 = vld [vmem:[#allocation10 + $0x98] sm:$0xff]  ;;  %v469_v40 = vld [vmem:[#allocation10 + $0x90] sm:$0xff] }
  0xb8   : > { %3639 = vmatprep.subr.bf16.mxu1 %v3638_v29  ;;  %v5039_v41 = vpack.c.bf16 %v725_v35, %v722_v34  ;;  %v3642_v42 = vpack.c.bf16 %v473_v39, %v470_v38  ;;  %v472_v43 = vld [vmem:[#allocation10 + $0xa8] sm:$0xff]  ;;  %v729_v44 = vld [vmem:[#allocation11 + $0x98] sm:$0xff]  ;;  %v732_v45 = vld [vmem:[#allocation11 + $0xb0] sm:$0xff] }
  0xb9   : > { %3701 = vmatpush1.bf16.msra.mxu0 %v5033_v28  ;;  %v5042_v46 = vpack.c.bf16 %v732_v45, %v729_v44  ;;  %v728_v47 = vld [vmem:[#allocation11 + $0x90] sm:$0xff]  ;;  %v731_v48 = vld [vmem:[#allocation11 + $0xa8] sm:$0xff]  ;;  %v479_v50 = vld [vmem:[#allocation10 + $0xe0] sm:$0xff]  ;;  %v3644_v51 = vpack.c.bf16 %v472_v43, %v469_v40 }
  0xba   : > { %3703 = vmatprep.subr.bf16.mxu0 %v5036_v37  ;;  %v476_v49 = vld [vmem:[#allocation10 + $0xc8] sm:$0xff]  ;;  %v738_v53 = vld [vmem:[#allocation11 + $0xe0] sm:$0xff]  ;;  %v5045_v54 = vpack.c.bf16 %v731_v48, %v728_v47  ;;  %v478_v57 = vld [vmem:[#allocation10 + $0xd8] sm:$0xff] }
  0xbb   : > { %3641 = vmatpush1.bf16.msra.mxu1 %v3640_v36  ;;  %v735_v52 = vld [vmem:[#allocation11 + $0xc8] sm:$0xff]  ;;  %v3646_v55 = vpack.c.bf16 %v479_v50, %v476_v49  ;;  %v475_v56 = vld [vmem:[#allocation10 + $0xc0] sm:$0xff]  ;;  %v737_v60 = vld [vmem:[#allocation11 + $0xd8] sm:$0xff] }
  0xbc   : > { %3643 = vmatprep.subr.bf16.mxu1 %v3642_v42  ;;  %v734_v58 = vld [vmem:[#allocation11 + $0xc0] sm:$0xff]  ;;  %v5048_v59 = vpack.c.bf16 %v738_v53, %v735_v52  ;;  %v482_v61 = vld [vmem:[#allocation10 + $0xf8] sm:$0xff]  ;;  %v485_v62 = vld [vmem:[#allocation10 + $0x110] sm:$0xff]  ;;  %v3648_v1 = vpack.c.bf16 %v478_v57, %v475_v56 }
  0xbd   : > { %3705 = vmatpush1.bf16.msra.mxu0 %v5039_v41  ;;  %v741_v63 = vld [vmem:[#allocation11 + $0xf8] sm:$0xff]  ;;  %v744_v0 = vld [vmem:[#allocation11 + $0x110] sm:$0xff]  ;;  %v5051_v2 = vpack.c.bf16 %v737_v60, %v734_v58  ;;  %v3650_v3 = vpack.c.bf16 %v485_v62, %v482_v61  ;;  %v484_v5 = vld [vmem:[#allocation10 + $0x108] sm:$0xff] }
  0xbe   : > { %3707 = vmatprep.subr.bf16.mxu0 %v5042_v46  ;;  %v481_v4 = vld [vmem:[#allocation10 + $0xf0] sm:$0xff]  ;;  %v5054_v7 = vpack.c.bf16 %v744_v0, %v741_v63  ;;  %v743_v8 = vld [vmem:[#allocation11 + $0x108] sm:$0xff]  ;;  %v491_v12 = vld [vmem:[#allocation10 + $0x140] sm:$0xff] }
  0xbf   : > { %3645 = vmatpush1.bf16.msra.mxu1 %v3644_v51  ;;  %v740_v6 = vld [vmem:[#allocation11 + $0xf0] sm:$0xff]  ;;  %v488_v10 = vld [vmem:[#allocation10 + $0x128] sm:$0xff]  ;;  %v750_v14 = vld [vmem:[#allocation11 + $0x140] sm:$0xff]  ;;  %v3652_v16 = vpack.c.bf16 %v484_v5, %v481_v4 }
  0xc0   : > { %3647 = vmatprep.subr.bf16.mxu1 %v3646_v55  ;;  %v747_v13 = vld [vmem:[#allocation11 + $0x128] sm:$0xff]  ;;  %v5057_v17 = vpack.c.bf16 %v743_v8, %v740_v6  ;;  %v3654_v18 = vpack.c.bf16 %v491_v12, %v488_v10  ;;  %v487_v19 = vld [vmem:[#allocation10 + $0x120] sm:$0xff]  ;;  %v490_v20 = vld [vmem:[#allocation10 + $0x138] sm:$0xff] }
  0xc1   : > { %3709 = vmatpush1.bf16.msra.mxu0 %v5045_v54  ;;  %v746_v21 = vld [vmem:[#allocation11 + $0x120] sm:$0xff]  ;;  %v5060_v22 = vpack.c.bf16 %v750_v14, %v747_v13  ;;  %v749_v23 = vld [vmem:[#allocation11 + $0x138] sm:$0xff]  ;;  %v497_v26 = vld [vmem:[#allocation10 + $0x170] sm:$0xff]  ;;  %v3656_v30 = vpack.c.bf16 %v490_v20, %v487_v19  ;;  %v4727_v19 = vmov 0.0|0.0  }
  0xc2   : > { %3711 = vmatprep.subr.bf16.mxu0 %v5048_v59  ;;  %v494_v25 = vld [vmem:[#allocation10 + $0x158] sm:$0xff]  ;;  %v756_v29 = vld [vmem:[#allocation11 + $0x170] sm:$0xff]  ;;  %v5063_v31 = vpack.c.bf16 %v749_v23, %v746_v21  ;;  %v496_v34 = vld [vmem:[#allocation10 + $0x168] sm:$0xff] }
  0xc3   : > { %3649 = vmatpush1.bf16.msra.mxu1 %v3648_v1  ;;  %v753_v27 = vld [vmem:[#allocation11 + $0x158] sm:$0xff]  ;;  %v3658_v32 = vpack.c.bf16 %v497_v26, %v494_v25  ;;  %v493_v33 = vld [vmem:[#allocation10 + $0x150] sm:$0xff]  ;;  %v755_v38 = vld [vmem:[#allocation11 + $0x168] sm:$0xff] }
  0xc4   : > { %3651 = vmatprep.subr.bf16.mxu1 %v3650_v3  ;;  %v752_v35 = vld [vmem:[#allocation11 + $0x150] sm:$0xff]  ;;  %v5066_v36 = vpack.c.bf16 %v756_v29, %v753_v27  ;;  %v456_v40 = vld [vmem:[#allocation10 + $0x28] sm:$0xff]  ;;  %v3660_v42 = vpack.c.bf16 %v496_v34, %v493_v33  ;;  %v459_v45 = vld [vmem:[#allocation10 + $0x40] sm:$0xff] }
  0xc5   : > { %3713 = vmatpush1.bf16.msra.mxu0 %v5051_v2  ;;  %v453_v39 = vld [vmem:[#allocation10 + $0x10] sm:$0xff]  ;;  %v5069_v43 = vpack.c.bf16 %v755_v38, %v752_v35  ;;  %v462_v47 = vld [vmem:[#allocation10 + $0x58] sm:$0xff]  ;;  %v5074_v49 = vld [vmem:[#allocation2] sm:$0xff] }
  0xc6   : > { %3715 = vmatprep.subr.bf16.mxu0 %v5054_v7  ;;  %v3662_v44 = vpack.c.bf16 %v456_v40, %v453_v39  ;;  %v447_v48 = vld [vmem:[%s5006_s25] sm:$0xff]  ;;  %v3666_v50 = vpack.c.bf16 %v462_v47, %v459_v45  ;;  %v468_v52 = vld [vmem:[#allocation10 + $0x88] sm:$0xff]  ;;  %v448_v53 = vld [vmem:[%s5006_s25 + $0x8] sm:$0xff] }
  0xc7   : > { %3653 = vmatpush1.bf16.msra.mxu1 %v3652_v16  ;;  %v465_v51 = vld [vmem:[#allocation10 + $0x70] sm:$0xff]  ;;  %v471_v56 = vld [vmem:[#allocation10 + $0xa0] sm:$0xff]  ;;  %v474_v57 = vld [vmem:[#allocation10 + $0xb8] sm:$0xff] }
  0xc8   : > { %3655 = vmatprep.subr.bf16.mxu1 %v3654_v18  ;;  %v3670_v55 = vpack.c.bf16 %v468_v52, %v465_v51  ;;  %v449_v58 = vld [vmem:[%s5006_s25 + $0x10] sm:$0xff]  ;;  %v3674_v60 = vpack.c.bf16 %v474_v57, %v471_v56  ;;  %v477_v61 = vld [vmem:[#allocation10 + $0xd0] sm:$0xff]  ;;  %v480_v62 = vld [vmem:[#allocation10 + $0xe8] sm:$0xff] }
  0xc9   : > { %3717 = vmatpush1.bf16.msra.mxu0 %v5057_v17  ;;  %v450_v63 = vld [vmem:[%s5006_s25 + $0x18] sm:$0xff]  ;;  %v3678_v0 = vpack.c.bf16 %v480_v62, %v477_v61  ;;  %v483_v1 = vld [vmem:[#allocation10 + $0x100] sm:$0xff]  ;;  %v486_v3 = vld [vmem:[#allocation10 + $0x118] sm:$0xff] }
  0xca   : > { %3719 = vmatprep.subr.bf16.mxu0 %v5060_v22  ;;  %v3682_v4 = vpack.c.bf16 %v486_v3, %v483_v1  ;;  %v489_v5 = vld [vmem:[#allocation10 + $0x130] sm:$0xff]  ;;  %v492_v6 = vld [vmem:[#allocation10 + $0x148] sm:$0xff]  ;;  %v495_v10 = vld [vmem:[#allocation10 + $0x160] sm:$0xff] }
  0xcb   : > { %3657 = vmatpush1.bf16.msra.mxu1 %v3656_v30  ;;  %v3686_v8 = vpack.c.bf16 %v492_v6, %v489_v5  ;;  %v498_v12 = vld [vmem:[#allocation10 + $0x178] sm:$0xff]  ;;  %v712_v14 = vld [vmem:[#allocation11 + $0x10] sm:$0xff]  ;;  %v715_v16 = vld [vmem:[#allocation11 + $0x28] sm:$0xff] }
  0xcc   : > { %3659 = vmatprep.subr.bf16.mxu1 %v3658_v32  ;;  %v3690_v13 = vpack.c.bf16 %v498_v12, %v495_v10  ;;  %v5099_v18 = vpack.c.bf16 %v715_v16, %v712_v14  ;;  %v718_v20 = vld [vmem:[#allocation11 + $0x40] sm:$0xff]  ;;  %v721_v21 = vld [vmem:[#allocation11 + $0x58] sm:$0xff]  ;;  %v724_v25 = vld [vmem:[#allocation11 + $0x70] sm:$0xff] }
  0xcd   : > { %3721 = vmatpush1.bf16.msra.mxu0 %v5063_v31  ;;  %v5105_v23 = vpack.c.bf16 %v721_v21, %v718_v20  ;;  %v727_v26 = vld [vmem:[#allocation11 + $0x88] sm:$0xff]  ;;  %v733_v29 = vld [vmem:[#allocation11 + $0xb8] sm:$0xff]  ;;  %v736_v32 = vld [vmem:[#allocation11 + $0xd0] sm:$0xff] }
  0xce   : > { %3723 = vmatprep.subr.bf16.mxu0 %v5066_v36  ;;  %v5109_v27 = vpack.c.bf16 %v727_v26, %v724_v25  ;;  %v739_v33 = vld [vmem:[#allocation11 + $0xe8] sm:$0xff]  ;;  %v742_v35 = vld [vmem:[#allocation11 + $0x100] sm:$0xff]  ;;  %v745_v38 = vld [vmem:[#allocation11 + $0x118] sm:$0xff] }
  0xcf   : > { %3661 = vmatpush1.bf16.msra.mxu1 %v3660_v42  ;;  %v5119_v34 = vpack.c.bf16 %v739_v33, %v736_v32  ;;  %v5123_v39 = vpack.c.bf16 %v745_v38, %v742_v35  ;;  %v748_v40 = vld [vmem:[#allocation11 + $0x130] sm:$0xff]  ;;  %v751_v42 = vld [vmem:[#allocation11 + $0x148] sm:$0xff]  ;;  %v754_v45 = vld [vmem:[#allocation11 + $0x160] sm:$0xff] }
  0xd0   : > { %3663 = vmatprep.subr.bf16.mxu1 %v3662_v44  ;;  %v757_v47 = vld [vmem:[#allocation11 + $0x178] sm:$0xff] }
  0xd1   : > { %3725 = vmatpush1.bf16.msra.mxu0 %v5069_v43 }
  0xd2   : > { %3751 = vmatprep.subr.bf16.mxu0 %v5025_v11  ;;  %581 = vmatmul.mubr.f32.vlgmr.msra.gmra.mrb[0].mxu1 %v447_v48 }
  0xd3   : > { %3665 = vmatpush3.bf16.msra.mxu1 %v3662_v44  ;;  %586 = vmatprep.mubr.f32.mxu1 %v4726_v9  ;;  %v5127_v44 = vpack.c.bf16 %v751_v42, %v748_v40 }
  0xd4   : > { %823 = vmatmul.mubr.f32.vlgmr.msra.gmra.mrb[0].mxu0 %v5074_v49  ;;  %3667 = vmatprep.subr.bf16.mxu1 %v3666_v50 }
  0xd5   : > { %3753 = vmatpush1.bf16.msra.mxu0 %v5027_v15  ;;  %1035 = vmatprep.mubr.f32.mxu0 %v4726_v9 }
  0xd6   : > { %587 = vmatmul.mubr.f32.gmra.mrb[2].mxu1 %v448_v53  ;;  %3755 = vmatprep.subr.bf16.mxu0 %v5031_v24 }
  0xd7   : > { %3669 = vmatpush3.bf16.msra.mxu1 %v3666_v50  ;;  %592 = vmatprep.mubr.f32.mxu1 %v4726_v9  ;;  %v501_v50 = vlaneseq }
  0xd8   : > { %3671 = vmatprep.subr.bf16.mxu1 %v3670_v55 }
  0xd9   : > { %3757 = vmatpush1.bf16.msra.mxu0 %v5033_v28  ;;  %v5155_v51 = vshrl.u32 %v501_v50, 7 }
  0xda   : > { %593 = vmatmul.mubr.f32.gmra.mrb[4].mxu1 %v449_v58  ;;  %3759 = vmatprep.subr.bf16.mxu0 %v5036_v37 }
  0xdb   : > { %3673 = vmatpush3.bf16.msra.mxu1 %v3670_v55  ;;  %598 = vmatprep.mubr.f32.mxu1 %v4726_v9  ;;  %v503_v52 = vsub.s32 0, %v5155_v51  ;;  %v507_v55 = vsub.s32 1, %v5155_v51  ;;  %v511_v26 = vsub.s32 2, %v5155_v51 }
  0xdc   : > { %3675 = vmatprep.subr.bf16.mxu1 %v3674_v60 }
  0xdd   : > { %3761 = vmatpush1.bf16.msra.mxu0 %v5039_v41 }
  0xde   : > { %599 = vmatmul.mubr.f32.gmra.mrb[6].mxu1 %v450_v63  ;;  %3763 = vmatprep.subr.bf16.mxu0 %v5042_v46 }
  0xdf   : > { %3677 = vmatpush3.bf16.msra.mxu1 %v3674_v60  ;;  %3268 = vmatprep.mubr.f32.mxu1 %v447_v48  ;;  %v5131_v48 = vpack.c.bf16 %v757_v47, %v754_v45 }
  0xe0   : > { %3679 = vmatprep.subr.bf16.mxu1 %v3678_v0 }
  0xe1   : > { %3765 = vmatpush1.bf16.msra.mxu0 %v5045_v54 }
  0xe2   : > { %3767 = vmatprep.subr.bf16.mxu0 %v5048_v59 }
  0xe3   : > { %3681 = vmatpush3.bf16.msra.mxu1 %v3678_v0 }
  0xe4   : > { %3683 = vmatprep.subr.bf16.mxu1 %v3682_v4 }
  0xe5   : > { %3769 = vmatpush1.bf16.msra.mxu0 %v5051_v2 }
  0xe6   : > { %3771 = vmatprep.subr.bf16.mxu0 %v5054_v7 }
  0xe7   : > { %3685 = vmatpush3.bf16.msra.mxu1 %v3682_v4 }
  0xe8   : > { %3687 = vmatprep.subr.bf16.mxu1 %v3686_v8 }
  0xe9   : > { %3773 = vmatpush1.bf16.msra.mxu0 %v5057_v17 }
  0xea   : > { %3775 = vmatprep.subr.bf16.mxu0 %v5060_v22 }
  0xeb   : > { %3689 = vmatpush3.bf16.msra.mxu1 %v3686_v8 }
  0xec   : > { %3691 = vmatprep.subr.bf16.mxu1 %v3690_v13 }
  0xed   : > { %3777 = vmatpush1.bf16.msra.mxu0 %v5063_v31 }
  0xee   : > { %3779 = vmatprep.subr.bf16.mxu0 %v5066_v36 }
  0xef   : > { %3693 = vmatpush3.bf16.msra.mxu1 %v3690_v13 }
  0xf0   : > { %3726 = vmatprep.subr.bf16.mxu1 %v4727_v19 }
  0xf1   : > { %3781 = vmatpush1.bf16.msra.mxu0 %v5069_v43 }
  0xf2   : > { %3269 = vmatmul.mubr.f32.vlgmr.msra.gmra.mrb[8].mxu1 %v448_v53  ;;  %3807 = vmatprep.subr.bf16.mxu0 %v5025_v11  ;;  %v730_v11 = vld [vmem:[#allocation11 + $0xa0] sm:$0xff] }
  0xf3   : > { %3728 = vmatpush3.bf16.msra.mxu1 %v5099_v18  ;;  %3271 = vmatprep.mubr.f32.mxu1 %v449_v58  ;;  %v5115_v30 = vpack.c.bf16 %v733_v29, %v730_v11  ;;  %v499_v53 = vld [vmem:[%s5672_s28] sm:$0x7] }
  0xf4   : > { %3729 = vmatprep.subr.bf16.mxu1 %v4727_v19  ;;  %v504_v56 = vrot.slane %v499_v53, %v503_v52  ;;  %v508_v57 = vrot.slane %v499_v53, %v507_v55  ;;  %v512_v11 = vrot.slane %v499_v53, %v511_v26 }
  0xf6   : > { %3272 = vmatmul.mubr.f32.gmra.mrb[10].mxu1 %v450_v63 }
  0xf7   : > { %3731 = vmatpush3.bf16.msra.mxu1 %v5105_v23  ;;  %3306 = vmatprep.mubr.msk.f32.mxu1 %vm4728_vm0, %v4726_v9 }
  0xf8   : > { %3732 = vmatprep.subr.bf16.mxu1 %v4727_v19 }
  0xfb   : > { %3734 = vmatpush3.bf16.msra.mxu1 %v5109_v27 }
  0xfc   : > { %3735 = vmatprep.subr.bf16.mxu1 %v4727_v19 }
  0xff   : > { %3737 = vmatpush3.bf16.msra.mxu1 %v5115_v30 }
 0x100   : > { %3738 = vmatprep.subr.bf16.mxu1 %v4727_v19 }
 0x103   : > { %3740 = vmatpush3.bf16.msra.mxu1 %v5119_v34 }
 0x104   : > { %3741 = vmatprep.subr.bf16.mxu1 %v4727_v19 }
 0x107   : > { %3743 = vmatpush3.bf16.msra.mxu1 %v5123_v39 }
 0x108   : > { %3744 = vmatprep.subr.bf16.mxu1 %v4727_v19 }
 0x10b   : > { %3746 = vmatpush3.bf16.msra.mxu1 %v5127_v44 }
 0x10c   : > { %3747 = vmatprep.subr.bf16.mxu1 %v4727_v19 }
 0x10f   : > { %3749 = vmatpush3.bf16.msra.mxu1 %v5131_v48 }
 0x110   : > { %3782 = vmatprep.subr.bf16.mxu1 %v4727_v19 }
 0x112   : > { %3307 = vmatmul.mubr.f32.vlgmr.msra.gmra.mrb[12].mxu1 %v5074_v49 }
 0x113   : > { %3784 = vmatpush3.bf16.msra.mxu1 %v5099_v18  ;;  %3341 = vmatprep.mubr.msk.f32.mxu1 %vm4728_vm0, %v4726_v9 }
 0x114   : > { %3785 = vmatprep.subr.bf16.mxu1 %v4727_v19 }
 0x117   : > { %3787 = vmatpush3.bf16.msra.mxu1 %v5105_v23 }
 0x118   : > { %3788 = vmatprep.subr.bf16.mxu1 %v4727_v19 }
 0x11b   : > { %3790 = vmatpush3.bf16.msra.mxu1 %v5109_v27 }
 0x11c   : > { %3791 = vmatprep.subr.bf16.mxu1 %v4727_v19 }
 0x11f   : > { %3793 = vmatpush3.bf16.msra.mxu1 %v5115_v30 }
 0x120   : > { %3794 = vmatprep.subr.bf16.mxu1 %v4727_v19 }
 0x123   : > { %3796 = vmatpush3.bf16.msra.mxu1 %v5119_v34 }
 0x124   : > { %3797 = vmatprep.subr.bf16.mxu1 %v4727_v19 }
 0x127   : > { %3799 = vmatpush3.bf16.msra.mxu1 %v5123_v39 }
 0x128   : > { %3800 = vmatprep.subr.bf16.mxu1 %v4727_v19 }
 0x12b   : > { %3802 = vmatpush3.bf16.msra.mxu1 %v5127_v44 }
 0x12c   : > { %3803 = vmatprep.subr.bf16.mxu1 %v4727_v19 }
 0x12f   : > { %3805 = vmatpush3.bf16.msra.mxu1 %v5131_v48 }
 0x130   : > { %3838 = vmatprep.subr.bf16.mxu1 %v4727_v19 }
 0x1a5   : > { %v582_v58 = vpop.f32.mrb[0].mxu1 }
 0x1a6   : > { %v583_v60 = vadd.f32 %v582_v58, %v504_v56  ;;  %v584_v61 = vpop.f32.mrb[1].mxu1 }
 0x1a7   : > { %v824_v62 = vpop.f32.mrb[0].mxu0  ;;  %v585_v63 = vadd.f32 %v584_v61, %v508_v57 }
 0x1a8   : > { %v826_v0 = vpop.f32.mrb[1].mxu0  ;;  %v905_v1 = vadd.f32 %v824_v62, %v583_v60 }
 0x1a9   : > { %v910_v3 = vadd.f32 %v826_v0, %v585_v63  ;;  %v588_v4 = vpop.f32.mrb[2].mxu1 }
 0x1aa   : > { %v5166_v5 = vadd.f32 %v588_v4, %v504_v56  ;;  %v590_v6 = vpop.f32.mrb[3].mxu1  ;;  %v906_v45 = vmul.f32 0.5, %v905_v1 }
 0x1ab   : > { %v5168_v8 = vadd.f32 %v590_v6, %v508_v57 }
 0x1ac   : > { %4389 = vtanh.f32 %v906_v45  ;;  %v1360_v45 = vld [vmem:[#allocation11 + $0x48] sm:$0xff] }
 0x1ad   : > { %v594_v10 = vpop.f32.mrb[4].mxu1 }
 0x1ae   : > { %v5170_v12 = vadd.f32 %v594_v10, %v504_v56  ;;  %v596_v13 = vpop.f32.mrb[5].mxu1 }
 0x1af   : > { %v5172_v14 = vadd.f32 %v596_v13, %v508_v57 }
 0x1b1   : > { %v600_v16 = vpop.f32.mrb[6].mxu1 }
 0x1b2   : > { %v5174_v20 = vadd.f32 %v600_v16, %v504_v56  ;;  %v602_v21 = vpop.f32.mrb[7].mxu1  ;;  %v911_v56 = vmul.f32 0.5, %v910_v3 }
 0x1b3   : > { %v5176_v25 = vadd.f32 %v602_v21, %v508_v57  ;;  %v5190_v57 = vld [vmem:[%s5673_s15] ss:$0 sm:$0xff] }
 0x1b4   : > { %4391 = vtanh.f32 %v911_v56 }
 0x1b6   : > { %v4390_v47 = vpop.eup %4389 }
 0x1b7   : > { %v908_v50 = vadd.f32 1.0, %v4390_v47 }
 0x1b9   : > { %v909_v58 = vmul.f32 0.5, %v908_v50  ;;  %v1367_v50 = vld [vmem:[#allocation11 + $0x80] sm:$0xff] }
 0x1be   : > { %v4392_v1 = vpop.eup %4391 }
 0x1bf   : > { %v913_v4 = vadd.f32 1.0, %v4392_v1 }
 0x1c1   : > { %v914_v10 = vmul.f32 0.5, %v913_v4  ;;  %v1376_v4 = vld [vmem:[#allocation11 + $0xc8] sm:$0xff] }
 0x1c5   : > { %v3270_v29 = vpop.f32.mrb[8].mxu1 }
 0x1c6   : > { %v5181_v32 = vadd.f32 %v3270_v29, %v512_v11  ;;  %v671_v33 = vpop.f32.mrb[9].mxu1 }
 0x1c7   : > { %v672_v62 = vadd.f32 %v671_v33, %v512_v11 }
 0x1c9   : > { %v3273_v35 = vpop.f32.mrb[10].mxu1 }
 0x1ca   : > { %v5183_v38 = vadd.f32 %v3273_v35, %v512_v11  ;;  %v681_v40 = vpop.f32.mrb[11].mxu1  ;;  %v1361_v35 = vld [vmem:[#allocation11 + $0x50] sm:$0xff] }
 0x1cb   : > { %v5185_v42 = vadd.f32 %v681_v40, %v512_v11 }
 0x1e5   : > { %v895_v53 = vpop.f32.mrb[12].mxu1 }
 0x1e6   : > { %v915_v60 = vadd.f32 %v5190_v57, %v895_v53  ;;  %v3308_v61 = vpop.f32.mrb[13].mxu1  ;;  %v1366_v53 = vld [vmem:[#allocation11 + $0x78] sm:$0xff] }
 0x1e7   : > { %v1373_v61 = vld [vmem:[#allocation11 + $0xb0] sm:$0xff] }
 0x1e8   : > { %v916_v63 = vmul.f32 %v915_v60, %v909_v58  ;;  %v1370_v60 = vld [vmem:[#allocation11 + $0x98] sm:$0xff] }
 0x1ea   : > { %v917_v0 = vadd.f32 %v916_v63, %v672_v62  ;;  %v3874_v62 = vpack.c.bf16 %v1373_v61, %v1370_v60  ;;  %v1369_v63 = vld [vmem:[#allocation11 + $0x90] sm:$0xff] }
 0x1ec   : > { %4393 = vtanh.f32 %v917_v0  ;;  %v1372_v0 = vld [vmem:[#allocation11 + $0xa8] sm:$0xff] }
 0x1ed   : > { %v3876_v1 = vpack.c.bf16 %v1372_v0, %v1369_v63 }
 0x1f6   : > { %v4394_v6 = vpop.eup %4393 }
 0x1f7   : > { %v919_v3 = vsub.f32 %v5074_v49, %v4394_v6 }
 0x1f9   : > { %v920_v13 = vmul.f32 %v919_v3, %v914_v10  ;;  %v1375_v3 = vld [vmem:[#allocation11 + $0xc0] sm:$0xff] }
 0x1fb   : > { %v5194_v16 = vadd.f32 %v4394_v6, %v920_v13  ;;  %v1379_v6 = vld [vmem:[#allocation11 + $0xe0] sm:$0xff]  ;;  %v1378_v13 = vld [vmem:[#allocation11 + $0xd8] sm:$0xff] }
 0x1fc   : > { %v3878_v10 = vpack.c.bf16 %v1379_v6, %v1376_v4  ;;  %v1578_v4 = vld [vmem:[#allocation10 + $0x1b8] sm:$0xff]  ;;  %v1581_v6 = vld [vmem:[#allocation10 + $0x1d0] sm:$0xff] }
 0x1fd   : > { %1036 = vmatmul.mubr.f32.vlgmr.msra.gmra.mrb[2].mxu0 %v5194_v16  ;;  %3342 = vmatmul.mubr.f32.vlgmr.msra.gmra.mrb[14].mxu1 %v5194_v16 }
 0x1fe   : > { %3809 = vmatpush1.bf16.msra.mxu0 %v5027_v15  ;;  %3840 = vmatpush3.bf16.msra.mxu1 %v5099_v18 }
 0x1ff   : > { %3811 = vmatprep.subr.bf16.mxu0 %v5031_v24  ;;  %3841 = vmatprep.subr.bf16.mxu1 %v4727_v19 }
 0x200   : > { %1249 = vmatprep.mubr.f32.mxu0 %v4726_v9  ;;  %3376 = vmatprep.mubr.msk.f32.mxu1 %vm4728_vm0, %v4726_v9 }
 0x202   : > { %3813 = vmatpush1.bf16.msra.mxu0 %v5033_v28  ;;  %3843 = vmatpush3.bf16.msra.mxu1 %v5105_v23 }
 0x203   : > { %3815 = vmatprep.subr.bf16.mxu0 %v5036_v37  ;;  %3844 = vmatprep.subr.bf16.mxu1 %v4727_v19 }
 0x206   : > { %3817 = vmatpush1.bf16.msra.mxu0 %v5039_v41  ;;  %3846 = vmatpush3.bf16.msra.mxu1 %v5109_v27 }
 0x207   : > { %3819 = vmatprep.subr.bf16.mxu0 %v5042_v46  ;;  %3847 = vmatprep.subr.bf16.mxu1 %v4727_v19 }
 0x20a   : > { %3821 = vmatpush1.bf16.msra.mxu0 %v5045_v54  ;;  %3849 = vmatpush3.bf16.msra.mxu1 %v5115_v30 }
 0x20b   : > { %3823 = vmatprep.subr.bf16.mxu0 %v5048_v59  ;;  %3850 = vmatprep.subr.bf16.mxu1 %v4727_v19 }
 0x20e   : > { %3825 = vmatpush1.bf16.msra.mxu0 %v5051_v2  ;;  %3852 = vmatpush3.bf16.msra.mxu1 %v5119_v34 }
 0x20f   : > { %3827 = vmatprep.subr.bf16.mxu0 %v5054_v7  ;;  %3853 = vmatprep.subr.bf16.mxu1 %v4727_v19 }
 0x212   : > { %3829 = vmatpush1.bf16.msra.mxu0 %v5057_v17  ;;  %3855 = vmatpush3.bf16.msra.mxu1 %v5123_v39 }
 0x213   : > { %3831 = vmatprep.subr.bf16.mxu0 %v5060_v22  ;;  %3856 = vmatprep.subr.bf16.mxu1 %v4727_v19 }
 0x216   : > { %3833 = vmatpush1.bf16.msra.mxu0 %v5063_v31  ;;  %3858 = vmatpush3.bf16.msra.mxu1 %v5127_v44 }
 0x217   : > { %3835 = vmatprep.subr.bf16.mxu0 %v5066_v36  ;;  %3859 = vmatprep.subr.bf16.mxu1 %v4727_v19 }
 0x21a   : > { %3837 = vmatpush1.bf16.msra.mxu0 %v5069_v43  ;;  %3861 = vmatpush3.bf16.msra.mxu1 %v5131_v48 }
 0x21b   : > { %3894 = vmatprep.subr.bf16.mxu1 %v4727_v19 }
 0x2d0   : > { %v1037_v15 = vpop.f32.mrb[2].mxu0  ;;  %v1108_v24 = vpop.f32.mrb[14].mxu1 }
 0x2d1   : > { %v1118_v28 = vadd.f32 %v1037_v15, %v5166_v5  ;;  %v1039_v37 = vpop.f32.mrb[3].mxu0  ;;  %v3343_v41 = vpop.f32.mrb[15].mxu1  ;;  %v1128_v22 = vadd.f32 %v5190_v57, %v1108_v24  ;;  %v3880_v15 = vpack.c.bf16 %v1378_v13, %v1375_v3  ;;  %v1382_v24 = vld [vmem:[#allocation11 + $0xf8] sm:$0xff]  ;;  %v1579_v3 = vld [vmem:[#allocation10 + $0x1c0] sm:$0xff] }
 0x2d2   : > { %v1123_v46 = vadd.f32 %v1039_v37, %v5168_v8  ;;  %v1381_v41 = vld [vmem:[#allocation11 + $0xf0] sm:$0xff]  ;;  %v1582_v13 = vld [vmem:[#allocation10 + $0x1d8] sm:$0xff] }
 0x2d3   : > { %v1119_v54 = vmul.f32 0.5, %v1118_v28  ;;  %v1385_v28 = vld [vmem:[#allocation11 + $0x110] sm:$0xff] }
 0x2d4   : > { %v1124_v59 = vmul.f32 0.5, %v1123_v46  ;;  %v3882_v37 = vpack.c.bf16 %v1385_v28, %v1382_v24  ;;  %v1384_v46 = vld [vmem:[#allocation11 + $0x108] sm:$0xff]  ;;  %v3922_v28 = vpack.c.bf16 %v1581_v6, %v1578_v4 }
 0x2d5   : > { %4395 = vtanh.f32 %v1119_v54  ;;  %v3884_v54 = vpack.c.bf16 %v1384_v46, %v1381_v41  ;;  %v1584_v41 = vld [vmem:[#allocation10 + $0x1e8] sm:$0xff]  ;;  %v3954_v46 = vpack.c.bf16 %v1582_v13, %v1579_v3  ;;  %v1610_v3 = vld [vmem:[#allocation10 + $0x2b8] sm:$0xff] }
 0x2d6   : > { %4397 = vtanh.f32 %v1124_v59  ;;  %v1388_v59 = vld [vmem:[#allocation11 + $0x128] sm:$0xff]  ;;  %v1614_v13 = vld [vmem:[#allocation10 + $0x2d8] sm:$0xff] }
 0x2df   : > { %v4396_v2 = vpop.eup %4395 }
 0x2e0   : > { %v1121_v7 = vadd.f32 1.0, %v4396_v2  ;;  %v4398_v43 = vpop.eup %4397  ;;  %v1391_v2 = vld [vmem:[#allocation11 + $0x140] sm:$0xff] }
 0x2e1   : > { %v1126_v49 = vadd.f32 1.0, %v4398_v43  ;;  %v1397_v43 = vld [vmem:[#allocation11 + $0x170] sm:$0xff] }
 0x2e2   : > { %v1122_v17 = vmul.f32 0.5, %v1121_v7  ;;  %v3886_v7 = vpack.c.bf16 %v1391_v2, %v1388_v59  ;;  %v1585_v59 = vld [vmem:[#allocation10 + $0x1f0] sm:$0xff]  ;;  %v1588_v2 = vld [vmem:[#allocation10 + $0x208] sm:$0xff] }
 0x2e3   : > { %v1127_v21 = vmul.f32 0.5, %v1126_v49 }
 0x2e4   : > { %v1129_v31 = vmul.f32 %v1128_v22, %v1122_v17  ;;  %v1387_v17 = vld [vmem:[#allocation11 + $0x120] sm:$0xff]  ;;  %v1390_v22 = vld [vmem:[#allocation11 + $0x138] sm:$0xff] }
 0x2e6   : > { %v1130_v36 = vadd.f32 %v1129_v31, %v5181_v32  ;;  %v1354_v32 = vld [vmem:[#allocation11 + $0x18] sm:$0xff]  ;;  %v3888_v31 = vpack.c.bf16 %v1390_v22, %v1387_v17  ;;  %v3958_v22 = vpack.c.bf16 %v1588_v2, %v1585_v59  ;;  %v1616_v59 = vld [vmem:[#allocation10 + $0x2e8] sm:$0xff] }
 0x2e8   : > { %4399 = vtanh.f32 %v1130_v36  ;;  %v1394_v36 = vld [vmem:[#allocation11 + $0x158] sm:$0xff] }
 0x2e9   : > { %v3890_v49 = vpack.c.bf16 %v1397_v43, %v1394_v36  ;;  %v1586_v36 = vld [vmem:[#allocation10 + $0x1f8] sm:$0xff] }
 0x2ea   : > { %v1590_v43 = vld [vmem:[#allocation10 + $0x218] sm:$0xff] }
 0x2f2   : > { %v4400_v5 = vpop.eup %4399 }
 0x2f3   : > { %v1132_v11 = vsub.f32 %v5194_v16, %v4400_v5 }
 0x2f5   : > { %v1133_v8 = vmul.f32 %v1132_v11, %v1127_v21  ;;  %v1396_v21 = vld [vmem:[#allocation11 + $0x168] sm:$0xff] }
 0x2f7   : > { %v5237_v29 = vadd.f32 %v4400_v5, %v1133_v8  ;;  %v1393_v5 = vld [vmem:[#allocation11 + $0x150] sm:$0xff]  ;;  %v1572_v8 = vld [vmem:[#allocation10 + $0x188] sm:$0xff] }
 0x2f8   : > { %v3892_v11 = vpack.c.bf16 %v1396_v21, %v1393_v5  ;;  %v1591_v5 = vld [vmem:[#allocation10 + $0x220] sm:$0xff]  ;;  %v1594_v21 = vld [vmem:[#allocation10 + $0x238] sm:$0xff] }
 0x2f9   : > { %1250 = vmatmul.mubr.f32.vlgmr.msra.gmra.mrb[4].mxu0 %v5237_v29  ;;  %3377 = vmatmul.mubr.f32.vlgmr.msra.gmra.mrb[16].mxu1 %v5237_v29 }
 0x2fa   : > { %3896 = vmatpush3.bf16.msra.mxu1 %v5099_v18  ;;  %1463 = vmatprep.mubr.f32.mxu0 %v4726_v9  ;;  %v1352_v18 = vld [vmem:[#allocation11 + $0x8] sm:$0xff] }
 0x2fb   : > { %3897 = vmatprep.subr.bf16.mxu1 %v4727_v19  ;;  %3411 = vmatprep.mubr.msk.f32.mxu1 %vm4728_vm0, %v4726_v9 }
 0x2fe   : > { %3899 = vmatpush3.bf16.msra.mxu1 %v5105_v23  ;;  %v1355_v23 = vld [vmem:[#allocation11 + $0x20] sm:$0xff] }
 0x2ff   : > { %3900 = vmatprep.subr.bf16.mxu1 %v4727_v19 }
 0x302   : > { %3902 = vmatpush3.bf16.msra.mxu1 %v5109_v27  ;;  %v3862_v27 = vpack.c.bf16 %v1355_v23, %v1352_v18  ;;  %v1575_v18 = vld [vmem:[#allocation10 + $0x1a0] sm:$0xff]  ;;  %v1573_v23 = vld [vmem:[#allocation10 + $0x190] sm:$0xff] }
 0x303   : > { %3903 = vmatprep.subr.bf16.mxu1 %v4727_v19 }
 0x304   : > { %3863 = vmatprep.subr.bf16.mxu0 %v3862_v27  ;;  %v3918_v27 = vpack.c.bf16 %v1575_v18, %v1572_v8  ;;  %v3962_v18 = vpack.c.bf16 %v1594_v21, %v1591_v5  ;;  %v1840_v5 = vld [vmem:[#allocation11 + $0x1b0] sm:$0xff]  ;;  %v1843_v21 = vld [vmem:[#allocation11 + $0x1c8] sm:$0xff] }
 0x306   : > { %3905 = vmatpush3.bf16.msra.mxu1 %v5115_v30  ;;  %v1351_v30 = vld [vmem:[#allocation11] sm:$0xff] }
 0x307   : > { %3906 = vmatprep.subr.bf16.mxu1 %v4727_v19  ;;  %v3864_v33 = vpack.c.bf16 %v1354_v32, %v1351_v30  ;;  %v1576_v30 = vld [vmem:[#allocation10 + $0x1a8] sm:$0xff] }
 0x308   : > { %v3950_v32 = vpack.c.bf16 %v1576_v30, %v1573_v23  ;;  %v1589_v23 = vld [vmem:[#allocation10 + $0x210] sm:$0xff]  ;;  %v1596_v30 = vld [vmem:[#allocation10 + $0x248] sm:$0xff] }
 0x309   : > { %3865 = vmatpush1.bf16.msra.mxu0 %v3864_v33 }
 0x30a   : > { %3908 = vmatpush3.bf16.msra.mxu1 %v5119_v34  ;;  %v1358_v34 = vld [vmem:[#allocation11 + $0x38] sm:$0xff] }
 0x30b   : > { %3909 = vmatprep.subr.bf16.mxu1 %v4727_v19  ;;  %v3866_v40 = vpack.c.bf16 %v1361_v35, %v1358_v34 }
 0x30d   : > { %3867 = vmatprep.subr.bf16.mxu0 %v3866_v40 }
 0x30e   : > { %3911 = vmatpush3.bf16.msra.mxu1 %v5123_v39  ;;  %v1357_v39 = vld [vmem:[#allocation11 + $0x30] sm:$0xff] }
 0x30f   : > { %3912 = vmatprep.subr.bf16.mxu1 %v4727_v19  ;;  %v3868_v47 = vpack.c.bf16 %v1360_v45, %v1357_v39 }
 0x311   : > { %3869 = vmatpush1.bf16.msra.mxu0 %v3868_v47 }
 0x312   : > { %3914 = vmatpush3.bf16.msra.mxu1 %v5127_v44  ;;  %v1364_v44 = vld [vmem:[#allocation11 + $0x68] sm:$0xff] }
 0x313   : > { %3915 = vmatprep.subr.bf16.mxu1 %v4727_v19  ;;  %v3870_v56 = vpack.c.bf16 %v1367_v50, %v1364_v44 }
 0x315   : > { %3871 = vmatprep.subr.bf16.mxu0 %v3870_v56 }
 0x316   : > { %3917 = vmatpush3.bf16.msra.mxu1 %v5131_v48  ;;  %v1363_v48 = vld [vmem:[#allocation11 + $0x60] sm:$0xff] }
 0x317   : > { %v3872_v58 = vpack.c.bf16 %v1366_v53, %v1363_v48  ;;  %3951 = vmatprep.subr.bf16.mxu1 %v3950_v32 }
 0x319   : > { %3873 = vmatpush1.bf16.msra.mxu0 %v3872_v58 }
 0x31a   : > { %3875 = vmatprep.subr.bf16.mxu0 %v3874_v62 }
 0x31d   : > { %3877 = vmatpush1.bf16.msra.mxu0 %v3876_v1  ;;  %v1574_v1 = vld [vmem:[#allocation10 + $0x198] sm:$0xff] }
 0x31e   : > { %3879 = vmatprep.subr.bf16.mxu0 %v3878_v10 }
 0x321   : > { %3881 = vmatpush1.bf16.msra.mxu0 %v3880_v15 }
 0x322   : > { %3883 = vmatprep.subr.bf16.mxu0 %v3882_v37  ;;  %v1577_v37 = vld [vmem:[#allocation10 + $0x1b0] sm:$0xff] }
 0x325   : > { %3885 = vmatpush1.bf16.msra.mxu0 %v3884_v54  ;;  %v1587_v54 = vld [vmem:[#allocation10 + $0x200] sm:$0xff] }
 0x326   : > { %3887 = vmatprep.subr.bf16.mxu0 %v3886_v7  ;;  %v3926_v17 = vpack.c.bf16 %v1587_v54, %v1584_v41  ;;  %v1613_v54 = vld [vmem:[#allocation10 + $0x2d0] sm:$0xff] }
 0x327   : > { %v3948_v2 = vpack.c.bf16 %v1616_v59, %v1613_v54  ;;  %v1877_v59 = vld [vmem:[#allocation11 + $0x2d8] sm:$0xff] }
 0x329   : > { %3889 = vmatpush1.bf16.msra.mxu0 %v3888_v31  ;;  %v1583_v31 = vld [vmem:[#allocation10 + $0x1e0] sm:$0xff] }
 0x32a   : > { %3891 = vmatprep.subr.bf16.mxu0 %v3890_v49  ;;  %v1593_v49 = vld [vmem:[#allocation10 + $0x230] sm:$0xff] }
 0x32b   : > { %v3930_v8 = vpack.c.bf16 %v1593_v49, %v1590_v43  ;;  %v1841_v43 = vld [vmem:[#allocation11 + $0x1b8] sm:$0xff] }
 0x32d   : > { %3893 = vmatpush1.bf16.msra.mxu0 %v3892_v11  ;;  %v3928_v11 = vpack.c.bf16 %v1586_v36, %v1583_v31  ;;  %v1834_v31 = vld [vmem:[#allocation11 + $0x180] sm:$0xff] }
 0x32e   : > { %3919 = vmatprep.subr.bf16.mxu0 %v3918_v27  ;;  %v1592_v27 = vld [vmem:[#allocation10 + $0x228] sm:$0xff] }
 0x3cc   : > { %v1251_v33 = vpop.f32.mrb[4].mxu0  ;;  %v1322_v34 = vpop.f32.mrb[16].mxu1 }
 0x3cd   : > { %v1332_v35 = vadd.f32 %v1251_v33, %v5170_v12  ;;  %v1253_v40 = vpop.f32.mrb[5].mxu0  ;;  %v3378_v39 = vpop.f32.mrb[17].mxu1  ;;  %v1342_v53 = vadd.f32 %v5190_v57, %v1322_v34  ;;  %v1597_v33 = vld [vmem:[#allocation10 + $0x250] sm:$0xff]  ;;  %v1600_v34 = vld [vmem:[#allocation10 + $0x268] sm:$0xff] }
 0x3ce   : > { %v1337_v45 = vadd.f32 %v1253_v40, %v5172_v14  ;;  %v1571_v14 = vld [vmem:[#allocation10 + $0x180] sm:$0xff]  ;;  %v3966_v39 = vpack.c.bf16 %v1600_v34, %v1597_v33  ;;  %v1853_v33 = vld [vmem:[#allocation11 + $0x218] sm:$0xff]  ;;  %v1856_v34 = vld [vmem:[#allocation11 + $0x230] sm:$0xff] }
 0x3cf   : > { %v1333_v47 = vmul.f32 0.5, %v1332_v35  ;;  %v3920_v15 = vpack.c.bf16 %v1574_v1, %v1571_v14  ;;  %v3932_v35 = vpack.c.bf16 %v1592_v27, %v1589_v23  ;;  %v1612_v14 = vld [vmem:[#allocation10 + $0x2c8] sm:$0xff]  ;;  %v1846_v27 = vld [vmem:[#allocation11 + $0x1e0] sm:$0xff] }
 0x3d0   : > { %v1338_v44 = vmul.f32 0.5, %v1337_v45  ;;  %v1595_v45 = vld [vmem:[#allocation10 + $0x240] sm:$0xff] }
 0x3d1   : > { %4401 = vtanh.f32 %v1333_v47  ;;  %v1598_v47 = vld [vmem:[#allocation10 + $0x258] sm:$0xff] }
 0x3d2   : > { %4403 = vtanh.f32 %v1338_v44  ;;  %v1602_v44 = vld [vmem:[#allocation10 + $0x278] sm:$0xff] }
 0x3db   : > { %v4402_v50 = vpop.eup %4401 }
 0x3dc   : > { %v1335_v56 = vadd.f32 1.0, %v4402_v50  ;;  %v4404_v61 = vpop.eup %4403  ;;  %v1605_v50 = vld [vmem:[#allocation10 + $0x290] sm:$0xff] }
 0x3dd   : > { %v1340_v62 = vadd.f32 1.0, %v4404_v61  ;;  %v1601_v61 = vld [vmem:[#allocation10 + $0x270] sm:$0xff] }
 0x3de   : > { %v1336_v48 = vmul.f32 0.5, %v1335_v56  ;;  %v1603_v56 = vld [vmem:[#allocation10 + $0x280] sm:$0xff] }
 0x3df   : > { %v1341_v63 = vmul.f32 0.5, %v1340_v62  ;;  %v1604_v62 = vld [vmem:[#allocation10 + $0x288] sm:$0xff] }
 0x3e0   : > { %v1343_v58 = vmul.f32 %v1342_v53, %v1336_v48  ;;  %v1606_v48 = vld [vmem:[#allocation10 + $0x298] sm:$0xff]  ;;  %v3936_v53 = vpack.c.bf16 %v1598_v47, %v1595_v45  ;;  %v3940_v1 = vpack.c.bf16 %v1604_v62, %v1601_v61  ;;  %v1859_v45 = vld [vmem:[#allocation11 + $0x248] sm:$0xff] }
 0x3e1   : > { %v1865_v62 = vld [vmem:[#allocation11 + $0x278] sm:$0xff] }
 0x3e2   : > { %v1344_v60 = vadd.f32 %v1343_v58, %v5185_v42  ;;  %v1580_v42 = vld [vmem:[#allocation10 + $0x1c8] sm:$0xff]  ;;  %v3938_v58 = vpack.c.bf16 %v1605_v50, %v1602_v44  ;;  %v1862_v44 = vld [vmem:[#allocation11 + $0x260] sm:$0xff] }
 0x3e3   : > { %v3924_v7 = vpack.c.bf16 %v1580_v42, %v1577_v37  ;;  %v1618_v37 = vld [vmem:[#allocation10 + $0x2f8] sm:$0xff]  ;;  %v1858_v50 = vld [vmem:[#allocation11 + $0x240] sm:$0xff] }
 0x3e4   : > { %4405 = vtanh.f32 %v1344_v60  ;;  %v3970_v60 = vpack.c.bf16 %v1606_v48, %v1603_v56  ;;  %v1861_v56 = vld [vmem:[#allocation11 + $0x258] sm:$0xff]  ;;  %v5302_v48 = vpack.c.bf16 %v1862_v44, %v1859_v45  ;;  %v1878_v45 = vld [vmem:[#allocation11 + $0x2e0] sm:$0xff] }
 0x3e5   : > { %v1881_v44 = vld [vmem:[#allocation11 + $0x2f8] sm:$0xff] }
 0x3ee   : > { %v4406_v12 = vpop.eup %4405 }
 0x3ef   : > { %v1346_v0 = vsub.f32 %v5237_v29, %v4406_v12 }
 0x3f1   : > { %v1347_v10 = vmul.f32 %v1346_v0, %v1341_v63  ;;  %v1611_v63 = vld [vmem:[#allocation10 + $0x2c0] sm:$0xff]  ;;  %v1609_v0 = vld [vmem:[#allocation10 + $0x2b0] sm:$0xff] }
 0x3f2   : > { %v3974_v6 = vpack.c.bf16 %v1612_v14, %v1609_v0  ;;  %v1864_v0 = vld [vmem:[#allocation11 + $0x270] sm:$0xff]  ;;  %v1867_v14 = vld [vmem:[#allocation11 + $0x288] sm:$0xff] }
 0x3f3   : > { %v5264_v24 = vadd.f32 %v4406_v12, %v1347_v10  ;;  %v1608_v12 = vld [vmem:[#allocation10 + $0x2a8] sm:$0xff]  ;;  %v1607_v10 = vld [vmem:[#allocation10 + $0x2a0] sm:$0xff] }
 0x3f4   : > { %v3942_v4 = vpack.c.bf16 %v1611_v63, %v1608_v12  ;;  %v3944_v42 = vpack.c.bf16 %v1610_v3, %v1607_v10  ;;  %v1868_v12 = vld [vmem:[#allocation11 + $0x290] sm:$0xff]  ;;  %v1871_v3 = vld [vmem:[#allocation11 + $0x2a8] sm:$0xff] }
 0x3f5   : > { %1464 = vmatmul.mubr.f32.vlgmr.msra.gmra.mrb[6].mxu0 %v5264_v24  ;;  %3412 = vmatmul.mubr.f32.vlgmr.msra.gmra.mrb[18].mxu1 %v5264_v24  ;;  %v5313_v63 = vpack.c.bf16 %v1868_v12, %v1865_v62 }
 0x3f6   : > { %3921 = vmatpush1.bf16.msra.mxu0 %v3920_v15  ;;  %3953 = vmatpush3.bf16.msra.mxu1 %v3950_v32  ;;  %v1599_v32 = vld [vmem:[#allocation10 + $0x260] sm:$0xff]  ;;  %v1617_v15 = vld [vmem:[#allocation10 + $0x2f0] sm:$0xff] }
 0x3f7   : > { %3446 = vmatprep.mubr.f32.mxu1 %v5194_v16  ;;  %3923 = vmatprep.subr.bf16.mxu0 %v3922_v28  ;;  %v3934_v40 = vpack.c.bf16 %v1599_v32, %v1596_v30  ;;  %v1615_v28 = vld [vmem:[#allocation10 + $0x2e0] sm:$0xff]  ;;  %v3946_v41 = vpack.c.bf16 %v1617_v15, %v1614_v13  ;;  %v1849_v30 = vld [vmem:[#allocation11 + $0x1f8] sm:$0xff] }
 0x3f8   : > { %3955 = vmatprep.subr.bf16.mxu1 %v3954_v46  ;;  %1701 = vmatprep.mubr.f32.mxu0 %v4726_v9  ;;  %v5293_v32 = vpack.c.bf16 %v1849_v30, %v1846_v27  ;;  %v1874_v13 = vld [vmem:[#allocation11 + $0x2c0] sm:$0xff]  ;;  %v1869_v30 = vld [vmem:[#allocation11 + $0x298] sm:$0xff] }
 0x3f9   : > { %v1870_v15 = vld [vmem:[#allocation11 + $0x2a0] sm:$0xff] }
 0x3fa   : > { %3925 = vmatpush1.bf16.msra.mxu0 %v3924_v7  ;;  %3957 = vmatpush3.bf16.msra.mxu1 %v3954_v46  ;;  %v3978_v46 = vpack.c.bf16 %v1618_v37, %v1615_v28  ;;  %v1835_v7 = vld [vmem:[#allocation11 + $0x188] sm:$0xff]  ;;  %v5321_v28 = vpack.c.bf16 %v1874_v13, %v1871_v3  ;;  %v1873_v37 = vld [vmem:[#allocation11 + $0x2b8] sm:$0xff]  ;;  %v1866_v27 = vld [vmem:[#allocation11 + $0x280] sm:$0xff] }
 0x3fb   : > { %3927 = vmatprep.subr.bf16.mxu0 %v3926_v17  ;;  %3959 = vmatprep.subr.bf16.mxu1 %v3958_v22  ;;  %v1838_v17 = vld [vmem:[#allocation11 + $0x1a0] sm:$0xff] }
 0x3fe   : > { %3929 = vmatpush1.bf16.msra.mxu0 %v3928_v11  ;;  %3961 = vmatpush3.bf16.msra.mxu1 %v3958_v22  ;;  %v5279_v22 = vpack.c.bf16 %v1838_v17, %v1835_v7  ;;  %v5287_v11 = vpack.c.bf16 %v1843_v21, %v1840_v5  ;;  %v1876_v17 = vld [vmem:[#allocation11 + $0x2d0] sm:$0xff] }
 0x3ff   : > { %3931 = vmatprep.subr.bf16.mxu0 %v3930_v8  ;;  %3963 = vmatprep.subr.bf16.mxu1 %v3962_v18  ;;  %v1847_v8 = vld [vmem:[#allocation11 + $0x1e8] sm:$0xff]  ;;  %v1860_v21 = vld [vmem:[#allocation11 + $0x250] sm:$0xff] }
 0x402   : > { %3933 = vmatpush1.bf16.msra.mxu0 %v3932_v35  ;;  %3965 = vmatpush3.bf16.msra.mxu1 %v3962_v18  ;;  %v1850_v18 = vld [vmem:[#allocation11 + $0x200] sm:$0xff]  ;;  %v5297_v35 = vpack.c.bf16 %v1856_v34, %v1853_v33  ;;  %v5347_v33 = vpack.c.bf16 %v1869_v30, %v1866_v27  ;;  %v1872_v34 = vld [vmem:[#allocation11 + $0x2b0] sm:$0xff] }
 0x403   : > { %3935 = vmatprep.subr.bf16.mxu0 %v3934_v40  ;;  %3967 = vmatprep.subr.bf16.mxu1 %v3966_v39  ;;  %v5291_v23 = vpack.c.bf16 %v1850_v18, %v1847_v8  ;;  %v1852_v40 = vld [vmem:[#allocation11 + $0x210] sm:$0xff]  ;;  %v1863_v8 = vld [vmem:[#allocation11 + $0x268] sm:$0xff] }
 0x404   : > { %v5344_v18 = vpack.c.bf16 %v1863_v8, %v1860_v21 }
 0x406   : > { %3937 = vmatpush1.bf16.msra.mxu0 %v3936_v53  ;;  %3969 = vmatpush3.bf16.msra.mxu1 %v3966_v39  ;;  %v1855_v39 = vld [vmem:[#allocation11 + $0x228] sm:$0xff]  ;;  %v1836_v53 = vld [vmem:[#allocation11 + $0x190] sm:$0xff] }
 0x407   : > { %3939 = vmatprep.subr.bf16.mxu0 %v3938_v58  ;;  %3971 = vmatprep.subr.bf16.mxu1 %v3970_v60  ;;  %v5299_v47 = vpack.c.bf16 %v1855_v39, %v1852_v40  ;;  %v1839_v58 = vld [vmem:[#allocation11 + $0x1a8] sm:$0xff] }
 0x408   : > { %v5307_v61 = vpack.c.bf16 %v1839_v58, %v1836_v53  ;;  %v1875_v40 = vld [vmem:[#allocation11 + $0x2c8] sm:$0xff] }
 0x409   : > { %v5351_v39 = vpack.c.bf16 %v1875_v40, %v1872_v34 }
 0x40a   : > { %3941 = vmatpush1.bf16.msra.mxu0 %v3940_v1  ;;  %3973 = vmatpush3.bf16.msra.mxu1 %v3970_v60  ;;  %v5305_v60 = vpack.c.bf16 %v1861_v56, %v1858_v50  ;;  %v1842_v1 = vld [vmem:[#allocation11 + $0x1c0] sm:$0xff]  ;;  %v5355_v50 = vpack.c.bf16 %v1881_v44, %v1878_v45 }
 0x40b   : > { %3943 = vmatprep.subr.bf16.mxu0 %v3942_v4  ;;  %3975 = vmatprep.subr.bf16.mxu1 %v3974_v6  ;;  %v5315_v4 = vpack.c.bf16 %v1867_v14, %v1864_v0 }
 0x40e   : > { %3945 = vmatpush1.bf16.msra.mxu0 %v3944_v42  ;;  %3977 = vmatpush3.bf16.msra.mxu1 %v3974_v6  ;;  %v1845_v6 = vld [vmem:[#allocation11 + $0x1d8] sm:$0xff]  ;;  %v1848_v42 = vld [vmem:[#allocation11 + $0x1f0] sm:$0xff] }
 0x40f   : > { %3947 = vmatprep.subr.bf16.mxu0 %v3946_v41  ;;  %3979 = vmatprep.subr.bf16.mxu1 %v3978_v46  ;;  %v5318_v10 = vpack.c.bf16 %v1845_v6, %v1842_v1  ;;  %v1851_v41 = vld [vmem:[#allocation11 + $0x208] sm:$0xff] }
 0x410   : > { %v5326_v54 = vpack.c.bf16 %v1851_v41, %v1848_v42 }
 0x412   : > { %3949 = vmatpush1.bf16.msra.mxu0 %v3948_v2  ;;  %3981 = vmatpush3.bf16.msra.mxu1 %v3978_v46  ;;  %v5324_v46 = vpack.c.bf16 %v1873_v37, %v1870_v15  ;;  %v1880_v2 = vld [vmem:[#allocation11 + $0x2f0] sm:$0xff] }
 0x413   : > { %4014 = vmatprep.subr.bf16.mxu1 %v4727_v19  ;;  %3983 = vmatprep.subr.bf16.mxu0 %v5279_v22  ;;  %v5332_v7 = vpack.c.bf16 %v1880_v2, %v1877_v59 }
 0x415   : > { %1702 = vmatmul.mubr.f32.vlgmr.msra.gmra.mrb[8].mxu0 %v5194_v16  ;;  %3447 = vmatmul.mubr.f32.vlgmr.msra.gmra.mrb[20].mxu1 %v5237_v29  ;;  %v1837_v16 = vld [vmem:[#allocation11 + $0x198] sm:$0xff] }
 0x416   : > { %3449 = vmatprep.mubr.f32.mxu1 %v5264_v24  ;;  %1707 = vmatprep.mubr.f32.mxu0 %v4726_v9  ;;  %v5281_v36 = vpack.c.bf16 %v1837_v16, %v1834_v31  ;;  %v1879_v31 = vld [vmem:[#allocation11 + $0x2e8] sm:$0xff]  ;;  %v1854_v16 = vld [vmem:[#allocation11 + $0x220] sm:$0xff] }
 0x417   : > { %4016 = vmatpush3.bf16.msra.mxu1 %v5307_v61 }
 0x418   : > { %3985 = vmatpush1.bf16.msra.mxu0 %v5281_v36  ;;  %4017 = vmatprep.subr.bf16.mxu1 %v4727_v19 }
 0x419   : > { %1708 = vmatmul.mubr.f32.gmra.mrb[10].mxu0 %v5237_v29  ;;  %v1844_v29 = vld [vmem:[#allocation11 + $0x1d0] sm:$0xff] }
 0x41a   : > { %1713 = vmatprep.mubr.f32.mxu0 %v4726_v9  ;;  %v5285_v49 = vpack.c.bf16 %v1844_v29, %v1841_v43  ;;  %v5335_v43 = vpack.c.bf16 %v1879_v31, %v1876_v17  ;;  %v1857_v29 = vld [vmem:[#allocation11 + $0x238] sm:$0xff] }
 0x41b   : > { %4019 = vmatpush3.bf16.msra.mxu1 %v5318_v10  ;;  %v5338_v5 = vpack.c.bf16 %v1857_v29, %v1854_v16 }
 0x41c   : > { %3987 = vmatprep.subr.bf16.mxu0 %v5285_v49  ;;  %4020 = vmatprep.subr.bf16.mxu1 %v4727_v19 }
 0x41d   : > { %1714 = vmatmul.mubr.f32.gmra.mrb[12].mxu0 %v5264_v24 }
 0x41e   : > { %1719 = vmatprep.mubr.f32.mxu0 %v4726_v9  ;;  %3989 = vmatpush1.bf16.msra.mxu0 %v5287_v11 }
 0x41f   : > { %3991 = vmatprep.subr.bf16.mxu0 %v5291_v23  ;;  %4022 = vmatpush3.bf16.msra.mxu1 %v5326_v54 }
 0x420   : > { %4023 = vmatprep.subr.bf16.mxu1 %v4727_v19 }
 0x422   : > { %3993 = vmatpush1.bf16.msra.mxu0 %v5293_v32 }
 0x423   : > { %3995 = vmatprep.subr.bf16.mxu0 %v5297_v35  ;;  %4025 = vmatpush3.bf16.msra.mxu1 %v5338_v5 }
 0x424   : > { %4026 = vmatprep.subr.bf16.mxu1 %v4727_v19 }
 0x426   : > { %3997 = vmatpush1.bf16.msra.mxu0 %v5299_v47 }
 0x427   : > { %3999 = vmatprep.subr.bf16.mxu0 %v5302_v48  ;;  %4028 = vmatpush3.bf16.msra.mxu1 %v5344_v18 }
 0x428   : > { %4029 = vmatprep.subr.bf16.mxu1 %v4727_v19 }
 0x42a   : > { %4001 = vmatpush1.bf16.msra.mxu0 %v5305_v60 }
 0x42b   : > { %4003 = vmatprep.subr.bf16.mxu0 %v5313_v63  ;;  %4031 = vmatpush3.bf16.msra.mxu1 %v5347_v33 }
 0x42c   : > { %4032 = vmatprep.subr.bf16.mxu1 %v4727_v19 }
 0x42e   : > { %4005 = vmatpush1.bf16.msra.mxu0 %v5315_v4 }
 0x42f   : > { %4007 = vmatprep.subr.bf16.mxu0 %v5321_v28  ;;  %4034 = vmatpush3.bf16.msra.mxu1 %v5351_v39 }
 0x430   : > { %4035 = vmatprep.subr.bf16.mxu1 %v4727_v19 }
 0x432   : > { %4009 = vmatpush1.bf16.msra.mxu0 %v5324_v46 }
 0x433   : > { %4011 = vmatprep.subr.bf16.mxu0 %v5332_v7  ;;  %4037 = vmatpush3.bf16.msra.mxu1 %v5355_v50 }
 0x434   : > { %4070 = vmatprep.subr.bf16.mxu1 %v4727_v19 }
 0x436   : > { %4013 = vmatpush1.bf16.msra.mxu0 %v5335_v43 }
 0x437   : > { %4039 = vmatprep.subr.bf16.mxu0 %v5279_v22 }
 0x4c8   : > { %v1465_v56 = vpop.f32.mrb[6].mxu0  ;;  %v1536_v53 = vpop.f32.mrb[18].mxu1 }
 0x4c9   : > { %v1546_v58 = vadd.f32 %v1465_v56, %v5174_v20  ;;  %v1467_v62 = vpop.f32.mrb[7].mxu0  ;;  %v3413_v12 = vpop.f32.mrb[19].mxu1  ;;  %v1556_v15 = vadd.f32 %v5190_v57, %v1536_v53  ;;  %v5370_v57 = vld [vmem:[#allocation2 + $0x8] sm:$0xff] }
 0x4ca   : > { %v1551_v0 = vadd.f32 %v1467_v62, %v5176_v25 }
 0x4cb   : > { %v1547_v14 = vmul.f32 0.5, %v1546_v58  ;;  %v5431_v58 = vld [vmem:[%s5673_s15 + $0x1] ss:$0 sm:$0xff] }
 0x4cc   : > { %v1552_v1 = vmul.f32 0.5, %v1551_v0 }
 0x4cd   : > { %4407 = vtanh.f32 %v1547_v14 }
 0x4ce   : > { %4409 = vtanh.f32 %v1552_v1 }
 0x4d7   : > { %v4408_v6 = vpop.eup %4407 }
 0x4d8   : > { %v1549_v3 = vadd.f32 1.0, %v4408_v6  ;;  %v4410_v41 = vpop.eup %4409 }
 0x4d9   : > { %v1554_v59 = vadd.f32 1.0, %v4410_v41 }
 0x4da   : > { %v1550_v13 = vmul.f32 0.5, %v1549_v3 }
 0x4db   : > { %v1555_v17 = vmul.f32 0.5, %v1554_v59 }
 0x4dc   : > { %v1557_v37 = vmul.f32 %v1556_v15, %v1550_v13 }
 0x4de   : > { %v1558_v42 = vadd.f32 %v1557_v37, %v5183_v38  ;;  %v3026_v38 = vld [vmem:[%s5672_s28 + $0x3] sm:$0x7] }
 0x4df   : > { %v5420_v8 = vrot.slane %v3026_v38, %v503_v52  ;;  %v5425_v56 = vrot.slane %v3026_v38, %v507_v55  ;;  %v5435_v12 = vrot.slane %v3026_v38, %v511_v26 }
 0x4e0   : > { %4411 = vtanh.f32 %v1558_v42 }
 0x4e8   : > { %v5364_v20 = vpop.f32.mrb[20].mxu1 }
 0x4e9   : > { %v5366_v2 = vpop.f32.mrb[21].mxu1 }
 0x4ea   : > { %v4412_v25 = vpop.eup %4411  ;;  %v1793_v55 = vadd.f32 %v5366_v2, %v5435_v12 }
 0x4eb   : > { %v1560_v31 = vsub.f32 %v5264_v24, %v4412_v25 }
 0x4ed   : > { %v1561_v16 = vmul.f32 %v1560_v31, %v1555_v17 }
 0x4ef   : > { %v1562_v29 = vadd.f32 %v4412_v25, %v1561_v16 }
 0x4f1   : > { %1565 = vst [vmem:[#allocation2] sm:$0xff] %v1562_v29  ;;  %1720 = vmatmul.mubr.f32.gmra.mrb[14].mxu0 %v1562_v29  ;;  %3450 = vmatmul.mubr.f32.gmra.mrb[22].mxu1 %v1562_v29 }
 0x4f2   : > { %1946 = vmatprep.mubr.f32.mxu0 %v4726_v9  ;;  %3484 = vmatprep.mubr.msk.f32.mxu1 %vm4728_vm0, %v4726_v9 }
 0x4f5   : > { %1947 = vmatmul.mubr.f32.vlgmr.msra.gmra.mrb[8].mxu0 %v5370_v57  ;;  %3485 = vmatmul.mubr.f32.vlgmr.msra.gmra.mrb[24].mxu1 %v5370_v57 }
 0x4f6   : > { %4041 = vmatpush1.bf16.msra.mxu0 %v5281_v36  ;;  %4072 = vmatpush3.bf16.msra.mxu1 %v5307_v61 }
 0x4f7   : > { %4043 = vmatprep.subr.bf16.mxu0 %v5285_v49  ;;  %4073 = vmatprep.subr.bf16.mxu1 %v4727_v19 }
 0x4f8   : > { %2156 = vmatprep.mubr.f32.mxu0 %v4726_v9  ;;  %3519 = vmatprep.mubr.msk.f32.mxu1 %vm4728_vm0, %v4726_v9 }
 0x4fa   : > { %4045 = vmatpush1.bf16.msra.mxu0 %v5287_v11  ;;  %4075 = vmatpush3.bf16.msra.mxu1 %v5318_v10 }
 0x4fb   : > { %4047 = vmatprep.subr.bf16.mxu0 %v5291_v23  ;;  %4076 = vmatprep.subr.bf16.mxu1 %v4727_v19 }
 0x4fe   : > { %4049 = vmatpush1.bf16.msra.mxu0 %v5293_v32  ;;  %4078 = vmatpush3.bf16.msra.mxu1 %v5326_v54 }
 0x4ff   : > { %4051 = vmatprep.subr.bf16.mxu0 %v5297_v35  ;;  %4079 = vmatprep.subr.bf16.mxu1 %v4727_v19 }
 0x502   : > { %4053 = vmatpush1.bf16.msra.mxu0 %v5299_v47  ;;  %4081 = vmatpush3.bf16.msra.mxu1 %v5338_v5 }
 0x503   : > { %4055 = vmatprep.subr.bf16.mxu0 %v5302_v48  ;;  %4082 = vmatprep.subr.bf16.mxu1 %v4727_v19 }
 0x506   : > { %4057 = vmatpush1.bf16.msra.mxu0 %v5305_v60  ;;  %4084 = vmatpush3.bf16.msra.mxu1 %v5344_v18 }
 0x507   : > { %4059 = vmatprep.subr.bf16.mxu0 %v5313_v63  ;;  %4085 = vmatprep.subr.bf16.mxu1 %v4727_v19 }
 0x50a   : > { %4061 = vmatpush1.bf16.msra.mxu0 %v5315_v4  ;;  %4087 = vmatpush3.bf16.msra.mxu1 %v5347_v33 }
 0x50b   : > { %4063 = vmatprep.subr.bf16.mxu0 %v5321_v28  ;;  %4088 = vmatprep.subr.bf16.mxu1 %v4727_v19 }
 0x50e   : > { %4065 = vmatpush1.bf16.msra.mxu0 %v5324_v46  ;;  %4090 = vmatpush3.bf16.msra.mxu1 %v5351_v39 }
 0x50f   : > { %4067 = vmatprep.subr.bf16.mxu0 %v5332_v7  ;;  %4091 = vmatprep.subr.bf16.mxu1 %v4727_v19 }
 0x512   : > { %4069 = vmatpush1.bf16.msra.mxu0 %v5335_v43  ;;  %4093 = vmatpush3.bf16.msra.mxu1 %v5355_v50 }
 0x513   : > { %4095 = vmatprep.subr.bf16.mxu0 %v5279_v22  ;;  %4126 = vmatprep.subr.bf16.mxu1 %v4727_v19 }
 0x5c4   : > { %v5414_v24 = vpop.f32.mrb[22].mxu1 }
 0x5c5   : > { %v5416_v21 = vpop.f32.mrb[23].mxu1 }
 0x5c8   : > { %v1948_v27 = vpop.f32.mrb[8].mxu0  ;;  %v2019_v30 = vpop.f32.mrb[24].mxu1 }
 0x5c9   : > { %v4254_v34 = vadd.f32 %v1948_v27, %v5420_v8  ;;  %v1950_v40 = vpop.f32.mrb[9].mxu0  ;;  %v3486_v45 = vpop.f32.mrb[25].mxu1  ;;  %v2036_v14 = vadd.f32 %v5431_v58, %v2019_v30 }
 0x5ca   : > { %v4255_v53 = vadd.f32 %v1950_v40, %v5425_v56 }
 0x5cb   : > { %v2027_v44 = vmul.f32 0.5, %v4254_v34 }
 0x5cc   : > { %v2032_v52 = vmul.f32 0.5, %v4255_v53 }
 0x5cd   : > { %4413 = vtanh.f32 %v2027_v44 }
 0x5ce   : > { %4415 = vtanh.f32 %v2032_v52 }
 0x5d7   : > { %v4414_v62 = vpop.eup %4413 }
 0x5d8   : > { %v2029_v0 = vadd.f32 1.0, %v4414_v62  ;;  %v4416_v13 = vpop.eup %4415 }
 0x5d9   : > { %v2034_v15 = vadd.f32 1.0, %v4416_v13  ;;  %v2684_v13 = vld [vmem:[#allocation13 + $0x28] sm:$0xff] }
 0x5da   : > { %v2030_v1 = vmul.f32 0.5, %v2029_v0 }
 0x5db   : > { %v2035_v42 = vmul.f32 0.5, %v2034_v15  ;;  %v2685_v15 = vld [vmem:[#allocation13 + $0x30] sm:$0xff] }
 0x5dc   : > { %v2037_v6 = vmul.f32 %v2036_v14, %v2030_v1 }
 0x5de   : > { %v2038_v3 = vadd.f32 %v2037_v6, %v1793_v55 }
 0x5e0   : > { %4417 = vtanh.f32 %v2038_v3  ;;  %v2683_v3 = vld [vmem:[#allocation13 + $0x20] sm:$0xff] }
 0x5ea   : > { %v4418_v37 = vpop.eup %4417 }
 0x5eb   : > { %v2040_v41 = vsub.f32 %v5370_v57, %v4418_v37 }
 0x5ed   : > { %v2041_v51 = vmul.f32 %v2040_v41, %v2035_v42  ;;  %v2687_v41 = vld [vmem:[#allocation13 + $0x40] sm:$0xff] }
 0x5ef   : > { %v5441_v26 = vadd.f32 %v4418_v37, %v2041_v51  ;;  %v2686_v37 = vld [vmem:[#allocation13 + $0x38] sm:$0xff]  ;;  %v2688_v51 = vld [vmem:[#allocation13 + $0x48] sm:$0xff] }
 0x5f0   : > { %v4218_v42 = vpack.c.bf16 %v2686_v37, %v2685_v15 }
 0x5f1   : > { %2157 = vmatmul.mubr.f32.vlgmr.msra.gmra.mrb[10].mxu0 %v5441_v26  ;;  %3520 = vmatmul.mubr.f32.vlgmr.msra.gmra.mrb[26].mxu1 %v5441_v26 }
 0x5f2   : > { %4097 = vmatpush1.bf16.msra.mxu0 %v5281_v36  ;;  %4128 = vmatpush3.bf16.msra.mxu1 %v5307_v61 }
 0x5f3   : > { %4099 = vmatprep.subr.bf16.mxu0 %v5285_v49  ;;  %4129 = vmatprep.subr.bf16.mxu1 %v4727_v19 }
 0x5f4   : > { %2366 = vmatprep.mubr.f32.mxu0 %v4726_v9  ;;  %3554 = vmatprep.mubr.msk.f32.mxu1 %vm4728_vm0, %v4726_v9 }
 0x5f6   : > { %4101 = vmatpush1.bf16.msra.mxu0 %v5287_v11  ;;  %4131 = vmatpush3.bf16.msra.mxu1 %v5318_v10 }
 0x5f7   : > { %4103 = vmatprep.subr.bf16.mxu0 %v5291_v23  ;;  %4132 = vmatprep.subr.bf16.mxu1 %v4727_v19 }
 0x5fa   : > { %4105 = vmatpush1.bf16.msra.mxu0 %v5293_v32  ;;  %4134 = vmatpush3.bf16.msra.mxu1 %v5326_v54 }
 0x5fb   : > { %4107 = vmatprep.subr.bf16.mxu0 %v5297_v35  ;;  %4135 = vmatprep.subr.bf16.mxu1 %v4727_v19 }
 0x5fe   : > { %4109 = vmatpush1.bf16.msra.mxu0 %v5299_v47  ;;  %4137 = vmatpush3.bf16.msra.mxu1 %v5338_v5 }
 0x5ff   : > { %4111 = vmatprep.subr.bf16.mxu0 %v5302_v48  ;;  %4138 = vmatprep.subr.bf16.mxu1 %v4727_v19 }
 0x602   : > { %4113 = vmatpush1.bf16.msra.mxu0 %v5305_v60  ;;  %4140 = vmatpush3.bf16.msra.mxu1 %v5344_v18 }
 0x603   : > { %4115 = vmatprep.subr.bf16.mxu0 %v5313_v63  ;;  %4141 = vmatprep.subr.bf16.mxu1 %v4727_v19 }
 0x606   : > { %4117 = vmatpush1.bf16.msra.mxu0 %v5315_v4  ;;  %4143 = vmatpush3.bf16.msra.mxu1 %v5347_v33 }
 0x607   : > { %4119 = vmatprep.subr.bf16.mxu0 %v5321_v28  ;;  %4144 = vmatprep.subr.bf16.mxu1 %v4727_v19 }
 0x60a   : > { %4121 = vmatpush1.bf16.msra.mxu0 %v5324_v46  ;;  %4146 = vmatpush3.bf16.msra.mxu1 %v5351_v39 }
 0x60b   : > { %4123 = vmatprep.subr.bf16.mxu0 %v5332_v7  ;;  %4147 = vmatprep.subr.bf16.mxu1 %v4727_v19 }
 0x60e   : > { %4125 = vmatpush1.bf16.msra.mxu0 %v5335_v43  ;;  %4149 = vmatpush3.bf16.msra.mxu1 %v5355_v50 }
 0x60f   : > { %4151 = vmatprep.subr.bf16.mxu0 %v5279_v22  ;;  %4182 = vmatprep.subr.bf16.mxu1 %v4727_v19  ;;  %v1798_v22 = vadd.f32 %v5364_v20, %v5435_v12 }
 0x6c4   : > { %v2158_v59 = vpop.f32.mrb[10].mxu0  ;;  %v2229_v2 = vpop.f32.mrb[26].mxu1 }
 0x6c5   : > { %v4256_v25 = vadd.f32 %v2158_v59, %v5420_v8  ;;  %v2160_v17 = vpop.f32.mrb[11].mxu0  ;;  %v3521_v31 = vpop.f32.mrb[27].mxu1  ;;  %v2246_v34 = vadd.f32 %v5431_v58, %v2229_v2  ;;  %v4222_v59 = vpack.c.bf16 %v2688_v51, %v2687_v41  ;;  %v2689_v2 = vld [vmem:[#allocation13 + $0x50] sm:$0xff] }
 0x6c6   : > { %v4257_v29 = vadd.f32 %v2160_v17, %v5425_v56  ;;  %v2691_v31 = vld [vmem:[#allocation13 + $0x60] sm:$0xff] }
 0x6c7   : > { %v2237_v16 = vmul.f32 0.5, %v4256_v25  ;;  %v2690_v25 = vld [vmem:[#allocation13 + $0x58] sm:$0xff] }
 0x6c8   : > { %v2242_v57 = vmul.f32 0.5, %v4257_v29  ;;  %v4226_v17 = vpack.c.bf16 %v2690_v25, %v2689_v2  ;;  %v2693_v29 = vld [vmem:[#allocation13 + $0x70] sm:$0xff] }
 0x6c9   : > { %4419 = vtanh.f32 %v2237_v16  ;;  %v2692_v16 = vld [vmem:[#allocation13 + $0x68] sm:$0xff] }
 0x6ca   : > { %4421 = vtanh.f32 %v2242_v57  ;;  %v2694_v57 = vld [vmem:[#allocation13 + $0x78] sm:$0xff] }
 0x6d3   : > { %v4420_v38 = vpop.eup %4419 }
 0x6d4   : > { %v2239_v27 = vadd.f32 1.0, %v4420_v38  ;;  %v4422_v44 = vpop.eup %4421  ;;  %v4234_v38 = vpack.c.bf16 %v2694_v57, %v2693_v29 }
 0x6d5   : > { %v2244_v53 = vadd.f32 1.0, %v4422_v44 }
 0x6d6   : > { %v2240_v30 = vmul.f32 0.5, %v2239_v27 }
 0x6d7   : > { %v2245_v62 = vmul.f32 0.5, %v2244_v53 }
 0x6d8   : > { %v2247_v40 = vmul.f32 %v2246_v34, %v2240_v30 }
 0x6da   : > { %v2248_v45 = vadd.f32 %v2247_v40, %v1798_v22 }
 0x6dc   : > { %4423 = vtanh.f32 %v2248_v45 }
 0x6e6   : > { %v4424_v52 = vpop.eup %4423 }
 0x6e7   : > { %v2250_v0 = vsub.f32 %v5441_v26, %v4424_v52 }
 0x6e9   : > { %v2251_v14 = vmul.f32 %v2250_v0, %v2245_v62 }
 0x6eb   : > { %v5486_v1 = vadd.f32 %v4424_v52, %v2251_v14 }
 0x6ed   : > { %2367 = vmatmul.mubr.f32.vlgmr.msra.gmra.mrb[12].mxu0 %v5486_v1  ;;  %3555 = vmatmul.mubr.f32.vlgmr.msra.gmra.mrb[28].mxu1 %v5486_v1 }
 0x6ee   : > { %4153 = vmatpush1.bf16.msra.mxu0 %v5281_v36  ;;  %4184 = vmatpush3.bf16.msra.mxu1 %v5307_v61  ;;  %v2680_v36 = vld [vmem:[#allocation13 + $0x8] sm:$0xff] }
 0x6ef   : > { %4155 = vmatprep.subr.bf16.mxu0 %v5285_v49  ;;  %4185 = vmatprep.subr.bf16.mxu1 %v4727_v19 }
 0x6f0   : > { %2576 = vmatprep.mubr.f32.mxu0 %v4726_v9  ;;  %3589 = vmatprep.mubr.msk.f32.mxu1 %vm4728_vm0, %v4726_v9  ;;  %v2679_v9 = vld [vmem:[#allocation13] sm:$0xff] }
 0x6f1   : > { %v4206_v49 = vpack.c.bf16 %v2680_v36, %v2679_v9 }
 0x6f2   : > { %4157 = vmatpush1.bf16.msra.mxu0 %v5287_v11  ;;  %4187 = vmatpush3.bf16.msra.mxu1 %v5318_v10 }
 0x6f3   : > { %4159 = vmatprep.subr.bf16.mxu0 %v5291_v23  ;;  %4188 = vmatprep.subr.bf16.mxu1 %v4727_v19 }
 0x6f6   : > { %4161 = vmatpush1.bf16.msra.mxu0 %v5293_v32  ;;  %4190 = vmatpush3.bf16.msra.mxu1 %v5326_v54 }
 0x6f7   : > { %4163 = vmatprep.subr.bf16.mxu0 %v5297_v35  ;;  %4191 = vmatprep.subr.bf16.mxu1 %v4727_v19 }
 0x6fa   : > { %4165 = vmatpush1.bf16.msra.mxu0 %v5299_v47  ;;  %4193 = vmatpush3.bf16.msra.mxu1 %v5338_v5 }
 0x6fb   : > { %4167 = vmatprep.subr.bf16.mxu0 %v5302_v48  ;;  %4194 = vmatprep.subr.bf16.mxu1 %v4727_v19 }
 0x6fe   : > { %4169 = vmatpush1.bf16.msra.mxu0 %v5305_v60  ;;  %4196 = vmatpush3.bf16.msra.mxu1 %v5344_v18 }
 0x6ff   : > { %4171 = vmatprep.subr.bf16.mxu0 %v5313_v63  ;;  %4197 = vmatprep.subr.bf16.mxu1 %v4727_v19 }
 0x702   : > { %4173 = vmatpush1.bf16.msra.mxu0 %v5315_v4  ;;  %4199 = vmatpush3.bf16.msra.mxu1 %v5347_v33 }
 0x703   : > { %4175 = vmatprep.subr.bf16.mxu0 %v5321_v28  ;;  %4200 = vmatprep.subr.bf16.mxu1 %v4727_v19  ;;  %v1803_v28 = vadd.f32 %v5416_v21, %v5435_v12  ;;  %v4214_v21 = vpack.c.bf16 %v2684_v13, %v2683_v3 }
 0x706   : > { %4177 = vmatpush1.bf16.msra.mxu0 %v5324_v46  ;;  %4202 = vmatpush3.bf16.msra.mxu1 %v5351_v39  ;;  %v2681_v39 = vld [vmem:[#allocation13 + $0x10] sm:$0xff] }
 0x707   : > { %4179 = vmatprep.subr.bf16.mxu0 %v5332_v7  ;;  %4203 = vmatprep.subr.bf16.mxu1 %v4727_v19 }
 0x70a   : > { %4181 = vmatpush1.bf16.msra.mxu0 %v5335_v43  ;;  %4205 = vmatpush3.bf16.msra.mxu1 %v5355_v50  ;;  %v2682_v50 = vld [vmem:[#allocation13 + $0x18] sm:$0xff] }
 0x70b   : > { %4207 = vmatprep.subr.bf16.mxu0 %v4206_v49  ;;  %v4210_v6 = vpack.c.bf16 %v2682_v50, %v2681_v39 }
 0x7c0   : > { %v2368_v11 = vpop.f32.mrb[12].mxu0  ;;  %v2439_v23 = vpop.f32.mrb[28].mxu1 }
 0x7c1   : > { %v4258_v32 = vadd.f32 %v2368_v11, %v5420_v8  ;;  %v2370_v35 = vpop.f32.mrb[13].mxu0  ;;  %v3556_v47 = vpop.f32.mrb[29].mxu1  ;;  %v2456_v10 = vadd.f32 %v5431_v58, %v2439_v23  ;;  %v3029_v11 = vld [vmem:[%s5674_s20] ss:$0 sm:$0xff] }
 0x7c2   : > { %v4259_v60 = vadd.f32 %v2370_v35, %v5425_v56 }
 0x7c3   : > { %v2447_v48 = vmul.f32 0.5, %v4258_v32 }
 0x7c4   : > { %v2452_v61 = vmul.f32 0.5, %v4259_v60 }
 0x7c5   : > { %4425 = vtanh.f32 %v2447_v48 }
 0x7c6   : > { %4427 = vtanh.f32 %v2452_v61 }
 0x7cf   : > { %v4426_v19 = vpop.eup %4425 }
 0x7d0   : > { %v2449_v63 = vadd.f32 1.0, %v4426_v19  ;;  %v4428_v7 = vpop.eup %4427 }
 0x7d1   : > { %v2454_v43 = vadd.f32 1.0, %v4428_v7 }
 0x7d2   : > { %v2450_v4 = vmul.f32 0.5, %v2449_v63 }
 0x7d3   : > { %v2455_v18 = vmul.f32 0.5, %v2454_v43 }
 0x7d4   : > { %v2457_v46 = vmul.f32 %v2456_v10, %v2450_v4 }
 0x7d6   : > { %v2458_v54 = vadd.f32 %v2457_v46, %v1803_v28 }
 0x7d8   : > { %4429 = vtanh.f32 %v2458_v54 }
 0x7e2   : > { %v4430_v5 = vpop.eup %4429 }
 0x7e3   : > { %v2460_v33 = vsub.f32 %v5486_v1, %v4430_v5 }
 0x7e5   : > { %v2461_v20 = vmul.f32 %v2460_v33, %v2455_v18 }
 0x7e7   : > { %v5529_v55 = vadd.f32 %v4430_v5, %v2461_v20 }
 0x7e9   : > { %2577 = vmatmul.mubr.f32.vlgmr.msra.gmra.mrb[14].mxu0 %v5529_v55  ;;  %3590 = vmatmul.mubr.f32.vlgmr.msra.gmra.mrb[30].mxu1 %v5529_v55 }
 0x7ea   : > { %4209 = vmatpush3.bf16.msra.mxu0 %v4206_v49  ;;  %3624 = vmatprep.mubr.f32.mxu0 %v5441_v26  ;;  %v4230_v26 = vpack.c.bf16 %v2692_v16, %v2691_v31  ;;  %v2831_v16 = vld [vmem:[#allocation2] sm:$0xff] (!%p3030_p4) }
 0x7eb   : > { %4211 = vmatprep.subr.bf16.mxu0 %v4210_v6  ;;  %2833 = vst [vmem:[#allocation15] sm:$0xff] (!%p3030_p4), %v2831_v16 }
 0x7ee   : > { %4213 = vmatpush3.bf16.msra.mxu0 %v4210_v6 }
 0x7ef   : > { %4215 = vmatprep.subr.bf16.mxu0 %v4214_v21 }
 0x7f2   : > { %4217 = vmatpush3.bf16.msra.mxu0 %v4214_v21 }
 0x7f3   : > { %4219 = vmatprep.subr.bf16.mxu0 %v4218_v42 }
 0x7f6   : > { %4221 = vmatpush3.bf16.msra.mxu0 %v4218_v42 }
 0x7f7   : > { %4223 = vmatprep.subr.bf16.mxu0 %v4222_v59 }
 0x7fa   : > { %4225 = vmatpush3.bf16.msra.mxu0 %v4222_v59 }
 0x7fb   : > { %4227 = vmatprep.subr.bf16.mxu0 %v4226_v17 }
 0x7fe   : > { %4229 = vmatpush3.bf16.msra.mxu0 %v4226_v17 }
 0x7ff   : > { %4231 = vmatprep.subr.bf16.mxu0 %v4230_v26 }
 0x802   : > { %4233 = vmatpush3.bf16.msra.mxu0 %v4230_v26 }
 0x803   : > { %4235 = vmatprep.subr.bf16.mxu0 %v4234_v38 }
 0x806   : > { %4237 = vmatpush3.bf16.msra.mxu0 %v4234_v38 }
 0x809   : > { %3625 = vmatmul.mubr.f32.vlgmr.msra.gmra.mrb[16].mxu0 %v5486_v1  ;;  %v1808_v1 = vadd.f32 %v5414_v24, %v5435_v12 }
 0x80a   : > { %3627 = vmatprep.mubr.f32.mxu0 %v5529_v55 }
 0x8bc   : > { %v2578_v27 = vpop.f32.mrb[14].mxu0  ;;  %v2649_v30 = vpop.f32.mrb[30].mxu1 }
 0x8bd   : > { %v4260_v34 = vadd.f32 %v2578_v27, %v5420_v8  ;;  %v2580_v22 = vpop.f32.mrb[15].mxu0  ;;  %v3591_v40 = vpop.f32.mrb[31].mxu1  ;;  %v2666_v14 = vadd.f32 %v5431_v58, %v2649_v30 }
 0x8be   : > { %v4261_v44 = vadd.f32 %v2580_v22, %v5425_v56 }
 0x8bf   : > { %v2657_v45 = vmul.f32 0.5, %v4260_v34 }
 0x8c0   : > { %v2662_v53 = vmul.f32 0.5, %v4261_v44 }
 0x8c1   : > { %4431 = vtanh.f32 %v2657_v45 }
 0x8c2   : > { %4433 = vtanh.f32 %v2662_v53 }
 0x8cb   : > { %v4432_v52 = vpop.eup %4431 }
 0x8cc   : > { %v2659_v62 = vadd.f32 1.0, %v4432_v52  ;;  %v4434_v8 = vpop.eup %4433 }
 0x8cd   : > { %v2664_v49 = vadd.f32 1.0, %v4434_v8 }
 0x8ce   : > { %v2660_v0 = vmul.f32 0.5, %v2659_v62 }
 0x8cf   : > { %v2665_v47 = vmul.f32 0.5, %v2664_v49 }
 0x8d0   : > { %v2667_v9 = vmul.f32 %v2666_v14, %v2660_v0 }
 0x8d2   : > { %v2668_v36 = vadd.f32 %v2667_v9, %v1808_v1 }
 0x8d4   : > { %4435 = vtanh.f32 %v2668_v36 }
 0x8dc   : > { %v3626_v56 = vpop.f32.mrb[16].mxu0 }
 0x8dd   : > { %v2768_v23 = vpop.f32.mrb[17].mxu0  ;;  %v2774_v60 = vadd.f32 %v3626_v56, %v3029_v11 }
 0x8de   : > { %v4436_v32 = vpop.eup %4435  ;;  %v2769_v35 = vadd.f32 %v3029_v11, %v2768_v23 }
 0x8df   : > { %v2670_v58 = vsub.f32 %v5529_v55, %v4436_v32 }
 0x8e0   : > { %2787 = vmax.xlane.f32.xlu0 %v2769_v35 }
 0x8e1   : > { %v2671_v48 = vmul.f32 %v2670_v58, %v2665_v47 }
 0x8e3   : > { %v2672_v24 = vadd.f32 %v4436_v32, %v2671_v48 }
 0x8e4   : > { %2789 = vmax.xlane.f32.xlu0 %v2774_v60 }
 0x8e5   : > { %2674 = vst [vmem:[#allocation2 + $0x8] sm:$0xff] %v2672_v24  ;;  %3628 = vmatmul.mubr.f32.gmra.mrb[18].mxu0 %v2672_v24 }
 0x8ec   : > { %v2832_v26 = vld [vmem:[#allocation2 + $0x8] sm:$0xff] (!%p3030_p4) }
 0x8ed   : > { %2834 = vst [vmem:[#allocation15 + $0x8] sm:$0xff] (!%p3030_p4), %v2832_v26 }
 0x96d   : > { %v2788_v12 = vpop.xlane.xlu0 %2787 }
 0x96e   : > { %v2795_v61 = vsub.f32 %v2769_v35, %v2788_v12 }
 0x970   : > { %v2799_v19 = vmul.f32 1.442695, %v2795_v61 }
 0x971   : > { %v2790_v4 = vpop.xlane.xlu0 %2789 }
 0x972   : > { %4437 = vpow2.f32 %v2799_v19  ;;  %v2796_v10 = vsub.f32 %v2774_v60, %v2790_v4 }
 0x974   : > { %v2801_v28 = vmul.f32 1.442695, %v2796_v10 }
 0x976   : > { %4439 = vpow2.f32 %v2801_v28 }
 0x97c   : > { %v4438_v63 = vpop.eup %4437 }
 0x97d   : > { %2807 = vadd.xlane.f32.xlu0 %v4438_v63 }
 0x980   : > { %v4440_v5 = vpop.eup %4439 }
 0x9b8   : > { %v3629_v46 = vpop.f32.mrb[18].mxu0 }
 0x9b9   : > { %v2778_v54 = vpop.f32.mrb[19].mxu0  ;;  %v2784_v43 = vadd.f32 %v3629_v46, %v3029_v11 }
 0x9ba   : > { %v2779_v7 = vadd.f32 %v3029_v11, %v2778_v54 }
 0x9bc   : > { %2791 = vmax.xlane.f32.xlu1 %v2779_v7 }
 0x9c0   : > { %2793 = vmax.xlane.f32.xlu1 %v2784_v43 }
 0x9c4   : > { %2809 = vadd.xlane.f32.xlu1 %v4440_v5 }
 0xa0a   : > { %v2808_v18 = vpop.xlane.xlu0 %2807 }
 0xa0b   : > { %4441 = vrcp.f32 %v2808_v18 }
 0xa15   : > { %v4442_v33 = vpop.eup %4441 }
 0xa16   : > { %v2819_v39 = vmul.f32 %v4442_v33, %v4438_v63 }
 0xa18   : > { %2823 = vst [vmem:[%s5020_s21] sm:$0xff] %v2819_v39 }
 0xa49   : > { %v2792_v50 = vpop.xlane.xlu1 %2791 }
 0xa4a   : > { %v2797_v20 = vsub.f32 %v2779_v7, %v2792_v50 }
 0xa4c   : > { %v2803_v55 = vmul.f32 1.442695, %v2797_v20 }
 0xa4d   : > { %v2794_v6 = vpop.xlane.xlu1 %2793 }
 0xa4e   : > { %4443 = vpow2.f32 %v2803_v55  ;;  %v2798_v3 = vsub.f32 %v2784_v43, %v2794_v6 }
 0xa50   : > { %v2805_v13 = vmul.f32 1.442695, %v2798_v3 }
 0xa51   : > { %v2810_v21 = vpop.xlane.xlu1 %2809 }
 0xa52   : > { %4445 = vpow2.f32 %v2805_v13 }
 0xa53   : > { %4447 = vrcp.f32 %v2810_v21 }
 0xa58   : > { %v4444_v15 = vpop.eup %4443 }
 0xa59   : > { %2811 = vadd.xlane.f32.xlu0 %v4444_v15 }
 0xa5c   : > { %v4446_v37 = vpop.eup %4445 }
 0xa5d   : > { %v4448_v42 = vpop.eup %4447  ;;  %2813 = vadd.xlane.f32.xlu1 %v4446_v37 }
 0xa5e   : > { %v2820_v41 = vmul.f32 %v4448_v42, %v4440_v5 }
 0xa60   : > { %2824 = vst [vmem:[%s5020_s21 + $0x8] sm:$0xff] %v2820_v41 }
 0xae6   : > { %v2812_v51 = vpop.xlane.xlu0 %2811 }
 0xae7   : > { %4449 = vrcp.f32 %v2812_v51 }
 0xaea   : > { %v2814_v59 = vpop.xlane.xlu1 %2813 }
 0xaeb   : > { %4451 = vrcp.f32 %v2814_v59 }
 0xaf1   : > { %v4450_v2 = vpop.eup %4449 }
 0xaf2   : > { %v2821_v25 = vmul.f32 %v4450_v2, %v4444_v15  ;;  %2830 = sbr.rel (%p3030_p4) target bundleno = 2809 (0xaf9), region = 80 }
 0xaf4   : > { %2825 = vst [vmem:[%s5020_s21 + $0x10] sm:$0xff] %v2821_v25 }
 0xaf5   : > { %v4452_v17 = vpop.eup %4451 }
 0xaf6   : > { %v2822_v31 = vmul.f32 %v4452_v17, %v4446_v37 }
 0xaf8   : > { %2826 = vst [vmem:[%s5020_s21 + $0x18] sm:$0xff] %v2822_v31 }
 0xaf9 PF: > { %s3039_s16 = sshll.u32 %s4707_s12, 9  ;;  %s5675_s19 = sld [smem:[#allocation27_spill]] }
 0xafa   : > { %s2850_s23 = sshll.u32 %s5020_s21, 4  ;;  %s2836_s27 = scalar_lea.sflag [#allocation7], %s5002_s24  ;;  %s5557_s23 = int_to_ptr.vmem [resolvable:$true] %s2850_s23 }
 0xafb   : > { %s4595_s8 = scalar_lea.vmem %s5557_s23, 512  ;;  %s4729_s9 = smov [#allocation14]  }
 0xafc   : > { %p4596_p6 = scmp.ne.s32.totalorder %s5557_s23, %s4595_s8  ;;  %s4599_s4 = sshll.u32 %s4729_s9, 4  ;;  %s4600_s4 = int_to_ptr.vmem [resolvable:$false] %s4599_s4 }
 0xafd   : > { %s4601_s12 = scalar_lea.vmem %s4600_s4, 1024  ;;  %p4602_p0 = scmp.lt.s32.totalorder %s5557_s23, %s4600_s4 }
 0xafe   : > { %p4597_p8 = pnand %p4596_p6, %p4944_p10  ;;  %p4603_p5 = scmp.lt.s32.totalorder %s4601_s12, %s4595_s8 }
 0xaff   : > { %s5554_s7 = scalar_lea.hbm %s5675_s19, %s3039_s16 }
 0xb00   : > { %p4598_p12 = pneg %p4597_p8  ;;  %p4604_p9 = por %p4603_p5, %p4602_p0 }
 0xb02   : > { %p4605_p13 = pnand %p4604_p9, %p4598_p12 }
 0xb04   : > { %4608 = shalt.err (!%p4605_p13)
}
 0xb05   : > { %s4609_s21 = scalar_lea.hbm %s5554_s7, 512  ;;  %s4613_s20 = scalar_lea.hbm %s5675_s19, 1024 }
 0xb06   : > { %p4610_p1 = scmp.ne.s32.totalorder %s5554_s7, %s4609_s21  ;;  %p4614_p11 = scmp.lt.u32.totalorder %s5554_s7, %s5675_s19 }
 0xb07   : > { %p4615_p2 = scmp.lt.u32.totalorder %s4613_s20, %s4609_s21  ;;  %p4617_p6 = scmp.lt.u32.totalorder %s4609_s21, %s5554_s7 }
 0xb08   : > { %p4611_p3 = pnand %p4610_p1, %p4944_p10 }
 0xb09   : > { %p4616_p4 = por %p4615_p2, %p4614_p11 }
 0xb0a   : > { %p4612_p7 = pneg %p4611_p3 }
 0xb0b   : > { %p4618_p8 = por %p4617_p6, %p4616_p4 }
 0xb0d   : > { %p4619_p12 = pnand %p4618_p8, %p4612_p7 }
 0xb0f   : > { %4622 = shalt.err (!%p4619_p12)
}
 0xb10   : > { %s4730_s17 = smov 128   ;;  %s4731_s8 = smov 8  }
 0xb11   : > { %4288 = dma.vmem_to_hbm [thread:$0]  (%p4944_p10), %s5557_s23, 512, %s5554_s7, %s2836_s27, %s4730_s17, %s4730_s17, %s4731_s8  }
 0xb12   : > { %s4732_s9 = smov [#allocation15]   ;;  %p5676_p5 = scmp.ne.s32.totalorder %s5658_s18, 0 }
 0xb13   : > { %s2865_s4 = sshll.u32 %s4732_s9, 4  ;;  %s2866_s4 = int_to_ptr.vmem [resolvable:$true] %s2865_s4 }
 0xb14   : > { %s4623_s12 = scalar_lea.vmem %s2866_s4, 256  ;;  %p4630_p1 = scmp.lt.s32.totalorder %s2866_s4, %s2866_s4 }
 0xb15   : > { %p4624_p0 = scmp.ne.s32.totalorder %s2866_s4, %s4623_s12  ;;  %p4631_p3 = scmp.lt.s32.totalorder %s4623_s12, %s4623_s12 }
 0xb17   : > { %p4625_p9 = pnand %p4624_p0, %p5676_p5  ;;  %p4632_p7 = por %p4631_p3, %p4630_p1 }
 0xb19   : > { %p4626_p13 = pneg %p4625_p9 }
 0xb1b   : > { %p4633_p11 = pnand %p4632_p7, %p4626_p13 }
 0xb1d   : > { %4636 = shalt.err (!%p4633_p11)
}
 0xb1e   : > { %s5677_s30 = sld [smem:[#allocation28_spill]] }
 0xb24   : > { %s5678_s20 = smov %s5677_s30  ;;  %s4637_s26 = scalar_lea.hbm %s5677_s30, 256 }
 0xb25   : > { %p4638_p10 = scmp.ne.s32.totalorder %s5678_s20, %s4637_s26  ;;  %p4643_p6 = scmp.lt.u32.totalorder %s4637_s26, %s5678_s20 }
 0xb27   : > { %p4639_p2 = pnand %p4638_p10, %p5676_p5 }
 0xb29   : > { %p4640_p4 = pneg %p4639_p2 }
 0xb2b   : > { %p4645_p8 = pnand %p4643_p6, %p4640_p4 }
 0xb2d   : > { %4648 = shalt.err (!%p4645_p8)
}
 0xb2e   : > { %4290 = dma.vmem_to_hbm [thread:$0]  (%p5676_p5), %s2866_s4, 256, %s5678_s20, [#allocation16], %s4730_s17, %s4730_s17, %s4731_s8  }
 0xb2f   : > { %4686 = dma.done.wait (%p5676_p5), [#allocation16], 256  }
 0xb30   : > { %4688 = vsyncadd (%p5676_p5), [#allocation16], 4294967040 }
 0xb31 PF: > { %s5679_s9 = sld [smem:[#allocation22_spill]]  ;;  %s5680_s12 = sld [smem:[#allocation23_spill]] }
 0xb32   : > { %p5682_p0 = scmp.ge.s32.totalorder %s4715_s14, 2 }
 0xb37   : > { %s2884_s21 = sand.u32 1, %s5679_s9   ;;  %p5681_p12 = scmp.ne.s32.totalorder %s5680_s12, 0 }
 0xb38   : > { %s2885_s5 = scalar_lea.sflag [#allocation7], %s2884_s21 }
 0xb39   : > { %p4312_p9 = pnand %p5682_p0, %p5681_p12 }
 0xb3b   : > { %4690 = dma.done.wait (!%p4312_p9), %s2885_s5, 512  }
 0xb3c   : > { %4692 = vsyncadd (!%p4312_p9), %s2885_s5, 4294966784  ;;  %s29_s14 = sadd.s32 1, %s4715_s14   ;;  %s5683_s30 = smov %s4699_s10 }
 0xb3d   : > { %p26_p13 = scmp.ge.s32.totalorder %s29_s14, 4   ;;  %s5684_s10 = smov %s4703_s11 }
 0xb3e   : > { %s5685_s11 = smov %s4953_s29  ;;  %s5686_s12 = smov %s4711_s13 }
 0xb3f   : > { %s5687_s13 = smov %s5689_s22  ;;  %28 = sbr.rel (!%p26_p13) target bundleno = 15 (0xf), region = 143 }
 0xb46   :  { %2890 = vsyncpa [#allocation6], 1 }
 0xb47   :  { %2892 = vsyncpa [#allocation6 + $0x1], 1 }
 0xb48   :  { %2893 = vsyncpa [#allocation9], 1 }
 0xb49   :  { %2894 = vsyncpa [#allocation12], 1 }
 0xb4a   :  { %2895 = vsyncpa [#allocation7], 1 }
 0xb4b   :  { %2897 = vsyncpa [#allocation7 + $0x1], 1 }
 0xb4c   :  { %2898 = vsyncpa [#allocation16], 1 }

</bundles_post_ra>
